<compile_context>
chip_gen: v5e
topology: v5e:2x2
jax: 0.10.0
libtpu: 0.0.40
codegen_flags: <defaults>
</compile_context>

<pallas_src>
import jax
import jax.numpy as jnp
from jax.experimental import pallas as pl
from jax.experimental.pallas import tpu as pltpu

EPS = 1e-5     # nn.BatchNorm1d default eps
LANE = 128     # TPU lane width (head output is padded to this for dense stores)


# --------------------------------------------------------------------------- #
# Sizing helpers
# --------------------------------------------------------------------------- #
def _round_up(n, m):
    return ((n + m - 1) // m) * m


def _vmem_limit_bytes():
    """Per-generation VMEM budget: physical capacity with ~25% headroom
    (v7x: 64 MiB -> 48 MiB, v5e/v6e: 128 MiB -> 96 MiB)."""
    cap = 64 * 1024 * 1024
    try:
        info = pltpu.get_tpu_info()
        cap = int(getattr(info, "vmem_capacity_bytes", cap))
    except Exception:
        pass
    return (cap * 3) // 4


def _block_size(n_items, bytes_per_item, vmem_budget, min_items, max_items):
    """Items per grid step: multiple of 8 in [min_items, max_items], sized so
    the double-buffered per-step blocks use <= ~half of the VMEM budget, and
    not (much) larger than the padded problem size."""
    fit = (vmem_budget // 2) // max(1, 2 * bytes_per_item)
    blk = min(max_items, max(min_items, fit))
    blk = min(blk, _round_up(n_items, 8))
    blk = max(min_items, blk)
    return _round_up(blk, 8)


def _pad_axis(x, size, axis):
    pad = size - x.shape[axis]
    if pad <= 0:
        return x
    cfg = [(0, 0)] * x.ndim
    cfg[axis] = (0, pad)
    return jnp.pad(x, cfg)


# --------------------------------------------------------------------------- #
# In-kernel helpers
# --------------------------------------------------------------------------- #
def _bdiag_aggregate(a, h):
    """Block-diagonal GCN aggregation: out[g,i,:] = sum_j a[g,i,j] * h[g,j,:].
    For tiny contraction dims (<=16) use unrolled VPU broadcast-FMA instead of
    many micro-matmuls through the MXU; larger dims fall back to the MXU."""
    g, n, f = h.shape
    if n <= 16:
        out = jnp.zeros((g, n, f), jnp.float32)
        for j in range(n):                                   # static, unrolled
            out = out + a[:, :, j:j + 1] * h[:, j:j + 1, :]
        return out
    return jnp.einsum('gij,gjf->gif', a, h, preferred_element_type=jnp.float32)


# --------------------------------------------------------------------------- #
# Kernel 1: local encoder — GCNConv + ReLU + mean pool, per subgraph.
# Grid over blocks of SB subgraphs ("parallel" -> megacore-shardable).
# --------------------------------------------------------------------------- #
def encoder_kernel(sub_x_ref, a_sub_ref, w_ref, b_ref, z_ref):
    # sub_x_ref: [SB, K, FS] f32   a_sub_ref: [SB, K, K] f32
    # w_ref:     [FS, L]     f32   b_ref:     [1, L]     f32
    # z_ref:     [SB, L]     f32
    sb, k, fs = sub_x_ref.shape
    lat = w_ref.shape[1]
    # One MXU matmul over all SB*K nodes (M = SB*K >= 256 by construction).
    xw = jnp.dot(sub_x_ref[...].reshape(sb * k, fs), w_ref[...],
                 preferred_element_type=jnp.float32).reshape(sb, k, lat)
    # Per-subgraph aggregation on the VPU (K is tiny).
    h = _bdiag_aggregate(a_sub_ref[...], xw)
    h = jnp.maximum(h + b_ref[...].reshape(1, 1, lat), 0.0)
    # Mean pool per subgraph (sublane reduction; replaces any pooling matmul).
    z_ref[...] = jnp.mean(h, axis=1)


# --------------------------------------------------------------------------- #
# Kernel 2: global GNN — BN affine + GCNConv + ReLU + mean pool + linear head.
# Grid over blocks of GB graphs; 2-D lane/sublane-dense output block.
# --------------------------------------------------------------------------- #
def gnn_kernel(x_ref, z_ref, a_ref, sx_ref, tx_ref, sz_ref, tz_ref,
               w1x_ref, w1z_ref, b1_ref, w2_ref, b2_ref, out_ref):
    # x_ref: [GB, NG, FX] f32   z_ref: [GB, NG, L] f32   a_ref: [GB, NG, NG] f32
    # sx/tx: [1, FX]  sz/tz: [1, L]   (BatchNorm batch stats folded: y = x*s + t)
    # w1x: [FX, H]  w1z: [L, H]  b1: [1, H]   w2: [H, DP]  b2: [1, DP]
    # out_ref: [GB, DP] f32  (lane- and sublane-dense block)
    gb, ng, fx = x_ref.shape
    lat = z_ref.shape[2]
    hid = w1x_ref.shape[1]
    # BatchNorm1d over the implicit concat([x, z]) — per-feature affine, fp32.
    xn = x_ref[...] * sx_ref[...].reshape(1, 1, fx) + tx_ref[...].reshape(1, 1, fx)
    zn = z_ref[...] * sz_ref[...].reshape(1, 1, lat) + tz_ref[...].reshape(1, 1, lat)
    # GCNConv transform: split W1 dots == concat([x, z]) @ W1 (no HBM concat).
    h = (jnp.dot(xn.reshape(gb * ng, fx), w1x_ref[...],
                 preferred_element_type=jnp.float32)
         + jnp.dot(zn.reshape(gb * ng, lat), w1z_ref[...],
                   preferred_element_type=jnp.float32)).reshape(gb, ng, hid)
    h = _bdiag_aggregate(a_ref[...], h)                 # per-graph GCN aggregation
    h = jnp.maximum(h + b1_ref[...].reshape(1, 1, hid), 0.0)
    g = jnp.mean(h, axis=1)                             # mean pool per graph [GB, H]
    out_ref[...] = jnp.dot(g, w2_ref[...],              # linear head
                           preferred_element_type=jnp.float32) + b2_ref[...]


# --------------------------------------------------------------------------- #
# Host-side glue
# --------------------------------------------------------------------------- #
def gcn_norm_blocks(adj_blocks):
    """D^-1/2 (A + I) D^-1/2 per block (PyG GCNConv default normalization)."""
    n = adj_blocks.shape[-1]
    adj = adj_blocks + jnp.eye(n, dtype=adj_blocks.dtype)
    deg = adj.sum(axis=-1)
    dinv = jax.lax.rsqrt(jnp.maximum(deg, 1.0))
    return adj * dinv[..., :, None] * dinv[..., None, :]


def gog_forward(params, sub_x, a_sub_blocks, x, a_blocks):
    """
    sub_x:        [N, K, FS]     subgraph node features (one subgraph per global node)
    a_sub_blocks: [N, K, K]      GCN-normalized per-subgraph adjacency blocks
    x:            [N, FX]        global node features (graph-contiguous node order)
    a_blocks:     [B, NG, NG]    GCN-normalized per-graph adjacency blocks
    """
    N, K, FS = sub_x.shape
    B, NG, _ = a_blocks.shape
    FX = x.shape[1]
    LATENT = params["w_enc"].shape[1]
    HIDDEN = params["w1x"].shape[1]
    D_OUT = params["w2"].shape[1]
    DP = LANE
    assert N == B * NG, "global nodes must be graph-contiguous"

    vmem_budget = _vmem_limit_bytes()

    # ---------------- kernel 1: local encoder over blocks of SB subgraphs ----
    # SB: multiple of 8, large enough that the encoder matmul has M = SB*K >=
    # 256 rows (MXU height), sized against the per-generation VMEM budget.
    per_sub_bytes = (K * FS + K * K + LATENT) * 4
    sb_min = _round_up(max(8, -(-256 // K)), 8)
    SB = _block_size(N, per_sub_bytes, vmem_budget, min_items=sb_min, max_items=512)
    N_pad = _round_up(N, SB)
    sub_x_p = _pad_axis(sub_x, N_pad, 0)        # natural FS width — no lane padding
    a_sub_p = _pad_axis(a_sub_blocks, N_pad, 0)

    z_full = pl.pallas_call(
        encoder_kernel,
        out_shape=jax.ShapeDtypeStruct((N_pad, LATENT), jnp.float32),
        grid=(N_pad // SB,),
        in_specs=[
            pl.BlockSpec((SB, K, FS), lambda i: (i, 0, 0)),
            pl.BlockSpec((SB, K, K), lambda i: (i, 0, 0)),
            # Constant-index weight blocks are not re-fetched across steps;
            # single-buffering them would only save a few KB here.
            pl.BlockSpec((FS, LATENT), lambda i: (0, 0)),
            pl.BlockSpec((1, LATENT), lambda i: (0, 0)),
        ],
        out_specs=pl.BlockSpec((SB, LATENT), lambda i: (i, 0)),
        compiler_params=pltpu.CompilerParams(
            dimension_semantics=("parallel",),
            vmem_limit_bytes=vmem_budget),
        cost_estimate=pl.CostEstimate(
            flops=int(2 * N_pad * K * LATENT * (FS + K)),
            transcendentals=0,
            bytes_accessed=int((sub_x_p.size + a_sub_p.size
                                + params["w_enc"].size + N_pad * LATENT) * 4)),
    )(sub_x_p, a_sub_p, params["w_enc"], params["b_enc"])
    z = z_full[:N]                                           # drop padded subgraphs

    # ------- BatchNorm1d(concat([x, z])) batch stats in fp32 glue ------------
    # Per-feature stats over the unpadded N rows, folded into scale/shift so the
    # node dimension can be tiled inside kernel 2 (biased variance, training mode).
    def _bn_fold(v, gamma, beta):
        mu = jnp.mean(v, axis=0, keepdims=True)
        var = jnp.mean((v - mu) ** 2, axis=0, keepdims=True)
        scale = gamma * jax.lax.rsqrt(var + EPS)
        return scale, beta - mu * scale

    sx, tx = _bn_fold(x, params["gamma"][:, :FX], params["beta"][:, :FX])
    sz, tz = _bn_fold(z, params["gamma"][:, FX:], params["beta"][:, FX:])

    # ---------------- kernel 2: global GNN over blocks of GB graphs ----------
    per_graph_bytes = (NG * (FX + LATENT + NG) + DP) * 4
    GB = _block_size(B, per_graph_bytes, vmem_budget, min_items=8, max_items=64)
    B_pad = _round_up(B, GB)
    x_blk = _pad_axis(x.reshape(B, NG, FX), B_pad, 0)        # natural widths
    z_blk = _pad_axis(z.reshape(B, NG, LATENT), B_pad, 0)
    a_blk = _pad_axis(a_blocks, B_pad, 0)
    w2_p = _pad_axis(params["w2"], DP, 1)                    # lane-dense head output
    b2_p = _pad_axis(params["b2"], DP, 1)

    out_pad = pl.pallas_call(
        gnn_kernel,
        out_shape=jax.ShapeDtypeStruct((B_pad, DP), jnp.float32),
        grid=(B_pad // GB,),
        in_specs=[
            pl.BlockSpec((GB, NG, FX), lambda g: (g, 0, 0)),
            pl.BlockSpec((GB, NG, LATENT), lambda g: (g, 0, 0)),
            pl.BlockSpec((GB, NG, NG), lambda g: (g, 0, 0)),
            pl.BlockSpec((1, FX), lambda g: (0, 0)),
            pl.BlockSpec((1, FX), lambda g: (0, 0)),
            pl.BlockSpec((1, LATENT), lambda g: (0, 0)),
            pl.BlockSpec((1, LATENT), lambda g: (0, 0)),
            pl.BlockSpec((FX, HIDDEN), lambda g: (0, 0)),
            pl.BlockSpec((LATENT, HIDDEN), lambda g: (0, 0)),
            pl.BlockSpec((1, HIDDEN), lambda g: (0, 0)),
            pl.BlockSpec((HIDDEN, DP), lambda g: (0, 0)),
            pl.BlockSpec((1, DP), lambda g: (0, 0)),
        ],
        out_specs=pl.BlockSpec((GB, DP), lambda g: (g, 0)),
        compiler_params=pltpu.CompilerParams(
            dimension_semantics=("parallel",),
            vmem_limit_bytes=vmem_budget),
        cost_estimate=pl.CostEstimate(
            flops=int(2 * B_pad * (NG * (FX + LATENT) * HIDDEN
                                   + NG * NG * HIDDEN + HIDDEN * DP)),
            transcendentals=0,
            bytes_accessed=int((x_blk.size + z_blk.size + a_blk.size
                                + w2_p.size + B_pad * DP) * 4)),
    )(x_blk, z_blk, a_blk, sx, tx, sz, tz,
      params["w1x"], params["w1z"], params["b1"], w2_p, b2_p)

    return out_pad[:B, :D_OUT]


# --------------------------------------------------------------------------- #
# Pure-JAX fp32 reference (same math, dense ops) for validation
# --------------------------------------------------------------------------- #
def reference_forward(params, sub_x, a_sub_blocks, x, a_blocks):
    B, NG, _ = a_blocks.shape
    xw = jnp.einsum('nkf,fl->nkl', sub_x, params["w_enc"])
    h = jnp.einsum('nij,njl->nil', a_sub_blocks, xw)
    h = jnp.maximum(h + params["b_enc"].reshape(1, 1, -1), 0.0)
    z = jnp.mean(h, axis=1)
    xz = jnp.concatenate([x, z], axis=1)
    mu = jnp.mean(xz, axis=0, keepdims=True)
    var = jnp.mean((xz - mu) ** 2, axis=0, keepdims=True)
    xzn = (xz - mu) * jax.lax.rsqrt(var + EPS) * params["gamma"] + params["beta"]
    w1 = jnp.concatenate([params["w1x"], params["w1z"]], axis=0)
    hh = (xzn @ w1).reshape(B, NG, -1)
    hh = jnp.einsum('bij,bjh->bih', a_blocks, hh)
    hh = jnp.maximum(hh + params["b1"].reshape(1, 1, -1), 0.0)
    g = jnp.mean(hh, axis=1)
    return g @ params["w2"] + params["b2"]


# --------------------------------------------------------------------------- #
# Parameters / toy graph construction
# --------------------------------------------------------------------------- #
def make_params(key, fs, fx, latent, hidden, d_out):
    ks = jax.random.split(key, 8)
    fcat = fx + latent
    return {
        "w_enc": jax.random.normal(ks[0], (fs, latent), jnp.float32) * 0.1,
        "b_enc": jax.random.normal(ks[1], (1, latent), jnp.float32) * 0.05,
        "gamma": 1.0 + jax.random.normal(ks[2], (1, fcat), jnp.float32) * 0.1,
        "beta": jax.random.normal(ks[3], (1, fcat), jnp.float32) * 0.1,
        "w1x": jax.random.normal(ks[4], (fx, hidden), jnp.float32) * 0.1,
        "w1z": jax.random.normal(ks[5], (latent, hidden), jnp.float32) * 0.1,
        "b1": jax.random.normal(ks[6], (1, hidden), jnp.float32) * 0.05,
        "w2": jax.random.normal(ks[7], (hidden, d_out), jnp.float32) * 0.1,
        "b2": jnp.zeros((1, d_out), jnp.float32),
    }


def ring_adj(n):
    eye = jnp.eye(n, dtype=jnp.float32)
    return jnp.roll(eye, 1, axis=1) + jnp.roll(eye, -1, axis=1)


if __name__ == "__main__":
    key = jax.random.PRNGKey(0)
    k_x, k_sub, k_par = jax.random.split(key, 3)

    # sizes (small, consistent with the module)
    B, NG = 2, 8          # 2 global graphs, 8 nodes each
    N = B * NG            # 16 global nodes
    K = 8                 # nodes per subgraph (one subgraph per global node)
    FS = 8                # boundary_node_feat
    FX = 8                # global node feature dim
    LATENT = 8            # latent_dim  -> gnn.num_features = FX + LATENT = 16
    HIDDEN = 32
    D_OUT = 4

    x = jax.random.normal(k_x, (N, FX), jnp.float32)
    sub_x = jax.random.normal(k_sub, (N, K, FS), jnp.float32)

    # ring topology within each subgraph / each global graph (block-diagonal layout)
    a_sub_blocks = gcn_norm_blocks(jnp.broadcast_to(ring_adj(K), (N, K, K)))
    a_blocks = gcn_norm_blocks(jnp.broadcast_to(ring_adj(NG), (B, NG, NG)))

    params = make_params(k_par, FS, FX, LATENT, HIDDEN, D_OUT)

    out = gog_forward(params, sub_x, a_sub_blocks, x, a_blocks)
    out = jax.block_until_ready(out)
    assert out.shape == (B, D_OUT)
    assert bool(jnp.all(jnp.isfinite(out)))

    ref = reference_forward(params, sub_x, a_sub_blocks, x, a_blocks)
    err = float(jnp.max(jnp.abs(out - ref)))
    assert bool(jnp.allclose(out, ref, rtol=2e-2, atol=2e-2)), \
        f"kernel/reference mismatch: max|diff|={err}"
    print("KERNEL_OK")
</pallas_src>

<mosaic_0001>
module attributes {stable_mosaic.version = 11 : i64} {
  func.func @encoder_kernel(%arg0: i32, %arg1: memref<32x8x8xf32, #tpu.memory_space<vmem>>, %arg2: memref<32x8x8xf32, #tpu.memory_space<vmem>>, %arg3: memref<8x8xf32, #tpu.memory_space<vmem>>, %arg4: memref<1x8xf32, #tpu.memory_space<vmem>>, %arg5: memref<32x8xf32, #tpu.memory_space<vmem>>) attributes {dimension_semantics = [#tpu.dimension_semantics<parallel>], iteration_bounds = array<i64: 1>, scalar_prefetch = 0 : i64, scratch_operands = 0 : i64, tpu.core_type = #tpu.core_type<tc>, window_params = [{transform_indices = @transform_0, window_bounds = array<i64: 32, 8, 8>}, {transform_indices = @transform_1, window_bounds = array<i64: 32, 8, 8>}, {pipeline_mode = #tpu.pipeline_mode<synchronous>, transform_indices = @transform_2, window_bounds = array<i64: 8, 8>}, {pipeline_mode = #tpu.pipeline_mode<synchronous>, transform_indices = @transform_3, window_bounds = array<i64: 1, 8>}, {transform_indices = @transform_4, window_bounds = array<i64: 32, 8>}]} {
    %c0 = arith.constant 0 : index
    %c0_0 = arith.constant 0 : index
    %c0_1 = arith.constant 0 : index
    %0 = vector.load %arg1[%c0, %c0_0, %c0_1] : memref<32x8x8xf32, #tpu.memory_space<vmem>>, vector<32x8x8xf32>
    %1 = vector.shape_cast %0 : vector<32x8x8xf32> to vector<256x8xf32>
    %c0_2 = arith.constant 0 : index
    %c0_3 = arith.constant 0 : index
    %2 = vector.load %arg3[%c0_2, %c0_3] : memref<8x8xf32, #tpu.memory_space<vmem>>, vector<8x8xf32>
    %cst = arith.constant dense<0.000000e+00> : vector<256x8xf32>
    %3 = tpu.matmul %1, %2, %cst {dimension_numbers = #tpu.dot_dimension_numbers<[1], [0], [0], [1], [0, 0, 1, 1], [], []>} : vector<256x8xf32>, vector<8x8xf32>, vector<256x8xf32> -> vector<256x8xf32>
    %4 = vector.shape_cast %3 : vector<256x8xf32> to vector<32x8x8xf32>
    %c0_4 = arith.constant 0 : index
    %c0_5 = arith.constant 0 : index
    %c0_6 = arith.constant 0 : index
    %5 = vector.load %arg2[%c0_4, %c0_5, %c0_6] : memref<32x8x8xf32, #tpu.memory_space<vmem>>, vector<32x8x8xf32>
    %cst_7 = arith.constant 0.000000e+00 : f32
    %6 = vector.broadcast %cst_7 : f32 to vector<32x8x8xf32>
    %7 = vector.extract_strided_slice %5 {offsets = [0, 0, 0], sizes = [32, 8, 1], strides = [1, 1, 1]} : vector<32x8x8xf32> to vector<32x8x1xf32>
    %8 = vector.extract_strided_slice %4 {offsets = [0, 0, 0], sizes = [32, 1, 8], strides = [1, 1, 1]} : vector<32x8x8xf32> to vector<32x1x8xf32>
    %9 = vector.broadcast %7 : vector<32x8x1xf32> to vector<32x8x8xf32>
    %10 = vector.broadcast %8 : vector<32x1x8xf32> to vector<32x8x8xf32>
    %11 = arith.mulf %9, %10 : vector<32x8x8xf32>
    %12 = arith.addf %6, %11 : vector<32x8x8xf32>
    %13 = vector.extract_strided_slice %5 {offsets = [0, 0, 1], sizes = [32, 8, 1], strides = [1, 1, 1]} : vector<32x8x8xf32> to vector<32x8x1xf32>
    %14 = vector.extract_strided_slice %4 {offsets = [0, 1, 0], sizes = [32, 1, 8], strides = [1, 1, 1]} : vector<32x8x8xf32> to vector<32x1x8xf32>
    %15 = vector.broadcast %13 : vector<32x8x1xf32> to vector<32x8x8xf32>
    %16 = vector.broadcast %14 : vector<32x1x8xf32> to vector<32x8x8xf32>
    %17 = arith.mulf %15, %16 : vector<32x8x8xf32>
    %18 = arith.addf %12, %17 : vector<32x8x8xf32>
    %19 = vector.extract_strided_slice %5 {offsets = [0, 0, 2], sizes = [32, 8, 1], strides = [1, 1, 1]} : vector<32x8x8xf32> to vector<32x8x1xf32>
    %20 = vector.extract_strided_slice %4 {offsets = [0, 2, 0], sizes = [32, 1, 8], strides = [1, 1, 1]} : vector<32x8x8xf32> to vector<32x1x8xf32>
    %21 = vector.broadcast %19 : vector<32x8x1xf32> to vector<32x8x8xf32>
    %22 = vector.broadcast %20 : vector<32x1x8xf32> to vector<32x8x8xf32>
    %23 = arith.mulf %21, %22 : vector<32x8x8xf32>
    %24 = arith.addf %18, %23 : vector<32x8x8xf32>
    %25 = vector.extract_strided_slice %5 {offsets = [0, 0, 3], sizes = [32, 8, 1], strides = [1, 1, 1]} : vector<32x8x8xf32> to vector<32x8x1xf32>
    %26 = vector.extract_strided_slice %4 {offsets = [0, 3, 0], sizes = [32, 1, 8], strides = [1, 1, 1]} : vector<32x8x8xf32> to vector<32x1x8xf32>
    %27 = vector.broadcast %25 : vector<32x8x1xf32> to vector<32x8x8xf32>
    %28 = vector.broadcast %26 : vector<32x1x8xf32> to vector<32x8x8xf32>
    %29 = arith.mulf %27, %28 : vector<32x8x8xf32>
    %30 = arith.addf %24, %29 : vector<32x8x8xf32>
    %31 = vector.extract_strided_slice %5 {offsets = [0, 0, 4], sizes = [32, 8, 1], strides = [1, 1, 1]} : vector<32x8x8xf32> to vector<32x8x1xf32>
    %32 = vector.extract_strided_slice %4 {offsets = [0, 4, 0], sizes = [32, 1, 8], strides = [1, 1, 1]} : vector<32x8x8xf32> to vector<32x1x8xf32>
    %33 = vector.broadcast %31 : vector<32x8x1xf32> to vector<32x8x8xf32>
    %34 = vector.broadcast %32 : vector<32x1x8xf32> to vector<32x8x8xf32>
    %35 = arith.mulf %33, %34 : vector<32x8x8xf32>
    %36 = arith.addf %30, %35 : vector<32x8x8xf32>
    %37 = vector.extract_strided_slice %5 {offsets = [0, 0, 5], sizes = [32, 8, 1], strides = [1, 1, 1]} : vector<32x8x8xf32> to vector<32x8x1xf32>
    %38 = vector.extract_strided_slice %4 {offsets = [0, 5, 0], sizes = [32, 1, 8], strides = [1, 1, 1]} : vector<32x8x8xf32> to vector<32x1x8xf32>
    %39 = vector.broadcast %37 : vector<32x8x1xf32> to vector<32x8x8xf32>
    %40 = vector.broadcast %38 : vector<32x1x8xf32> to vector<32x8x8xf32>
    %41 = arith.mulf %39, %40 : vector<32x8x8xf32>
    %42 = arith.addf %36, %41 : vector<32x8x8xf32>
    %43 = vector.extract_strided_slice %5 {offsets = [0, 0, 6], sizes = [32, 8, 1], strides = [1, 1, 1]} : vector<32x8x8xf32> to vector<32x8x1xf32>
    %44 = vector.extract_strided_slice %4 {offsets = [0, 6, 0], sizes = [32, 1, 8], strides = [1, 1, 1]} : vector<32x8x8xf32> to vector<32x1x8xf32>
    %45 = vector.broadcast %43 : vector<32x8x1xf32> to vector<32x8x8xf32>
    %46 = vector.broadcast %44 : vector<32x1x8xf32> to vector<32x8x8xf32>
    %47 = arith.mulf %45, %46 : vector<32x8x8xf32>
    %48 = arith.addf %42, %47 : vector<32x8x8xf32>
    %49 = vector.extract_strided_slice %5 {offsets = [0, 0, 7], sizes = [32, 8, 1], strides = [1, 1, 1]} : vector<32x8x8xf32> to vector<32x8x1xf32>
    %50 = vector.extract_strided_slice %4 {offsets = [0, 7, 0], sizes = [32, 1, 8], strides = [1, 1, 1]} : vector<32x8x8xf32> to vector<32x1x8xf32>
    %51 = vector.broadcast %49 : vector<32x8x1xf32> to vector<32x8x8xf32>
    %52 = vector.broadcast %50 : vector<32x1x8xf32> to vector<32x8x8xf32>
    %53 = arith.mulf %51, %52 : vector<32x8x8xf32>
    %54 = arith.addf %48, %53 : vector<32x8x8xf32>
    %c0_8 = arith.constant 0 : index
    %c0_9 = arith.constant 0 : index
    %55 = vector.load %arg4[%c0_8, %c0_9] : memref<1x8xf32, #tpu.memory_space<vmem>>, vector<1x8xf32>
    %56 = vector.shape_cast %55 : vector<1x8xf32> to vector<1x1x8xf32>
    %57 = vector.broadcast %56 : vector<1x1x8xf32> to vector<32x8x8xf32>
    %58 = arith.addf %54, %57 : vector<32x8x8xf32>
    %cst_10 = arith.constant 0.000000e+00 : f32
    %59 = vector.broadcast %cst_10 : f32 to vector<32x8x8xf32>
    %60 = arith.maximumf %58, %59 : vector<32x8x8xf32>
    %cst_11 = arith.constant dense<0.000000e+00> : vector<32x8xf32>
    %61 = vector.multi_reduction <add>, %60, %cst_11 [1] : vector<32x8x8xf32> to vector<32x8xf32>
    %cst_12 = arith.constant 8.000000e+00 : f32
    %62 = vector.broadcast %cst_12 : f32 to vector<32x8xf32>
    %63 = arith.divf %61, %62 : vector<32x8xf32>
    %c0_13 = arith.constant 0 : index
    %c0_14 = arith.constant 0 : index
    %64 = vector.load %arg5[%c0_13, %c0_14] : memref<32x8xf32, #tpu.memory_space<vmem>>, vector<32x8xf32>
    tpu.vector_store %arg5[%c0_13, %c0_14], %63 {strides = array<i32>} : memref<32x8xf32, #tpu.memory_space<vmem>>, vector<32x8xf32>,
    return
  }
  func.func @transform_0(%arg0: i32) -> (i32, i32, i32) {
    %c0_i32 = arith.constant 0 : i32
    %c0_i32_0 = arith.constant 0 : i32
    %c0_i32_1 = arith.constant 0 : i32
    return %arg0, %c0_i32, %c0_i32_0 : i32, i32, i32
  }
  func.func @transform_1(%arg0: i32) -> (i32, i32, i32) {
    %c0_i32 = arith.constant 0 : i32
    %c0_i32_0 = arith.constant 0 : i32
    %c0_i32_1 = arith.constant 0 : i32
    return %arg0, %c0_i32, %c0_i32_0 : i32, i32, i32
  }
  func.func @transform_2(%arg0: i32) -> (i32, i32) {
    %c0_i32 = arith.constant 0 : i32
    %c0_i32_0 = arith.constant 0 : i32
    %c0_i32_1 = arith.constant 0 : i32
    return %c0_i32, %c0_i32_0 : i32, i32
  }
  func.func @transform_3(%arg0: i32) -> (i32, i32) {
    %c0_i32 = arith.constant 0 : i32
    %c0_i32_0 = arith.constant 0 : i32
    %c0_i32_1 = arith.constant 0 : i32
    return %c0_i32, %c0_i32_0 : i32, i32
  }
  func.func @transform_4(%arg0: i32) -> (i32, i32) {
    %c0_i32 = arith.constant 0 : i32
    %c0_i32_0 = arith.constant 0 : i32
    return %arg0, %c0_i32 : i32, i32
  }
}

</mosaic_0001>

<bundles_post_ra>
// kernel: tpu_custom_call.1
= control target key start
LH: loop header
LB: loop body
LE: loop exit
PB: predicated region body
PF: predicated region fallthrough
CT: control target
= control target key end

     0   :  { %v2636_v0 = vmov 0   ;;  %vm50_vm0 = vcmask 64512   ;;  %vm2479_vm2 = vcmask 1041409   ;;  %vm2481_vm3 = vcmask 1042434   ;;  %s4654_s2 = inlined_call_operand.vmem [shape: f32[8,8], index: 2, kind: input, shape index: {}]   ;;  %s4655_s1 = inlined_call_operand.vmem [shape: f32[32,8,8], index: 1, kind: input, shape index: {}]   ;;  %s4656_s0 = inlined_call_operand.vmem [shape: f32[32,8,8], index: 0, kind: input, shape index: {}]   ;;  %s4657_s3 = inlined_call_operand.vmem [shape: f32[1,8], index: 3, kind: input, shape index: {}]   ;;  %s4658_s4 = inlined_call_operand.vmem [shape: f32[32,8], index: 4, kind: output, shape index: {}]  }
   0x1   :  { %2572 = vset.pattern.permute.xlu2 %v2636_v0  ;;  %2571 = vset.pattern.permute.xlu1 %v2636_v0  ;;  %v49_v1 = vld [vmem:[%s4654_s2] sm:$0xff]  ;;  %v2681_v3 = vld [vmem:[%s4655_s1 + $0x10] sm:$0xff]  ;;  %v2710_v9 = vld [vmem:[%s4655_s1 + $0x28] sm:$0xff]  ;;  %vm2483_vm4 = vcmask 1043459   ;;  %vm2485_vm5 = vcmask 1044484   ;;  %vm2487_vm6 = vcmask 1045509  }
   0x2   :  { %v2676_v2 = vld [vmem:[%s4655_s1 + $0x20] sm:$0xff]  ;;  %2570 = vset.pattern.permute.xlu0 %v2636_v0  ;;  %162 = vmatpush.msra.mxu0 %v49_v1  ;;  %v2715_v10 = vld [vmem:[%s4655_s1 + $0x18] sm:$0xff]  ;;  %v2720_v11 = vld [vmem:[%s4655_s1 + $0x8] sm:$0xff]  ;;  %vm2489_vm7 = vcmask 1046534   ;;  %vm2491_vm8 = vcmask 1047559  }
   0x3   :  { %v2686_v4 = vld [vmem:[%s4655_s1] sm:$0xff]  ;;  %2558 = vmatpush.msra.mxu1 %v49_v1  ;;  %2559 = vmatpush.msra.mxu2 %v49_v1  ;;  %v18_v12 = vld [vmem:[%s4656_s0 + $0x8] sm:$0xff]  ;;  %v2749_v17 = vld [vmem:[%s4655_s1 + $0x38] sm:$0xff] }
   0x4   :  { %v17_v5 = vld [vmem:[%s4656_s0] sm:$0xff]  ;;  %2560 = vmatpush.msra.mxu3 %v49_v1  ;;  %314 = vperm.xlu2 %2572, %v2676_v2   ;;  %v26_v13 = vld [vmem:[%s4656_s0 + $0x48] sm:$0xff]  ;;  %v2754_v18 = vld [vmem:[%s4655_s1 + $0x30] sm:$0xff] }
   0x5   :  { %v25_v6 = vld [vmem:[%s4656_s0 + $0x40] sm:$0xff]  ;;  %304 = vperm.xlu1 %2571, %v2681_v3   ;;  %294 = vperm.xlu0 %2570, %v2686_v4   ;;  %v34_v14 = vld [vmem:[%s4656_s0 + $0x88] sm:$0xff]  ;;  %v19_v19 = vld [vmem:[%s4656_s0 + $0x10] sm:$0xff] }
   0x6   :  { %v33_v7 = vld [vmem:[%s4656_s0 + $0x80] sm:$0xff]  ;;  %2526 = vmatmul.msk.f32.vlgmr.msra.gmra.mxu0 %vm50_vm0, %v17_v5  ;;  %2534 = vmatmul.msk.f32.vlgmr.msra.gmra.mxu1 %vm50_vm0, %v25_v6  ;;  %v42_v15 = vld [vmem:[%s4656_s0 + $0xc8] sm:$0xff]  ;;  %v27_v20 = vld [vmem:[%s4656_s0 + $0x50] sm:$0xff]  ;;  %v2637_v5 = vmov 1  }
   0x7   :  { %v41_v8 = vld [vmem:[%s4656_s0 + $0xc0] sm:$0xff]  ;;  %2542 = vmatmul.msk.f32.vlgmr.msra.gmra.mxu2 %vm50_vm0, %v33_v7  ;;  %v35_v21 = vld [vmem:[%s4656_s0 + $0x90] sm:$0xff]  ;;  %v2778_v23 = vld [vmem:[%s4655_s1 + $0x58] sm:$0xff] }
   0x8   :  { %2550 = vmatmul.msk.f32.vlgmr.msra.gmra.mxu3 %vm50_vm0, %v41_v8  ;;  %v2744_v16 = vld [vmem:[%s4655_s1 + $0x40] sm:$0xff]  ;;  %v43_v22 = vld [vmem:[%s4656_s0 + $0xd0] sm:$0xff]  ;;  %v2788_v25 = vld [vmem:[%s4655_s1 + $0x48] sm:$0xff] }
   0x9   :  { %v2783_v24 = vld [vmem:[%s4655_s1 + $0x50] sm:$0xff]  ;;  %v20_v26 = vld [vmem:[%s4656_s0 + $0x18] sm:$0xff]  ;;  %v2817_v31 = vld [vmem:[%s4655_s1 + $0x68] sm:$0xff] }
   0xa   :  { %v28_v27 = vld [vmem:[%s4656_s0 + $0x58] sm:$0xff]  ;;  %v2812_v30 = vld [vmem:[%s4655_s1 + $0x70] sm:$0xff]  ;;  %v2822_v32 = vld [vmem:[%s4655_s1 + $0x60] sm:$0xff] }
   0xb   :  { %v36_v28 = vld [vmem:[%s4656_s0 + $0x98] sm:$0xff]  ;;  %v21_v33 = vld [vmem:[%s4656_s0 + $0x20] sm:$0xff]  ;;  %v2846_v37 = vld [vmem:[%s4655_s1 + $0x88] sm:$0xff] }
   0xc   :  { %319 = vperm.xlu2 %2572, %v2710_v9   ;;  %v44_v29 = vld [vmem:[%s4656_s0 + $0xd8] sm:$0xff]  ;;  %v29_v34 = vld [vmem:[%s4656_s0 + $0x60] sm:$0xff]  ;;  %4740 = vst [vmem:[#allocation2_spill] sm:$0xff] %v2846_v37  ;;  %v22_v40 = vld [vmem:[%s4656_s0 + $0x28] sm:$0xff] }
   0xd   :  { %309 = vperm.xlu1 %2571, %v2715_v10   ;;  %299 = vperm.xlu0 %2570, %v2720_v11   ;;  %v37_v35 = vld [vmem:[%s4656_s0 + $0xa0] sm:$0xff]  ;;  %v2856_v39 = vld [vmem:[%s4655_s1 + $0x78] sm:$0xff]  ;;  %v30_v41 = vld [vmem:[%s4656_s0 + $0x68] sm:$0xff] }
   0xe   :  { %2527 = vmatmul.msk.f32.gmra.mxu0 %vm50_vm0, %v18_v12  ;;  %2535 = vmatmul.msk.f32.gmra.mxu1 %vm50_vm0, %v26_v13  ;;  %v45_v36 = vld [vmem:[%s4656_s0 + $0xe0] sm:$0xff]  ;;  %v38_v42 = vld [vmem:[%s4656_s0 + $0xa8] sm:$0xff]  ;;  %v2885_v45 = vld [vmem:[%s4655_s1 + $0x98] sm:$0xff] }
   0xf   :  { %2543 = vmatmul.msk.f32.gmra.mxu2 %vm50_vm0, %v34_v14  ;;  %v2851_v38 = vld [vmem:[%s4655_s1 + $0x80] sm:$0xff]  ;;  %v46_v43 = vld [vmem:[%s4656_s0 + $0xe8] sm:$0xff]  ;;  %v2890_v46 = vld [vmem:[%s4655_s1 + $0x90] sm:$0xff] }
  0x10   :  { %2551 = vmatmul.msk.f32.gmra.mxu3 %vm50_vm0, %v42_v15  ;;  %4741 = vst [vmem:[#allocation3_spill] sm:$0xff] %v2851_v38  ;;  %v2880_v44 = vld [vmem:[%s4655_s1 + $0xa0] sm:$0xff]  ;;  %v23_v47 = vld [vmem:[%s4656_s0 + $0x30] sm:$0xff]  ;;  %v2914_v51 = vld [vmem:[%s4655_s1 + $0xb8] sm:$0xff] }
  0x11   :  { %v31_v48 = vld [vmem:[%s4656_s0 + $0x70] sm:$0xff]  ;;  %v2924_v53 = vld [vmem:[%s4655_s1 + $0xa8] sm:$0xff]  ;;  %v24_v54 = vld [vmem:[%s4656_s0 + $0x38] sm:$0xff] }
  0x12   :  { %v39_v49 = vld [vmem:[%s4656_s0 + $0xb0] sm:$0xff]  ;;  %v32_v55 = vld [vmem:[%s4656_s0 + $0x78] sm:$0xff]  ;;  %v2953_v59 = vld [vmem:[%s4655_s1 + $0xc8] sm:$0xff] }
  0x13   :  { %v47_v50 = vld [vmem:[%s4656_s0 + $0xf0] sm:$0xff]  ;;  %v40_v56 = vld [vmem:[%s4656_s0 + $0xb8] sm:$0xff]  ;;  %v2958_v60 = vld [vmem:[%s4655_s1 + $0xc0] sm:$0xff] }
  0x14   :  { %334 = vperm.xlu2 %2572, %v2744_v16   ;;  %v2919_v52 = vld [vmem:[%s4655_s1 + $0xb0] sm:$0xff]  ;;  %v48_v57 = vld [vmem:[%s4656_s0 + $0xf8] sm:$0xff]  ;;  %v2966_v61 = vld [vmem:[%s4655_s1 + $0xe8] sm:$0xff] }
  0x15   :  { %329 = vperm.xlu1 %2571, %v2749_v17   ;;  %324 = vperm.xlu0 %2570, %v2754_v18   ;;  %v2948_v58 = vld [vmem:[%s4655_s1 + $0xd0] sm:$0xff]  ;;  %v2971_v62 = vld [vmem:[%s4655_s1 + $0xe0] sm:$0xff]  ;;  %v2976_v63 = vld [vmem:[%s4655_s1 + $0xd8] sm:$0xff] }
  0x16   :  { %2528 = vmatmul.msk.f32.gmra.mxu0 %vm50_vm0, %v19_v19  ;;  %2536 = vmatmul.msk.f32.gmra.mxu1 %vm50_vm0, %v27_v20  ;;  %4742 = vst [vmem:[#allocation4_spill] sm:$0xff] %v2976_v63  ;;  %v2984_v0 = vld [vmem:[%s4655_s1 + $0xf8] sm:$0xff]  ;;  %v2989_v1 = vld [vmem:[%s4655_s1 + $0xf0] sm:$0xff] }
  0x17   :  { %2544 = vmatmul.msk.f32.gmra.mxu2 %vm50_vm0, %v35_v21  ;;  %4743 = vst [vmem:[#allocation5_spill] sm:$0xff] %v2989_v1 }
  0x18   :  { %2552 = vmatmul.msk.f32.gmra.mxu3 %vm50_vm0, %v43_v22 }
  0x1c   :  { %349 = vperm.xlu2 %2572, %v2778_v23  }
  0x1d   :  { %344 = vperm.xlu1 %2571, %v2783_v24   ;;  %339 = vperm.xlu0 %2570, %v2788_v25  }
  0x1e   :  { %2529 = vmatmul.msk.f32.gmra.mxu0 %vm50_vm0, %v20_v26  ;;  %2537 = vmatmul.msk.f32.gmra.mxu1 %vm50_vm0, %v28_v27 }
  0x1f   :  { %2545 = vmatmul.msk.f32.gmra.mxu2 %vm50_vm0, %v36_v28 }
  0x20   :  { %2553 = vmatmul.msk.f32.gmra.mxu3 %vm50_vm0, %v44_v29 }
  0x24   :  { %364 = vperm.xlu2 %2572, %v2812_v30  }
  0x25   :  { %359 = vperm.xlu1 %2571, %v2817_v31   ;;  %354 = vperm.xlu0 %2570, %v2822_v32  }
  0x26   :  { %2530 = vmatmul.msk.f32.gmra.mxu0 %vm50_vm0, %v21_v33  ;;  %2538 = vmatmul.msk.f32.gmra.mxu1 %vm50_vm0, %v29_v34 }
  0x27   :  { %2546 = vmatmul.msk.f32.gmra.mxu2 %vm50_vm0, %v37_v35 }
  0x28   :  { %2554 = vmatmul.msk.f32.gmra.mxu3 %vm50_vm0, %v45_v36 }
  0x2c   :  { %379 = vperm.xlu2 %2572, %v2846_v37  }
  0x2d   :  { %374 = vperm.xlu1 %2571, %v2851_v38   ;;  %369 = vperm.xlu0 %2570, %v2856_v39  }
  0x2e   :  { %2531 = vmatmul.msk.f32.gmra.mxu0 %vm50_vm0, %v22_v40  ;;  %2539 = vmatmul.msk.f32.gmra.mxu1 %vm50_vm0, %v30_v41 }
  0x2f   :  { %2547 = vmatmul.msk.f32.gmra.mxu2 %vm50_vm0, %v38_v42 }
  0x30   :  { %2555 = vmatmul.msk.f32.gmra.mxu3 %vm50_vm0, %v46_v43 }
  0x34   :  { %394 = vperm.xlu2 %2572, %v2880_v44  }
  0x35   :  { %389 = vperm.xlu1 %2571, %v2885_v45   ;;  %384 = vperm.xlu0 %2570, %v2890_v46  }
  0x36   :  { %2532 = vmatmul.msk.f32.gmra.mxu0 %vm50_vm0, %v23_v47  ;;  %2540 = vmatmul.msk.f32.gmra.mxu1 %vm50_vm0, %v31_v48  ;;  %v2638_v48 = vmov 2  }
  0x37   :  { %2548 = vmatmul.msk.f32.gmra.mxu2 %vm50_vm0, %v39_v49 }
  0x38   :  { %2556 = vmatmul.msk.f32.gmra.mxu3 %vm50_vm0, %v47_v50 }
  0x3c   :  { %409 = vperm.xlu2 %2572, %v2914_v51  }
  0x3d   :  { %404 = vperm.xlu1 %2571, %v2919_v52   ;;  %399 = vperm.xlu0 %2570, %v2924_v53  }
  0x3e   :  { %2533 = vmatmul.msk.f32.gmra.mxu0 %vm50_vm0, %v24_v54  ;;  %2541 = vmatmul.msk.f32.gmra.mxu1 %vm50_vm0, %v32_v55 }
  0x3f   :  { %2549 = vmatmul.msk.f32.gmra.mxu2 %vm50_vm0, %v40_v56 }
  0x40   :  { %2557 = vmatmul.msk.f32.gmra.mxu3 %vm50_vm0, %v48_v57 }
  0x44   :  { %424 = vperm.xlu2 %2572, %v2948_v58  }
  0x45   :  { %419 = vperm.xlu1 %2571, %v2953_v59   ;;  %414 = vperm.xlu0 %2570, %v2958_v60  }
  0x4c   :  { %439 = vperm.xlu2 %2572, %v2966_v61  }
  0x4d   :  { %434 = vperm.xlu1 %2571, %v2971_v62   ;;  %429 = vperm.xlu0 %2570, %v2976_v63  }
  0x54   :  { %2573 = vset.pattern.permute.xlu2 %v2637_v5 }
  0x55   :  { %449 = vperm.xlu1 %2571, %v2984_v0   ;;  %444 = vperm.xlu0 %2570, %v2989_v1  }
  0x56   :  { %549 = vperm.xlu2 %2573, %v2686_v4  }
  0x5d   :  { %2575 = vset.pattern.permute.xlu1 %v2637_v5  ;;  %2574 = vset.pattern.permute.xlu0 %v2637_v5 }
  0x5e   :  { %557 = vperm.xlu1 %2575, %v2681_v3   ;;  %561 = vperm.xlu2 %2573, %v2715_v10   ;;  %v2996_v6 = vpop.permute.xlu2 %314 }
  0x5f   :  { %553 = vperm.xlu0 %2574, %v2720_v11  }
  0x66   :  { %565 = vperm.xlu1 %2575, %v2676_v2   ;;  %569 = vperm.xlu2 %2573, %v2710_v9   ;;  %v3001_v7 = vpop.permute.xlu2 %319 }
  0x67   :  { %4744 = vst [vmem:[#allocation6_spill] sm:$0xff] %v3001_v7  ;;  %573 = vperm.xlu0 %2574, %v2754_v18  }
  0x6e   :  { %577 = vperm.xlu1 %2575, %v2749_v17   ;;  %581 = vperm.xlu2 %2573, %v2744_v16   ;;  %v3006_v8 = vpop.permute.xlu2 %334 }
  0x6f   :  { %585 = vperm.xlu0 %2574, %v2788_v25  }
  0x76   :  { %589 = vperm.xlu1 %2575, %v2783_v24   ;;  %593 = vperm.xlu2 %2573, %v2778_v23   ;;  %v3011_v12 = vpop.permute.xlu2 %349 }
  0x77   :  { %597 = vperm.xlu0 %2574, %v2822_v32   ;;  %v3014_v13 = vpop.permute.xlu1 %304  ;;  %v3016_v14 = vpop.permute.xlu0 %294 }
  0x7e   :  { %601 = vperm.xlu1 %2575, %v2817_v31   ;;  %605 = vperm.xlu2 %2573, %v2812_v30   ;;  %v3020_v15 = vpop.permute.xlu2 %364 }
  0x7f   :  { %4745 = vst [vmem:[#allocation7_spill] sm:$0xff] %v3020_v15  ;;  %609 = vperm.xlu0 %2574, %v2856_v39   ;;  %v3023_v19 = vpop.permute.xlu1 %309  ;;  %v3025_v20 = vpop.permute.xlu0 %299 }
  0x86   :  { %613 = vperm.xlu1 %2575, %v2851_v38   ;;  %617 = vperm.xlu2 %2573, %v2846_v37   ;;  %v3029_v21 = vpop.permute.xlu2 %379 }
  0x87   :  { %621 = vperm.xlu0 %2574, %v2890_v46   ;;  %v3032_v22 = vpop.permute.xlu1 %329  ;;  %v3034_v26 = vpop.permute.xlu0 %324 }
  0x88   :  { %4746 = vst [vmem:[#allocation8_spill] sm:$0xff] %v3032_v22 }
  0x8e   :  { %625 = vperm.xlu1 %2575, %v2885_v45   ;;  %629 = vperm.xlu2 %2573, %v2880_v44   ;;  %v3038_v27 = vpop.permute.xlu2 %394 }
  0x8f   :  { %4747 = vst [vmem:[#allocation9_spill] sm:$0xff] %v3038_v27  ;;  %633 = vperm.xlu0 %2574, %v2924_v53   ;;  %v3041_v28 = vpop.permute.xlu1 %344  ;;  %v3043_v29 = vpop.permute.xlu0 %339 }
  0x90   :  { %4748 = vst [vmem:[#allocation10_spill] sm:$0xff] %v3041_v28 }
  0x96   :  { %637 = vperm.xlu1 %2575, %v2919_v52   ;;  %641 = vperm.xlu2 %2573, %v2914_v51   ;;  %v3047_v33 = vpop.permute.xlu2 %409 }
  0x97   :  { %4749 = vst [vmem:[#allocation11_spill] sm:$0xff] %v3047_v33  ;;  %645 = vperm.xlu0 %2574, %v2958_v60   ;;  %v3050_v34 = vpop.permute.xlu1 %359  ;;  %v3052_v35 = vpop.permute.xlu0 %354 }
  0x98   :  { %4750 = vst [vmem:[#allocation12_spill] sm:$0xff] %v3050_v34 }
  0x9e   :  { %649 = vperm.xlu1 %2575, %v2953_v59   ;;  %653 = vperm.xlu2 %2573, %v2948_v58   ;;  %v3056_v36 = vpop.permute.xlu2 %424 }
  0x9f   :  { %657 = vperm.xlu0 %2574, %v2976_v63   ;;  %v3059_v40 = vpop.permute.xlu1 %374  ;;  %v3061_v41 = vpop.permute.xlu0 %369 }
  0xa0   :  { %4751 = vst [vmem:[#allocation13_spill] sm:$0xff] %v3059_v40 }
  0xa6   :  { %661 = vperm.xlu1 %2575, %v2971_v62   ;;  %665 = vperm.xlu2 %2573, %v2966_v61   ;;  %v3065_v42 = vpop.permute.xlu2 %439 }
  0xa7   :  { %4752 = vst [vmem:[#allocation14_spill] sm:$0xff] %v3065_v42  ;;  %669 = vperm.xlu0 %2574, %v2989_v1   ;;  %v3068_v43 = vpop.permute.xlu1 %389  ;;  %v3070_v47 = vpop.permute.xlu0 %384 }
  0xa8   :  { %4753 = vst [vmem:[#allocation15_spill] sm:$0xff] %v3068_v43 }
  0xa9   :  { %4754 = vst [vmem:[#allocation16_spill] sm:$0xff] %v3070_v47 }
  0xae   :  { %673 = vperm.xlu1 %2575, %v2984_v0   ;;  %2576 = vset.pattern.permute.xlu2 %v2638_v48 }
  0xaf   :  { %2577 = vset.pattern.permute.xlu0 %v2638_v48  ;;  %v3073_v49 = vpop.permute.xlu1 %404  ;;  %773 = vperm.xlu2 %2576, %v2686_v4   ;;  %v3076_v50 = vpop.permute.xlu0 %399 }
  0xb0   :  { %4755 = vst [vmem:[#allocation17_spill] sm:$0xff] %v3073_v49  ;;  %777 = vperm.xlu0 %2577, %v2720_v11   ;;  %v3079_v54 = vpop.permute.xlu2 %549 }
  0xb1   :  { %4756 = vst [vmem:[#allocation18_spill] sm:$0xff] %v3076_v50 }
  0xb2   :  { %4757 = vst [vmem:[#allocation19_spill] sm:$0xff] %v3079_v54 }
  0xb6   :  { %2578 = vset.pattern.permute.xlu1 %v2638_v48 }
  0xb7   :  { %781 = vperm.xlu1 %2578, %v2681_v3   ;;  %v3082_v55 = vpop.permute.xlu1 %419  ;;  %785 = vperm.xlu2 %2576, %v2715_v10   ;;  %v3085_v56 = vpop.permute.xlu0 %414 }
  0xb8   :  { %4758 = vst [vmem:[#allocation20_spill] sm:$0xff] %v3082_v55  ;;  %797 = vperm.xlu0 %2577, %v2754_v18   ;;  %v3088_v57 = vpop.permute.xlu2 %561 }
  0xb9   :  { %4759 = vst [vmem:[#allocation21_spill] sm:$0xff] %v3085_v56 }
  0xba   :  { %4760 = vst [vmem:[#allocation22_spill] sm:$0xff] %v3088_v57 }
  0xbf   :  { %789 = vperm.xlu1 %2578, %v2676_v2   ;;  %v3091_v5 = vpop.permute.xlu1 %434  ;;  %793 = vperm.xlu2 %2576, %v2710_v9   ;;  %v3094_v40 = vpop.permute.xlu0 %429 }
  0xc0   :  { %4761 = vst [vmem:[#allocation23_spill] sm:$0xff] %v3091_v5  ;;  %809 = vperm.xlu0 %2577, %v2788_v25   ;;  %v3097_v48 = vpop.permute.xlu2 %569 }
  0xc1   :  { %4762 = vst [vmem:[#allocation24_spill] sm:$0xff] %v3094_v40 }
  0xc2   :  { %4763 = vst [vmem:[#allocation25_spill] sm:$0xff] %v3097_v48 }
  0xc7   :  { %801 = vperm.xlu1 %2578, %v2749_v17   ;;  %v3100_v34 = vpop.permute.xlu1 %449  ;;  %805 = vperm.xlu2 %2576, %v2744_v16   ;;  %v3103_v28 = vpop.permute.xlu0 %444 }
  0xc8   :  { %4764 = vst [vmem:[#allocation26_spill] sm:$0xff] %v3100_v34  ;;  %821 = vperm.xlu0 %2577, %v2822_v32   ;;  %v3106_v22 = vpop.permute.xlu2 %581 }
  0xc9   :  { %4765 = vst [vmem:[#allocation27_spill] sm:$0xff] %v3103_v28 }
  0xca   :  { %4766 = vst [vmem:[#allocation28_spill] sm:$0xff] %v3106_v22 }
  0xcf   :  { %813 = vperm.xlu1 %2578, %v2783_v24   ;;  %817 = vperm.xlu2 %2576, %v2778_v23  }
  0xd0   :  { %833 = vperm.xlu0 %2577, %v2856_v39   ;;  %v3111_v15 = vpop.permute.xlu1 %557  ;;  %v3113_v5 = vpop.permute.xlu2 %593 }
  0xd1   :  { %4767 = vst [vmem:[#allocation29_spill] sm:$0xff] %v3111_v15  ;;  %v3115_v48 = vpop.permute.xlu0 %553 }
  0xd2   :  { %4768 = vst [vmem:[#allocation30_spill] sm:$0xff] %v3113_v5 }
  0xd3   :  { %4769 = vst [vmem:[#allocation31_spill] sm:$0xff] %v3115_v48 }
  0xd7   :  { %825 = vperm.xlu1 %2578, %v2817_v31   ;;  %829 = vperm.xlu2 %2576, %v2812_v30  }
  0xd8   :  { %845 = vperm.xlu0 %2577, %v2890_v46   ;;  %v3120_v34 = vpop.permute.xlu1 %565  ;;  %v3122_v22 = vpop.permute.xlu2 %605 }
  0xd9   :  { %4770 = vst [vmem:[#allocation32_spill] sm:$0xff] %v3120_v34  ;;  %v3124_v57 = vpop.permute.xlu0 %573 }
  0xda   :  { %4771 = vst [vmem:[#allocation33_spill] sm:$0xff] %v3122_v22 }
  0xdf   :  { %837 = vperm.xlu1 %2578, %v2851_v38   ;;  %841 = vperm.xlu2 %2576, %v2846_v37  }
  0xe0   :  { %857 = vperm.xlu0 %2577, %v2924_v53   ;;  %v3129_v5 = vpop.permute.xlu1 %577  ;;  %v3131_v15 = vpop.permute.xlu2 %617 }
  0xe1   :  { %4772 = vst [vmem:[#allocation34_spill] sm:$0xff] %v3129_v5  ;;  %v3133_v28 = vpop.permute.xlu0 %585 }
  0xe2   :  { %4773 = vst [vmem:[#allocation35_spill] sm:$0xff] %v3131_v15 }
  0xe7   :  { %849 = vperm.xlu1 %2578, %v2885_v45   ;;  %853 = vperm.xlu2 %2576, %v2880_v44  }
  0xe8   :  { %869 = vperm.xlu0 %2577, %v2958_v60   ;;  %v3138_v22 = vpop.permute.xlu1 %589  ;;  %v3140_v34 = vpop.permute.xlu2 %629 }
  0xe9   :  { %4774 = vst [vmem:[#allocation36_spill] sm:$0xff] %v3138_v22  ;;  %v3142_v49 = vpop.permute.xlu0 %597 }
  0xea   :  { %4775 = vst [vmem:[#allocation37_spill] sm:$0xff] %v3140_v34 }
  0xef   :  { %861 = vperm.xlu1 %2578, %v2919_v52   ;;  %865 = vperm.xlu2 %2576, %v2914_v51  }
  0xf0   :  { %881 = vperm.xlu0 %2577, %v2976_v63   ;;  %v3147_v5 = vpop.permute.xlu1 %601  ;;  %v3149_v40 = vpop.permute.xlu2 %641 }
  0xf1   :  { %4776 = vst [vmem:[#allocation38_spill] sm:$0xff] %v3147_v5  ;;  %v3151_v48 = vpop.permute.xlu0 %609  ;;  %v2639_v5 = vmov 3  }
  0xf2   :  { %4777 = vst [vmem:[#allocation39_spill] sm:$0xff] %v3149_v40 }
  0xf7   :  { %873 = vperm.xlu1 %2578, %v2953_v59   ;;  %877 = vperm.xlu2 %2576, %v2948_v58  }
  0xf8   :  { %893 = vperm.xlu0 %2577, %v2989_v1   ;;  %v3156_v22 = vpop.permute.xlu1 %613  ;;  %v3158_v56 = vpop.permute.xlu2 %653 }
  0xf9   :  { %4778 = vst [vmem:[#allocation40_spill] sm:$0xff] %v3156_v22  ;;  %v3160_v33 = vpop.permute.xlu0 %621 }
  0xfa   :  { %4779 = vst [vmem:[#allocation41_spill] sm:$0xff] %v3158_v56 }
  0xfb   :  { %4780 = vst [vmem:[#allocation42_spill] sm:$0xff] %v3160_v33 }
  0xff   :  { %885 = vperm.xlu1 %2578, %v2971_v62   ;;  %889 = vperm.xlu2 %2576, %v2966_v61  }
 0x100   :  { %2580 = vset.pattern.permute.xlu0 %v2639_v5  ;;  %v3164_v55 = vpop.permute.xlu1 %625  ;;  %v3166_v40 = vpop.permute.xlu2 %665 }
 0x101   :  { %4781 = vst [vmem:[#allocation43_spill] sm:$0xff] %v3164_v55  ;;  %1001 = vperm.xlu0 %2580, %v2720_v11   ;;  %v3169_v42 = vpop.permute.xlu0 %633 }
 0x102   :  { %4782 = vst [vmem:[#allocation44_spill] sm:$0xff] %v3166_v40 }
 0x103   :  { %4783 = vst [vmem:[#allocation45_spill] sm:$0xff] %v3169_v42 }
 0x107   :  { %897 = vperm.xlu1 %2578, %v2984_v0   ;;  %2579 = vset.pattern.permute.xlu2 %v2639_v5 }
 0x108   :  { %v3172_v22 = vpop.permute.xlu1 %637  ;;  %997 = vperm.xlu2 %2579, %v2686_v4  }
 0x109   :  { %4784 = vst [vmem:[#allocation46_spill] sm:$0xff] %v3172_v22  ;;  %1021 = vperm.xlu0 %2580, %v2754_v18   ;;  %v3176_v56 = vpop.permute.xlu0 %645  ;;  %v3178_v50 = vpop.permute.xlu2 %773 }
 0x10a   :  { %4785 = vst [vmem:[#allocation47_spill] sm:$0xff] %v3176_v56 }
 0x10b   :  { %4786 = vst [vmem:[#allocation48_spill] sm:$0xff] %v3178_v50 }
 0x10f   :  { %2581 = vset.pattern.permute.xlu1 %v2639_v5 }
 0x110   :  { %1005 = vperm.xlu1 %2581, %v2681_v3   ;;  %v3181_v40 = vpop.permute.xlu1 %649  ;;  %1009 = vperm.xlu2 %2579, %v2715_v10  }
 0x111   :  { %4787 = vst [vmem:[#allocation49_spill] sm:$0xff] %v3181_v40  ;;  %1033 = vperm.xlu0 %2580, %v2788_v25   ;;  %v3185_v55 = vpop.permute.xlu0 %657  ;;  %v3187_v22 = vpop.permute.xlu2 %785 }
 0x112   :  { %4788 = vst [vmem:[#allocation50_spill] sm:$0xff] %v3185_v55 }
 0x113   :  { %4789 = vst [vmem:[#allocation51_spill] sm:$0xff] %v3187_v22 }
 0x118   :  { %1013 = vperm.xlu1 %2581, %v2676_v2   ;;  %v3190_v54 = vpop.permute.xlu1 %661  ;;  %1017 = vperm.xlu2 %2579, %v2710_v9  }
 0x119   :  { %4790 = vst [vmem:[#allocation52_spill] sm:$0xff] %v3190_v54  ;;  %1045 = vperm.xlu0 %2580, %v2822_v32   ;;  %v3194_v5 = vpop.permute.xlu0 %669  ;;  %v3196_v50 = vpop.permute.xlu2 %793 }
 0x11a   :  { %4791 = vst [vmem:[#allocation53_spill] sm:$0xff] %v3194_v5 }
 0x11b   :  { %4792 = vst [vmem:[#allocation54_spill] sm:$0xff] %v3196_v50 }
 0x120   :  { %1025 = vperm.xlu1 %2581, %v2749_v17   ;;  %v3199_v40 = vpop.permute.xlu1 %673  ;;  %1029 = vperm.xlu2 %2579, %v2744_v16  }
 0x121   :  { %4793 = vst [vmem:[#allocation55_spill] sm:$0xff] %v3199_v40  ;;  %1057 = vperm.xlu0 %2580, %v2856_v39   ;;  %v3203_v22 = vpop.permute.xlu2 %805 }
 0x122   :  { %4794 = vst [vmem:[#allocation56_spill] sm:$0xff] %v3203_v22  ;;  %v3205_v55 = vpop.permute.xlu0 %777 }
 0x123   :  { %4795 = vst [vmem:[#allocation57_spill] sm:$0xff] %v3205_v55 }
 0x128   :  { %1037 = vperm.xlu1 %2581, %v2783_v24   ;;  %1041 = vperm.xlu2 %2579, %v2778_v23  }
 0x129   :  { %1069 = vperm.xlu0 %2580, %v2890_v46   ;;  %v3210_v54 = vpop.permute.xlu1 %781  ;;  %v3212_v50 = vpop.permute.xlu2 %817 }
 0x12a   :  { %4796 = vst [vmem:[#allocation58_spill] sm:$0xff] %v3210_v54  ;;  %v3214_v5 = vpop.permute.xlu0 %797 }
 0x12b   :  { %4797 = vst [vmem:[#allocation59_spill] sm:$0xff] %v3212_v50 }
 0x130   :  { %1049 = vperm.xlu1 %2581, %v2817_v31   ;;  %1053 = vperm.xlu2 %2579, %v2812_v30  }
 0x131   :  { %1081 = vperm.xlu0 %2580, %v2924_v53   ;;  %v3219_v22 = vpop.permute.xlu1 %789  ;;  %v3221_v40 = vpop.permute.xlu2 %829 }
 0x132   :  { %4798 = vst [vmem:[#allocation60_spill] sm:$0xff] %v3219_v22  ;;  %v3223_v55 = vpop.permute.xlu0 %809 }
 0x133   :  { %4799 = vst [vmem:[#allocation61_spill] sm:$0xff] %v3221_v40 }
 0x138   :  { %1061 = vperm.xlu1 %2581, %v2851_v38   ;;  %1065 = vperm.xlu2 %2579, %v2846_v37  }
 0x139   :  { %1093 = vperm.xlu0 %2580, %v2958_v60   ;;  %v3228_v50 = vpop.permute.xlu1 %801  ;;  %v3230_v54 = vpop.permute.xlu2 %841 }
 0x13a   :  { %4800 = vst [vmem:[#allocation62_spill] sm:$0xff] %v3228_v50  ;;  %v3232_v56 = vpop.permute.xlu0 %821 }
 0x13b   :  { %4801 = vst [vmem:[#allocation63_spill] sm:$0xff] %v3230_v54 }
 0x140   :  { %1073 = vperm.xlu1 %2581, %v2885_v45   ;;  %1077 = vperm.xlu2 %2579, %v2880_v44  }
 0x141   :  { %1105 = vperm.xlu0 %2580, %v2976_v63   ;;  %v3237_v40 = vpop.permute.xlu1 %813  ;;  %v3239_v22 = vpop.permute.xlu2 %853 }
 0x142   :  { %4802 = vst [vmem:[#allocation64_spill] sm:$0xff] %v3237_v40  ;;  %v3241_v42 = vpop.permute.xlu0 %833  ;;  %v2640_v40 = vmov 4  }
 0x143   :  { %4803 = vst [vmem:[#allocation65_spill] sm:$0xff] %v3239_v22 }
 0x148   :  { %1085 = vperm.xlu1 %2581, %v2919_v52   ;;  %1089 = vperm.xlu2 %2579, %v2914_v51  }
 0x149   :  { %1117 = vperm.xlu0 %2580, %v2989_v1   ;;  %v3246_v50 = vpop.permute.xlu1 %825  ;;  %v3248_v34 = vpop.permute.xlu2 %865 }
 0x14a   :  { %4804 = vst [vmem:[#allocation66_spill] sm:$0xff] %v3246_v50  ;;  %v3250_v7 = vpop.permute.xlu0 %845 }
 0x14b   :  { %4805 = vst [vmem:[#allocation67_spill] sm:$0xff] %v3248_v34 }
 0x14c   :  { %4806 = vst [vmem:[#allocation68_spill] sm:$0xff] %v3250_v7 }
 0x150   :  { %1097 = vperm.xlu1 %2581, %v2953_v59   ;;  %1101 = vperm.xlu2 %2579, %v2948_v58  }
 0x151   :  { %2583 = vset.pattern.permute.xlu0 %v2640_v40  ;;  %v3254_v22 = vpop.permute.xlu1 %837  ;;  %v3256_v27 = vpop.permute.xlu2 %877 }
 0x152   :  { %4807 = vst [vmem:[#allocation69_spill] sm:$0xff] %v3254_v22  ;;  %1225 = vperm.xlu0 %2583, %v2720_v11   ;;  %v3259_v54 = vpop.permute.xlu0 %857 }
 0x153   :  { %4808 = vst [vmem:[#allocation70_spill] sm:$0xff] %v3256_v27 }
 0x154   :  { %4809 = vst [vmem:[#allocation71_spill] sm:$0xff] %v3259_v54 }
 0x158   :  { %1109 = vperm.xlu1 %2581, %v2971_v62   ;;  %1113 = vperm.xlu2 %2579, %v2966_v61  }
 0x159   :  { %v3263_v50 = vpop.permute.xlu1 %849  ;;  %v3265_v34 = vpop.permute.xlu2 %889 }
 0x15a   :  { %4810 = vst [vmem:[#allocation72_spill] sm:$0xff] %v3263_v50  ;;  %1245 = vperm.xlu0 %2583, %v2754_v18   ;;  %v3268_v7 = vpop.permute.xlu0 %869 }
 0x15b   :  { %4811 = vst [vmem:[#allocation73_spill] sm:$0xff] %v3265_v34 }
 0x15c   :  { %4812 = vst [vmem:[#allocation74_spill] sm:$0xff] %v3268_v7 }
 0x160   :  { %1121 = vperm.xlu1 %2581, %v2984_v0   ;;  %2582 = vset.pattern.permute.xlu2 %v2640_v40 }
 0x161   :  { %v3271_v22 = vpop.permute.xlu1 %861  ;;  %1221 = vperm.xlu2 %2582, %v2686_v4  }
 0x162   :  { %4813 = vst [vmem:[#allocation75_spill] sm:$0xff] %v3271_v22  ;;  %1257 = vperm.xlu0 %2583, %v2788_v25   ;;  %v3275_v27 = vpop.permute.xlu0 %881  ;;  %v3277_v54 = vpop.permute.xlu2 %997 }
 0x163   :  { %4814 = vst [vmem:[#allocation76_spill] sm:$0xff] %v3275_v27 }
 0x164   :  { %4815 = vst [vmem:[#allocation77_spill] sm:$0xff] %v3277_v54 }
 0x168   :  { %2584 = vset.pattern.permute.xlu1 %v2640_v40 }
 0x169   :  { %1229 = vperm.xlu1 %2584, %v2681_v3   ;;  %v3280_v34 = vpop.permute.xlu1 %873  ;;  %1233 = vperm.xlu2 %2582, %v2715_v10  }
 0x16a   :  { %4816 = vst [vmem:[#allocation78_spill] sm:$0xff] %v3280_v34  ;;  %1269 = vperm.xlu0 %2583, %v2822_v32   ;;  %v3284_v50 = vpop.permute.xlu0 %893  ;;  %v3286_v22 = vpop.permute.xlu2 %1009 }
 0x16b   :  { %4817 = vst [vmem:[#allocation79_spill] sm:$0xff] %v3284_v50 }
 0x16c   :  { %4818 = vst [vmem:[#allocation80_spill] sm:$0xff] %v3286_v22 }
 0x171   :  { %1237 = vperm.xlu1 %2584, %v2676_v2   ;;  %v3289_v7 = vpop.permute.xlu1 %885  ;;  %1241 = vperm.xlu2 %2582, %v2710_v9  }
 0x172   :  { %4819 = vst [vmem:[#allocation81_spill] sm:$0xff] %v3289_v7  ;;  %1281 = vperm.xlu0 %2583, %v2856_v39   ;;  %v3293_v40 = vpop.permute.xlu2 %1017 }
 0x173   :  { %4820 = vst [vmem:[#allocation82_spill] sm:$0xff] %v3293_v40  ;;  %v3295_v54 = vpop.permute.xlu0 %1001 }
 0x174   :  { %4821 = vst [vmem:[#allocation83_spill] sm:$0xff] %v3295_v54  ;;  %v3313_v54 = vpop.f32.mrf.mxu0 }
 0x175   :  { %4826 = vst [vmem:[#allocation88_spill] sm:$0xff] %v3313_v54 }
 0x179   :  { %1249 = vperm.xlu1 %2584, %v2749_v17   ;;  %v3298_v34 = vpop.permute.xlu1 %897  ;;  %1253 = vperm.xlu2 %2582, %v2744_v16  }
 0x17a   :  { %4822 = vst [vmem:[#allocation84_spill] sm:$0xff] %v3298_v34  ;;  %1293 = vperm.xlu0 %2583, %v2890_v46   ;;  %v3302_v22 = vpop.permute.xlu2 %1029 }
 0x17b   :  { %4823 = vst [vmem:[#allocation85_spill] sm:$0xff] %v3302_v22  ;;  %v3304_v50 = vpop.permute.xlu0 %1021 }
 0x17c   :  { %v3326_v15 = vpop.f32.mrf.mxu0 }
 0x181   :  { %1261 = vperm.xlu1 %2584, %v2783_v24   ;;  %1265 = vperm.xlu2 %2582, %v2778_v23  }
 0x182   :  { %1305 = vperm.xlu0 %2583, %v2924_v53   ;;  %v3309_v40 = vpop.permute.xlu1 %1005  ;;  %v3311_v7 = vpop.permute.xlu2 %1041 }
 0x183   :  { %4824 = vst [vmem:[#allocation86_spill] sm:$0xff] %v3309_v40  ;;  %v3315_v34 = vpop.permute.xlu0 %1033  ;;  %v3328_v40 = vpop.f32.mrf.mxu1 }
 0x184   :  { %4825 = vst [vmem:[#allocation87_spill] sm:$0xff] %v3311_v7 }
 0x185   :  { %4829 = vst [vmem:[#allocation91_spill] sm:$0xff] %v3328_v40 }
 0x189   :  { %1273 = vperm.xlu1 %2584, %v2817_v31   ;;  %1277 = vperm.xlu2 %2582, %v2812_v30  }
 0x18a   :  { %1317 = vperm.xlu0 %2583, %v2958_v60   ;;  %v3320_v22 = vpop.permute.xlu1 %1013  ;;  %v3322_v27 = vpop.permute.xlu2 %1053 }
 0x18b   :  { %4827 = vst [vmem:[#allocation89_spill] sm:$0xff] %v3320_v22  ;;  %v3324_v33 = vpop.permute.xlu0 %1045  ;;  %v3339_v22 = vpop.f32.mrf.mxu0 }
 0x18c   :  { %4828 = vst [vmem:[#allocation90_spill] sm:$0xff] %v3322_v27 }
 0x18d   :  { %4832 = vst [vmem:[#allocation94_spill] sm:$0xff] %v3339_v22 }
 0x191   :  { %1285 = vperm.xlu1 %2584, %v2851_v38   ;;  %1289 = vperm.xlu2 %2582, %v2846_v37  }
 0x192   :  { %1329 = vperm.xlu0 %2583, %v2976_v63   ;;  %v3333_v7 = vpop.permute.xlu1 %1025  ;;  %v3335_v47 = vpop.permute.xlu2 %1065 }
 0x193   :  { %4830 = vst [vmem:[#allocation92_spill] sm:$0xff] %v3333_v7  ;;  %v3337_v43 = vpop.permute.xlu0 %1057  ;;  %v3350_v63 = vpop.f32.mrf.mxu1 }
 0x194   :  { %4831 = vst [vmem:[#allocation93_spill] sm:$0xff] %v3335_v47  ;;  %v3352_v7 = vpop.f32.mrf.mxu0  ;;  %v2641_v47 = vmov 5  }
 0x195   :  { %4836 = vst [vmem:[#allocation98_spill] sm:$0xff] %v3352_v7 }
 0x199   :  { %1297 = vperm.xlu1 %2584, %v2885_v45   ;;  %1301 = vperm.xlu2 %2582, %v2880_v44  }
 0x19a   :  { %1341 = vperm.xlu0 %2583, %v2989_v1   ;;  %v3344_v27 = vpop.permute.xlu1 %1037  ;;  %v3346_v38 = vpop.permute.xlu2 %1077 }
 0x19b   :  { %4833 = vst [vmem:[#allocation95_spill] sm:$0xff] %v3344_v27  ;;  %v3348_v37 = vpop.permute.xlu0 %1069  ;;  %v3365_v1 = vpop.f32.mrf.mxu2 }
 0x19c   :  { %4834 = vst [vmem:[#allocation96_spill] sm:$0xff] %v3346_v38  ;;  %v3363_v38 = vpop.f32.mrf.mxu1 }
 0x19d   :  { %4835 = vst [vmem:[#allocation97_spill] sm:$0xff] %v3348_v37 }
 0x19e   :  { %4840 = vst [vmem:[#allocation102_spill] sm:$0xff] %v3363_v38 }
 0x19f   :  { %4841 = vst [vmem:[#allocation103_spill] sm:$0xff] %v3365_v1  ;;  %v3393_v1 = vpop.f32.mrf.mxu3 }
 0x1a0   :  { %4852 = vst [vmem:[#allocation114_spill] sm:$0xff] %v3393_v1 }
 0x1a1   :  { %1309 = vperm.xlu1 %2584, %v2919_v52   ;;  %1313 = vperm.xlu2 %2582, %v2914_v51  }
 0x1a2   :  { %2586 = vset.pattern.permute.xlu0 %v2641_v47  ;;  %v3356_v45 = vpop.permute.xlu1 %1049  ;;  %v3358_v44 = vpop.permute.xlu2 %1089 }
 0x1a3   :  { %4837 = vst [vmem:[#allocation99_spill] sm:$0xff] %v3356_v45  ;;  %1449 = vperm.xlu0 %2586, %v2720_v11   ;;  %v3361_v27 = vpop.permute.xlu0 %1081 }
 0x1a4   :  { %4838 = vst [vmem:[#allocation100_spill] sm:$0xff] %v3358_v44  ;;  %v3376_v44 = vpop.f32.mrf.mxu0  ;;  %v3378_v11 = vpop.f32.mrf.mxu1 }
 0x1a5   :  { %4839 = vst [vmem:[#allocation101_spill] sm:$0xff] %v3361_v27  ;;  %v3380_v27 = vpop.f32.mrf.mxu2 }
 0x1a6   :  { %4845 = vst [vmem:[#allocation107_spill] sm:$0xff] %v3376_v44 }
 0x1a7   :  { %4846 = vst [vmem:[#allocation108_spill] sm:$0xff] %v3378_v11 }
 0x1a8   :  { %4847 = vst [vmem:[#allocation109_spill] sm:$0xff] %v3380_v27 }
 0x1a9   :  { %1321 = vperm.xlu1 %2584, %v2953_v59   ;;  %1325 = vperm.xlu2 %2582, %v2948_v58  }
 0x1aa   :  { %v3369_v52 = vpop.permute.xlu1 %1061  ;;  %v3371_v51 = vpop.permute.xlu2 %1101 }
 0x1ab   :  { %4842 = vst [vmem:[#allocation104_spill] sm:$0xff] %v3369_v52  ;;  %1469 = vperm.xlu0 %2586, %v2754_v18   ;;  %v3374_v45 = vpop.permute.xlu0 %1093 }
 0x1ac   :  { %4843 = vst [vmem:[#allocation105_spill] sm:$0xff] %v3371_v51  ;;  %v3391_v18 = vpop.f32.mrf.mxu0  ;;  %v3396_v38 = vpop.f32.mrf.mxu1 }
 0x1ad   :  { %4844 = vst [vmem:[#allocation106_spill] sm:$0xff] %v3374_v45 }
 0x1ae   :  { %4851 = vst [vmem:[#allocation113_spill] sm:$0xff] %v3391_v18  ;;  %v685_v18 = vperm.slane %v3350_v63, 1 }
 0x1b1   :  { %1333 = vperm.xlu1 %2584, %v2971_v62   ;;  %1337 = vperm.xlu2 %2582, %v2966_v61  }
 0x1b2   :  { %v3384_v59 = vpop.permute.xlu1 %1073  ;;  %v3386_v58 = vpop.permute.xlu2 %1113 }
 0x1b3   :  { %4848 = vst [vmem:[#allocation110_spill] sm:$0xff] %v3384_v59  ;;  %1481 = vperm.xlu0 %2586, %v2788_v25   ;;  %v3389_v52 = vpop.permute.xlu0 %1105 }
 0x1b4   :  { %4849 = vst [vmem:[#allocation111_spill] sm:$0xff] %v3386_v58  ;;  %v3406_v58 = vpop.f32.mrf.mxu2  ;;  %v3408_v59 = vpop.f32.mrf.mxu0 }
 0x1b5   :  { %4850 = vst [vmem:[#allocation112_spill] sm:$0xff] %v3389_v52  ;;  %v682_v52 = vperm.slane %v3408_v59, 1 }
 0x1b6   :  { %4856 = vst [vmem:[#allocation118_spill] sm:$0xff] %v3406_v58 }
 0x1b7   :  { %4857 = vst [vmem:[#allocation119_spill] sm:$0xff] %v3408_v59 }
 0x1b9   :  { %1345 = vperm.xlu1 %2584, %v2984_v0   ;;  %2585 = vset.pattern.permute.xlu2 %v2641_v47  ;;  %v3411_v0 = vpop.f32.mrf.mxu3 }
 0x1ba   :  { %v3398_v62 = vpop.permute.xlu1 %1085  ;;  %1445 = vperm.xlu2 %2585, %v2686_v4   ;;  %4858 = vst [vmem:[#allocation120_spill] sm:$0xff] %v3411_v0  ;;  %v458_v4 = vperm.slane %v3408_v59, 0 }
 0x1bb   :  { %4853 = vst [vmem:[#allocation115_spill] sm:$0xff] %v3398_v62  ;;  %1493 = vperm.xlu0 %2586, %v2822_v32   ;;  %v3402_v61 = vpop.permute.xlu0 %1117  ;;  %v3404_v25 = vpop.permute.xlu2 %1221  ;;  %v906_v32 = vperm.slane %v3408_v59, 2 }
 0x1bc   :  { %4854 = vst [vmem:[#allocation116_spill] sm:$0xff] %v3402_v61  ;;  %v3422_v61 = vpop.f32.mrf.mxu1  ;;  %v3428_v45 = vpop.f32.mrf.mxu2 }
 0x1bd   :  { %4855 = vst [vmem:[#allocation117_spill] sm:$0xff] %v3404_v25 }
 0x1be   :  { %4861 = vst [vmem:[#allocation123_spill] sm:$0xff] %v3422_v61 }
 0x1c1   :  { %2587 = vset.pattern.permute.xlu1 %v2641_v47  ;;  %v714_v47 = vmul.f32 %v682_v52, %v3124_v57  ;;  %v461_v57 = vperm.slane %v3350_v63, 0 }
 0x1c2   :  { %1453 = vperm.xlu1 %2587, %v2681_v3   ;;  %v3414_v62 = vpop.permute.xlu1 %1097  ;;  %1457 = vperm.xlu2 %2585, %v2715_v10   ;;  %v1130_v3 = vperm.slane %v3408_v59, 3  ;;  %v490_v10 = vmul.f32 %v458_v4, %v3034_v26  ;;  %v909_v26 = vperm.slane %v3350_v63, 2  ;;  %v3444_v4 = vpop.f32.mrf.mxu3 }
 0x1c3   :  { %4859 = vst [vmem:[#allocation121_spill] sm:$0xff] %v3414_v62  ;;  %1505 = vperm.xlu0 %2586, %v2856_v39   ;;  %v3420_v25 = vpop.permute.xlu2 %1233  ;;  %v938_v62 = vmul.f32 %v906_v32, %v3214_v5  ;;  %v717_v32 = vmul.f32 %v685_v18, %v3133_v28  ;;  %v1357_v28 = vperm.slane %v3350_v63, 4 }
 0x1c4   :  { %4860 = vst [vmem:[#allocation122_spill] sm:$0xff] %v3420_v25  ;;  %v3424_v51 = vpop.permute.xlu0 %1225  ;;  %v746_v37 = vadd.f32 %v714_v47, %v490_v10  ;;  %v1162_v39 = vmul.f32 %v1130_v3, %v3304_v50  ;;  %v1354_v25 = vperm.slane %v3408_v59, 4  ;;  %v3448_v10 = vpop.f32.mrf.mxu1 }
 0x1c5   :  { %4864 = vst [vmem:[#allocation126_spill] sm:$0xff] %v3444_v4 }
 0x1c6   :  { %v970_v52 = vadd.f32 %v938_v62, %v746_v37  ;;  %4865 = vst [vmem:[#allocation127_spill] sm:$0xff] %v3448_v10  ;;  %v941_v37 = vmul.f32 %v909_v26, %v3223_v55  ;;  %v1136_v26 = vperm.slane %v3396_v38, 3 }
 0x1c8   :  { %v1194_v47 = vadd.f32 %v1162_v39, %v970_v52 }
 0x1ca   :  { %1461 = vperm.xlu1 %2587, %v2676_v2   ;;  %v3436_v61 = vpop.permute.xlu1 %1109  ;;  %1465 = vperm.xlu2 %2585, %v2710_v9   ;;  %v1133_v2 = vperm.slane %v3350_v63, 3  ;;  %v493_v9 = vmul.f32 %v461_v57, %v3043_v29  ;;  %v464_v29 = vperm.slane %v3396_v38, 0 }
 0x1cb   :  { %4862 = vst [vmem:[#allocation124_spill] sm:$0xff] %v3436_v61  ;;  %1517 = vperm.xlu0 %2586, %v2890_v46   ;;  %v3442_v5 = vpop.permute.xlu2 %1241  ;;  %v3454_v46 = vpop.f32.mrf.mxu2  ;;  %v688_v61 = vperm.slane %v3396_v38, 1 }
 0x1cc   :  { %4863 = vst [vmem:[#allocation125_spill] sm:$0xff] %v3442_v5  ;;  %v1246_v50 = vpop.permute.xlu0 %1245  ;;  %v749_v5 = vadd.f32 %v717_v32, %v493_v9  ;;  %v1165_v59 = vmul.f32 %v1133_v2, %v3315_v34  ;;  %v460_v32 = vperm.slane %v3328_v40, 0 }
 0x1cd   :  { %v1386_v3 = vmul.f32 %v1354_v25, %v1246_v50  ;;  %4866 = vst [vmem:[#allocation128_spill] sm:$0xff] %v3454_v46  ;;  %v912_v25 = vperm.slane %v3396_v38, 2  ;;  %v720_v34 = vmul.f32 %v688_v61, %v3142_v49  ;;  %v3470_v50 = vpop.f32.mrf.mxu3  ;;  %v454_v49 = vperm.slane %v3339_v22, 0 }
 0x1ce   :  { %v973_v55 = vadd.f32 %v941_v37, %v749_v5  ;;  %4867 = vst [vmem:[#allocation129_spill] sm:$0xff] %v3470_v50  ;;  %v453_v5 = vperm.slane %v3326_v15, 0  ;;  %v1168_v37 = vmul.f32 %v1136_v26, %v3324_v33 }
 0x1cf   :  { %v3452_v62 = vadd.f32 %v1386_v3, %v1194_v47  ;;  %v496_v47 = vmul.f32 %v464_v29, %v3052_v35  ;;  %v3479_v3 = vpop.f32.mrf.mxu1  ;;  %v3493_v29 = vmul.f32 %v460_v32, %v3006_v8 }
 0x1d0   :  { %v1197_v52 = vadd.f32 %v1165_v59, %v973_v55  ;;  %4868 = vst [vmem:[#allocation130_spill] sm:$0xff] %v3479_v3  ;;  %v469_v59 = vperm.slane %v3380_v27, 0  ;;  %v691_v9 = vperm.slane %v3479_v3, 1  ;;  %v467_v33 = vperm.slane %v3479_v3, 0 }
 0x1d1   :  { %v752_v61 = vadd.f32 %v720_v34, %v496_v47  ;;  %v1139_v32 = vperm.slane %v3479_v3, 3  ;;  %v470_v47 = vperm.slane %v3406_v58, 0 }
 0x1d2   :  { %1473 = vperm.xlu1 %2587, %v2749_v17   ;;  %v3460_v18 = vpop.permute.xlu1 %1121  ;;  %1477 = vperm.xlu2 %2585, %v2744_v16   ;;  %v452_v16 = vperm.slane %v3313_v54, 0 }
 0x1d3   :  { %1529 = vperm.xlu0 %2586, %v2924_v53   ;;  %v3466_v39 = vpop.permute.xlu2 %1253  ;;  %v944_v53 = vmul.f32 %v912_v25, %v3232_v56  ;;  %v3490_v56 = vpop.f32.mrf.mxu2  ;;  %v3498_v25 = vmul.f32 %v453_v5, %v3025_v20  ;;  %v501_v20 = vmul.f32 %v469_v59, %v3029_v21  ;;  %v478_v5 = vperm.slane %v3444_v4, 0 }
 0x1d4   :  { %v1258_v57 = vpop.permute.xlu0 %1257  ;;  %v3487_v55 = vmul.f32 %v452_v16, %v3016_v14  ;;  %4869 = vst [vmem:[#allocation131_spill] sm:$0xff] %v3490_v56  ;;  %v915_v14 = vperm.slane %v3479_v3, 2 }
 0x1d5   :  { %v1389_v17 = vmul.f32 %v1357_v28, %v1258_v57  ;;  %v1360_v28 = vperm.slane %v3396_v38, 4  ;;  %v976_v57 = vadd.f32 %v944_v53, %v752_v61  ;;  %v463_v61 = vperm.slane %v3378_v11, 0 }
 0x1d6   :  { %v947_v21 = vmul.f32 %v915_v14, %v3241_v42  ;;  %v694_v53 = vperm.slane %v3406_v58, 1  ;;  %v1363_v42 = vperm.slane %v3479_v3, 4  ;;  %v4887_v3 = vld [vmem:[#allocation68_spill] sm:$0xff] }
 0x1d7   :  { %v3477_v2 = vadd.f32 %v1389_v17, %v1197_v52  ;;  %v723_v17 = vmul.f32 %v691_v9, %v3151_v48  ;;  %v1200_v16 = vadd.f32 %v1168_v37, %v976_v57  ;;  %v471_v48 = vperm.slane %v3428_v45, 0  ;;  %v3525_v9 = vpop.f32.mrf.mxu3 }
 0x1d8   :  { %v693_v57 = vperm.slane %v3380_v27, 1 }
 0x1da   :  { %1485 = vperm.xlu1 %2587, %v2783_v24   ;;  %1489 = vperm.xlu2 %2585, %v2778_v23   ;;  %v455_v24 = vperm.slane %v3352_v7, 0  ;;  %v3510_v23 = vmul.f32 %v454_v49, %v3014_v13  ;;  %v456_v13 = vperm.slane %v3376_v44, 0  ;;  %v499_v49 = vmul.f32 %v467_v33, %v3061_v41 }
 0x1db   :  { %1541 = vperm.xlu0 %2586, %v2958_v60   ;;  %v3503_v34 = vpop.permute.xlu1 %1229  ;;  %v3505_v52 = vpop.permute.xlu2 %1265  ;;  %v1171_v41 = vmul.f32 %v1139_v32, %v3337_v43  ;;  %v3536_v33 = vmul.f32 %v478_v5, %v3056_v36  ;;  %v472_v43 = vperm.slane %v3454_v46, 0  ;;  %v918_v36 = vperm.slane %v3406_v58, 2  ;;  %v4876_v32 = vld [vmem:[#allocation4_spill] sm:$0xff]  ;;  %v4879_v5 = vld [vmem:[#allocation15_spill] sm:$0xff] }
 0x1dc   :  { %4870 = vst [vmem:[#allocation132_spill] sm:$0xff] %v3503_v34  ;;  %v1270_v26 = vpop.permute.xlu0 %1269  ;;  %v3528_v37 = vmul.f32 %v455_v24, %v3023_v19  ;;  %v917_v19 = vperm.slane %v3380_v27, 2  ;;  %v3546_v24 = vmul.f32 %v456_v13, %v2996_v6  ;;  %v4882_v6 = vld [vmem:[#allocation35_spill] sm:$0xff] }
 0x1dd   :  { %4871 = vst [vmem:[#allocation133_spill] sm:$0xff] %v3505_v52  ;;  %v1392_v60 = vmul.f32 %v1360_v28, %v1270_v26  ;;  %v755_v26 = vadd.f32 %v723_v17, %v499_v49  ;;  %v725_v13 = vmul.f32 %v693_v57, %v4882_v6  ;;  %v1141_v28 = vperm.slane %v3380_v27, 3  ;;  %v4886_v57 = vld [vmem:[#allocation9_spill] sm:$0xff] }
 0x1de   :  { %4872 = vst [vmem:[#allocation134_spill] sm:$0xff] %v3510_v23  ;;  %v504_v6 = vmul.f32 %v472_v43, %v4886_v57  ;;  %v950_v52 = vmul.f32 %v918_v36, %v4887_v3  ;;  %v4891_v43 = vld [vmem:[#allocation6_spill] sm:$0xff]  ;;  %v4907_v23 = vld [vmem:[#allocation101_spill] sm:$0xff] }
 0x1df   :  { %v3522_v59 = vadd.f32 %v1392_v60, %v1200_v16  ;;  %v3540_v16 = vmul.f32 %v463_v61, %v3011_v12  ;;  %4875 = vst [vmem:[#allocation137_spill] sm:$0xff] %v3546_v24  ;;  %v979_v17 = vadd.f32 %v947_v21, %v755_v26  ;;  %v3556_v61 = vmul.f32 %v471_v48, %v4879_v5  ;;  %v4883_v26 = vld [vmem:[#allocation42_spill] sm:$0xff]  ;;  %v3580_v24 = vpop.f32.mrf.mxu3 }
 0x1e0   :  { %v726_v14 = vmul.f32 %v694_v53, %v4883_v26  ;;  %v757_v53 = vadd.f32 %v725_v13, %v501_v20  ;;  %v697_v5 = vperm.slane %v3490_v56, 1  ;;  %v920_v20 = vperm.slane %v3454_v46, 2  ;;  %v4893_v36 = vld [vmem:[#allocation2_spill] sm:$0xff] }
 0x1e1   :  { %4873 = vst [vmem:[#allocation135_spill] sm:$0xff] %v3522_v59  ;;  %v1203_v8 = vadd.f32 %v1171_v41, %v979_v17  ;;  %v696_v41 = vperm.slane %v3454_v46, 1  ;;  %v921_v13 = vperm.slane %v3490_v56, 2 }
 0x1e2   :  { %4874 = vst [vmem:[#allocation136_spill] sm:$0xff] %v3540_v16  ;;  %1497 = vperm.xlu1 %2587, %v2817_v31   ;;  %1501 = vperm.xlu2 %2585, %v2812_v30   ;;  %v4880_v31 = vld [vmem:[#allocation16_spill] sm:$0xff]  ;;  %v3559_v30 = vpop.f32.mrf.mxu2  ;;  %v700_v16 = vperm.slane %v3393_v1, 1 }
 0x1e3   :  { %1553 = vperm.xlu0 %2586, %v4876_v32   ;;  %v3551_v60 = vpop.permute.xlu1 %1237  ;;  %v3553_v12 = vpop.permute.xlu2 %1277  ;;  %v502_v49 = vmul.f32 %v470_v47, %v4880_v31  ;;  %4881 = vst [vmem:[#allocation15_spill] sm:$0xff] %v3559_v30  ;;  %v1142_v32 = vperm.slane %v3406_v58, 3  ;;  %v4885_v47 = vld [vmem:[#allocation63_spill] sm:$0xff] }
 0x1e4   :  { %4877 = vst [vmem:[#allocation4_spill] sm:$0xff] %v3551_v60  ;;  %v1282_v21 = vpop.permute.xlu0 %1281  ;;  %v4884_v60 = vld [vmem:[#allocation113_spill] sm:$0xff]  ;;  %v949_v31 = vmul.f32 %v917_v19, %v4885_v47  ;;  %v1366_v47 = vperm.slane %v3406_v58, 4  ;;  %v1145_v58 = vperm.slane %v3490_v56, 3 }
 0x1e5   :  { %4878 = vst [vmem:[#allocation138_spill] sm:$0xff] %v3553_v12  ;;  %v1395_v35 = vmul.f32 %v1363_v42, %v1282_v21  ;;  %v457_v48 = vperm.slane %v4884_v60, 0  ;;  %v4889_v42 = vld [vmem:[#allocation93_spill] sm:$0xff]  ;;  %v1365_v21 = vperm.slane %v3380_v27, 4  ;;  %v758_v26 = vadd.f32 %v726_v14, %v502_v49 }
 0x1e6   :  { %v1173_v17 = vmul.f32 %v1141_v28, %v4889_v42  ;;  %v4890_v12 = vld [vmem:[#allocation97_spill] sm:$0xff]  ;;  %v4892_v28 = vld [vmem:[#allocation3_spill] sm:$0xff] }
 0x1e7   :  { %v3572_v34 = vadd.f32 %v1395_v35, %v1203_v8  ;;  %v1174_v19 = vmul.f32 %v1142_v32, %v4890_v12  ;;  %v3583_v3 = vmul.f32 %v457_v48, %v4891_v43  ;;  %v981_v8 = vadd.f32 %v949_v31, %v757_v53  ;;  %v4894_v32 = vld [vmem:[#allocation5_spill] sm:$0xff] }
 0x1e8   :  { %v473_v12 = vperm.slane %v3490_v56, 0  ;;  %v982_v49 = vadd.f32 %v950_v52, %v758_v26  ;;  %v4896_v42 = vld [vmem:[#allocation37_spill] sm:$0xff]  ;;  %v1144_v43 = vperm.slane %v3454_v46, 3  ;;  %v4898_v26 = vld [vmem:[#allocation19_spill] sm:$0xff] }
 0x1e9   :  { %4888 = vst [vmem:[#allocation16_spill] sm:$0xff] %v3572_v34  ;;  %v728_v31 = vmul.f32 %v696_v41, %v4896_v42  ;;  %v1205_v53 = vadd.f32 %v1173_v17, %v981_v8  ;;  %v4899_v34 = vperm.slane %v3313_v54, 1  ;;  %v4901_v41 = vld [vmem:[#allocation65_spill] sm:$0xff] }
 0x1ea   :  { %1509 = vperm.xlu1 %2587, %v4892_v28   ;;  %1513 = vperm.xlu2 %2585, %v4893_v36   ;;  %v4897_v36 = vld [vmem:[#allocation45_spill] sm:$0xff]  ;;  %v1206_v14 = vadd.f32 %v1174_v19, %v982_v49  ;;  %v3602_v59 = vpop.f32.mrf.mxu2  ;;  %v952_v17 = vmul.f32 %v920_v20, %v4901_v41  ;;  %v4904_v19 = vld [vmem:[#allocation71_spill] sm:$0xff]  ;;  %v1177_v20 = vmul.f32 %v1145_v58, %v4907_v23  ;;  %v4910_v23 = vld [vmem:[#allocation14_spill] sm:$0xff] }
 0x1eb   :  { %1565 = vperm.xlu0 %2586, %v4894_v32   ;;  %v3593_v48 = vpop.permute.xlu1 %1249  ;;  %v1290_v57 = vpop.permute.xlu2 %1289  ;;  %v729_v27 = vmul.f32 %v697_v5, %v4897_v36  ;;  %v708_v32 = vmul.f32 %v4899_v34, %v4898_v26  ;;  %4900 = vst [vmem:[#allocation42_spill] sm:$0xff] %v3602_v59  ;;  %v953_v49 = vmul.f32 %v921_v13, %v4904_v19  ;;  %v1368_v34 = vperm.slane %v3454_v46, 4 }
 0x1ec   :  { %4895 = vst [vmem:[#allocation35_spill] sm:$0xff] %v3593_v48  ;;  %v1397_v28 = vmul.f32 %v1365_v21, %v1290_v57  ;;  %v1294_v35 = vpop.permute.xlu0 %1293  ;;  %v481_v48 = vperm.slane %v3580_v24, 0  ;;  %v699_v21 = vperm.slane %v3602_v59, 1  ;;  %v4903_v57 = vld [vmem:[#allocation18_spill] sm:$0xff] }
 0x1ed   :  { %v1398_v52 = vmul.f32 %v1366_v47, %v1294_v35  ;;  %v505_v5 = vmul.f32 %v473_v12, %v4903_v57  ;;  %v760_v47 = vadd.f32 %v728_v31, %v504_v6  ;;  %v4906_v35 = vld [vmem:[#allocation96_spill] sm:$0xff]  ;;  %v475_v12 = vperm.slane %v3602_v59, 0  ;;  %v3624_v6 = vld [vmem:[%s4655_s1 + $0x98] sm:$0xff] }
 0x1ee   :  { %v3606_v8 = vadd.f32 %v1397_v28, %v1205_v53  ;;  %v1176_v36 = vmul.f32 %v1144_v43, %v4906_v35  ;;  %v1369_v53 = vperm.slane %v3490_v56, 4  ;;  %v677_v28 = vperm.slane %v3326_v15, 1  ;;  %4908 = vst [vmem:[#allocation68_spill] sm:$0xff] %v3624_v6 }
 0x1ef   :  { %v3611_v42 = vadd.f32 %v1398_v52, %v1206_v14  ;;  %v761_v26 = vadd.f32 %v729_v27, %v505_v5  ;;  %v984_v41 = vadd.f32 %v952_v17, %v760_v47  ;;  %v923_v14 = vperm.slane %v3602_v59, 2  ;;  %v3630_v27 = vld [vmem:[%s4655_s1 + $0xa0] sm:$0xff]  ;;  %v4912_v5 = vld [vmem:[#allocation39_spill] sm:$0xff] }
 0x1f0   :  { %4902 = vst [vmem:[#allocation63_spill] sm:$0xff] %v3606_v8  ;;  %v3634_v58 = vadd.f32 %v708_v32, %v3487_v55  ;;  %v3637_v13 = vmul.f32 %v481_v48, %v4910_v23  ;;  %v924_v43 = vperm.slane %v3393_v1, 2  ;;  %v4676_v52 = vmov 6   ;;  %v3648_v55 = vld [vmem:[%s4655_s1 + $0x8] sm:$0xff] }
 0x1f1   :  { %4905 = vst [vmem:[#allocation9_spill] sm:$0xff] %v3611_v42  ;;  %v985_v31 = vadd.f32 %v953_v49, %v761_v26  ;;  %v731_v19 = vmul.f32 %v699_v21, %v4912_v5  ;;  %v1208_v47 = vadd.f32 %v1176_v36, %v984_v41  ;;  %v1147_v35 = vperm.slane %v3602_v59, 3  ;;  %v4914_v32 = vld [vmem:[#allocation47_spill] sm:$0xff] }
 0x1f2   :  { %1521 = vperm.xlu1 %2587, %v3624_v6   ;;  %4909 = vst [vmem:[#allocation93_spill] sm:$0xff] %v3630_v27  ;;  %1525 = vperm.xlu2 %2585, %v3630_v27   ;;  %v732_v49 = vmul.f32 %v700_v16, %v4914_v32  ;;  %v1148_v23 = vperm.slane %v3393_v1, 3  ;;  %v4915_v6 = vld [vmem:[#allocation20_spill] sm:$0xff]  ;;  %v4916_v21 = vperm.slane %v3411_v0, 0  ;;  %v4921_v8 = vperm.slane %v3393_v1, 0 }
 0x1f3   :  { %2589 = vset.pattern.permute.xlu0 %v4676_v52  ;;  %v3641_v17 = vpop.permute.xlu1 %1261  ;;  %v1302_v57 = vpop.permute.xlu2 %1301  ;;  %4913 = vst [vmem:[#allocation6_spill] sm:$0xff] %v3648_v55  ;;  %v1209_v26 = vadd.f32 %v1177_v20, %v985_v31  ;;  %v474_v16 = vperm.slane %v3559_v30, 0  ;;  %v4922_v20 = vld [vmem:[#allocation74_spill] sm:$0xff]  ;;  %v4924_v32 = vld [vmem:[#allocation100_spill] sm:$0xff] }
 0x1f4   :  { %4911 = vst [vmem:[#allocation97_spill] sm:$0xff] %v3641_v17  ;;  %v1400_v27 = vmul.f32 %v1368_v34, %v1302_v57  ;;  %1673 = vperm.xlu0 %2589, %v3648_v55   ;;  %v1306_v48 = vpop.permute.xlu0 %1305  ;;  %v3656_v36 = vmul.f32 %v4916_v21, %v4915_v6  ;;  %v4917_v34 = vld [vmem:[#allocation11_spill] sm:$0xff]  ;;  %v4920_v17 = vld [vmem:[#allocation21_spill] sm:$0xff]  ;;  %v956_v31 = vmul.f32 %v924_v43, %v4922_v20  ;;  %v702_v6 = vperm.slane %v3444_v4, 1 }
 0x1f5   :  { %v1401_v52 = vmul.f32 %v1369_v53, %v1306_v48  ;;  %v507_v41 = vmul.f32 %v475_v12, %v4917_v34  ;;  %v4918_v57 = vld [vmem:[#allocation67_spill] sm:$0xff]  ;;  %v508_v55 = vmul.f32 %v4921_v8, %v4920_v17  ;;  %v1179_v21 = vmul.f32 %v1147_v35, %v4924_v32  ;;  %v4925_v34 = vld [vmem:[#allocation106_spill] sm:$0xff]  ;;  %v3683_v35 = vld [vmem:[%s4655_s1 + $0xb0] sm:$0xff] }
 0x1f6   :  { %v955_v5 = vmul.f32 %v923_v14, %v4918_v57  ;;  %v3660_v46 = vadd.f32 %v1400_v27, %v1208_v47  ;;  %v1371_v12 = vperm.slane %v3602_v59, 4  ;;  %v3672_v14 = vpop.f32.mrf.mxu3  ;;  %v703_v47 = vperm.slane %v3470_v50, 1  ;;  %4927 = vst [vmem:[#allocation5_spill] sm:$0xff] %v3683_v35  ;;  %v4931_v57 = vld [vmem:[#allocation17_spill] sm:$0xff] }
 0x1f7   :  { %v3667_v53 = vadd.f32 %v1401_v52, %v1209_v26  ;;  %v763_v48 = vadd.f32 %v731_v19, %v507_v41  ;;  %v764_v27 = vadd.f32 %v732_v49, %v508_v55  ;;  %v1180_v8 = vmul.f32 %v1148_v23, %v4925_v34  ;;  %v4926_v52 = vld [vmem:[#allocation31_spill] sm:$0xff]  ;;  %v3689_v55 = vld [vmem:[%s4655_s1 + $0xb8] sm:$0xff]  ;;  %v4929_v49 = vld [vmem:[#allocation24_spill] sm:$0xff] }
 0x1f8   :  { %4919 = vst [vmem:[#allocation3_spill] sm:$0xff] %v3660_v46  ;;  %v1372_v17 = vperm.slane %v3393_v1, 4  ;;  %v482_v43 = vperm.slane %v3672_v14, 0  ;;  %v709_v26 = vmul.f32 %v677_v28, %v4926_v52  ;;  %v926_v41 = vperm.slane %v3444_v4, 2  ;;  %v4933_v52 = vld [vmem:[#allocation41_spill] sm:$0xff] }
 0x1f9   :  { %4923 = vst [vmem:[#allocation2_spill] sm:$0xff] %v3667_v53  ;;  %v987_v19 = vadd.f32 %v955_v5, %v763_v48  ;;  %v4930_v28 = vperm.slane %v3470_v50, 0  ;;  %v3696_v5 = vmul.f32 %v474_v16, %v4931_v57  ;;  %v988_v20 = vadd.f32 %v956_v31, %v764_v27  ;;  %v4935_v31 = vld [vmem:[#allocation50_spill] sm:$0xff]  ;;  %v4939_v53 = vld [vmem:[#allocation76_spill] sm:$0xff] }
 0x1fa   :  { %1533 = vperm.xlu1 %2587, %v3683_v35   ;;  %4928 = vst [vmem:[#allocation37_spill] sm:$0xff] %v3689_v55  ;;  %1537 = vperm.xlu2 %2585, %v3689_v55   ;;  %v927_v48 = vperm.slane %v3470_v50, 2  ;;  %v734_v35 = vmul.f32 %v702_v6, %v4933_v52  ;;  %v1150_v46 = vperm.slane %v3444_v4, 3  ;;  %v3706_v55 = vld [vmem:[%s4655_s1 + $0x30] sm:$0xff]  ;;  %v735_v27 = vmul.f32 %v703_v47, %v4935_v31 }
 0x1fb   :  { %v511_v23 = vmul.f32 %v4930_v28, %v4929_v49  ;;  %v3699_v32 = vpop.permute.xlu1 %1273  ;;  %v1314_v34 = vpop.permute.xlu2 %1313  ;;  %v1211_v59 = vadd.f32 %v1179_v21, %v987_v19  ;;  %4934 = vst [vmem:[#allocation19_spill] sm:$0xff] %v3706_v55  ;;  %v1212_v49 = vadd.f32 %v1180_v8, %v988_v20  ;;  %v1151_v28 = vperm.slane %v3470_v50, 3 }
 0x1fc   :  { %4932 = vst [vmem:[#allocation45_spill] sm:$0xff] %v3699_v32  ;;  %v1403_v1 = vmul.f32 %v1371_v12, %v1314_v34  ;;  %1693 = vperm.xlu0 %2589, %v3706_v55   ;;  %v1318_v16 = vpop.permute.xlu0 %1317  ;;  %v4936_v32 = vld [vmem:[#allocation27_spill] sm:$0xff]  ;;  %v3713_v21 = vadd.f32 %v709_v26, %v3498_v25  ;;  %v4937_v12 = vld [vmem:[#allocation70_spill] sm:$0xff]  ;;  %v695_v52 = vperm.slane %v3428_v45, 1  ;;  %v705_v55 = vperm.slane %v3580_v24, 1 }
 0x1fd   :  { %v1404_v57 = vmul.f32 %v1372_v17, %v1318_v16  ;;  %v514_v6 = vmul.f32 %v482_v43, %v4936_v32  ;;  %v958_v19 = vmul.f32 %v926_v41, %v4937_v12  ;;  %v959_v56 = vmul.f32 %v927_v48, %v4939_v53  ;;  %v4941_v43 = vld [vmem:[#allocation105_spill] sm:$0xff] }
 0x1fe   :  { %v3716_v34 = vadd.f32 %v1403_v1, %v1211_v59  ;;  %v766_v8 = vadd.f32 %v734_v35, %v3536_v33  ;;  %v698_v17 = vperm.slane %v3559_v30, 1  ;;  %v1182_v20 = vmul.f32 %v1150_v46, %v4941_v43  ;;  %v4942_v59 = vld [vmem:[#allocation112_spill] sm:$0xff]  ;;  %v3736_v46 = vld [vmem:[%s4655_s1 + $0xc8] sm:$0xff] }
 0x1ff   :  { %v3721_v47 = vadd.f32 %v1404_v57, %v1212_v49  ;;  %v1374_v25 = vperm.slane %v3444_v4, 4  ;;  %v767_v26 = vadd.f32 %v735_v27, %v511_v23  ;;  %v706_v1 = vperm.slane %v3672_v14, 1  ;;  %4943 = vst [vmem:[#allocation71_spill] sm:$0xff] %v3736_v46  ;;  %v3742_v35 = vld [vmem:[%s4655_s1 + $0xd0] sm:$0xff]  ;;  %v4945_v23 = vld [vmem:[#allocation43_spill] sm:$0xff] }
 0x200   :  { %4938 = vst [vmem:[#allocation65_spill] sm:$0xff] %v3716_v34  ;;  %v1183_v41 = vmul.f32 %v1151_v28, %v4942_v59  ;;  %v1375_v32 = vperm.slane %v3470_v50, 4  ;;  %v900_v16 = vperm.slane %v3313_v54, 2  ;;  %v990_v53 = vadd.f32 %v958_v19, %v766_v8  ;;  %v4946_v27 = vld [vmem:[#allocation44_spill] sm:$0xff] }
 0x201   :  { %4940 = vst [vmem:[#allocation18_spill] sm:$0xff] %v3721_v47  ;;  %v919_v48 = vperm.slane %v3428_v45, 2  ;;  %v929_v33 = vperm.slane %v3580_v24, 2  ;;  %v727_v31 = vmul.f32 %v695_v52, %v4945_v23  ;;  %v737_v49 = vmul.f32 %v705_v55, %v4946_v27 }
 0x202   :  { %1545 = vperm.xlu1 %2587, %v3736_v46   ;;  %4944 = vst [vmem:[#allocation96_spill] sm:$0xff] %v3742_v35  ;;  %1549 = vperm.xlu2 %2585, %v3742_v35   ;;  %v991_v28 = vadd.f32 %v959_v56, %v767_v26  ;;  %v930_v57 = vperm.slane %v3672_v14, 2  ;;  %v1214_v8 = vadd.f32 %v1182_v20, %v990_v53  ;;  %v1143_v43 = vperm.slane %v3428_v45, 3  ;;  %v3755_v35 = vld [vmem:[%s4655_s1 + $0x48] sm:$0xff]  ;;  %v4949_v56 = vld [vmem:[#allocation53_spill] sm:$0xff]  ;;  %v4950_v53 = vld [vmem:[#allocation72_spill] sm:$0xff] }
 0x203   :  { %v3748_v12 = vpop.permute.xlu1 %1285  ;;  %v1326_v19 = vpop.permute.xlu2 %1325  ;;  %v1153_v59 = vperm.slane %v3580_v24, 3  ;;  %4948 = vst [vmem:[#allocation14_spill] sm:$0xff] %v3755_v35  ;;  %v738_v52 = vmul.f32 %v706_v1, %v4949_v56  ;;  %v1154_v23 = vperm.slane %v3672_v14, 3  ;;  %v901_v20 = vperm.slane %v3326_v15, 2  ;;  %v4953_v1 = vld [vmem:[#allocation110_spill] sm:$0xff] }
 0x204   :  { %4947 = vst [vmem:[#allocation101_spill] sm:$0xff] %v3748_v12  ;;  %v1406_v46 = vmul.f32 %v1374_v25, %v1326_v19  ;;  %1705 = vperm.xlu0 %2589, %v3755_v35   ;;  %v1330_v55 = vpop.permute.xlu0 %1329  ;;  %v1215_v26 = vadd.f32 %v1183_v41, %v991_v28  ;;  %v951_v4 = vmul.f32 %v919_v48, %v4950_v53  ;;  %v4951_v12 = vld [vmem:[#allocation73_spill] sm:$0xff]  ;;  %v4952_v35 = vld [vmem:[#allocation79_spill] sm:$0xff]  ;;  %v1377_v48 = vperm.slane %v3580_v24, 4  ;;  %v4955_v56 = vld [vmem:[#allocation46_spill] sm:$0xff] }
 0x205   :  { %v1407_v27 = vmul.f32 %v1375_v32, %v1330_v55  ;;  %v961_v25 = vmul.f32 %v929_v33, %v4951_v12  ;;  %v759_v34 = vadd.f32 %v727_v31, %v3556_v61  ;;  %v769_v50 = vadd.f32 %v737_v49, %v3637_v13  ;;  %v4954_v28 = vld [vmem:[#allocation111_spill] sm:$0xff]  ;;  %v4956_v12 = vld [vmem:[#allocation116_spill] sm:$0xff]  ;;  %v3797_v53 = vld [vmem:[%s4655_s1 + $0x60] sm:$0xff] }
 0x206   :  { %v3763_v19 = vadd.f32 %v1406_v46, %v1214_v8  ;;  %v962_v47 = vmul.f32 %v930_v57, %v4952_v35  ;;  %v1175_v41 = vmul.f32 %v1143_v43, %v4953_v1  ;;  %v1185_v32 = vmul.f32 %v1153_v59, %v4954_v28  ;;  %v4957_v13 = vld [vmem:[#allocation48_spill] sm:$0xff]  ;;  %v3782_v43 = vld [vmem:[%s4655_s1 + $0xe0] sm:$0xff]  ;;  %v4958_v1 = vld [vmem:[#allocation57_spill] sm:$0xff] }
 0x207   :  { %v3768_v42 = vadd.f32 %v1407_v27, %v1215_v26  ;;  %v1367_v55 = vperm.slane %v3428_v45, 4  ;;  %v730_v33 = vmul.f32 %v698_v17, %v4955_v56  ;;  %v770_v46 = vadd.f32 %v738_v52, %v514_v6  ;;  %v3788_v6 = vld [vmem:[%s4655_s1 + $0xe8] sm:$0xff] }
 0x208   :  { %v1186_v8 = vmul.f32 %v1154_v23, %v4956_v12  ;;  %v1378_v61 = vperm.slane %v3672_v14, 4  ;;  %v932_v31 = vmul.f32 %v900_v16, %v4957_v13  ;;  %v983_v35 = vadd.f32 %v951_v4, %v759_v34  ;;  %v4959_v12 = vld [vmem:[#allocation75_spill] sm:$0xff] }
 0x209   :  { %v993_v49 = vadd.f32 %v961_v25, %v769_v50  ;;  %v922_v57 = vperm.slane %v3559_v30, 2  ;;  %v1124_v17 = vperm.slane %v3313_v54, 3  ;;  %v994_v4 = vadd.f32 %v962_v47, %v770_v46 }
 0x20a   :  { %1557 = vperm.xlu1 %2587, %v3782_v43   ;;  %1561 = vperm.xlu2 %2585, %v3788_v6   ;;  %v1125_v50 = vperm.slane %v3326_v15, 3  ;;  %v1146_v34 = vperm.slane %v3559_v30, 3  ;;  %v1207_v52 = vadd.f32 %v1175_v41, %v983_v35  ;;  %v933_v47 = vmul.f32 %v901_v20, %v4958_v1 }
 0x20b   :  { %v1298_v16 = vpop.permute.xlu1 %1297  ;;  %v1338_v59 = vpop.permute.xlu2 %1337  ;;  %v1217_v26 = vadd.f32 %v1185_v32, %v993_v49  ;;  %v1218_v28 = vadd.f32 %v1186_v8, %v994_v4  ;;  %v1348_v56 = vperm.slane %v3313_v54, 4  ;;  %v954_v13 = vmul.f32 %v922_v57, %v4959_v12  ;;  %v4960_v49 = vld [vmem:[#allocation77_spill] sm:$0xff]  ;;  %v4961_v8 = vld [vmem:[#allocation83_spill] sm:$0xff] }
 0x20c   :  { %v1399_v23 = vmul.f32 %v1367_v55, %v1298_v16  ;;  %v1409_v27 = vmul.f32 %v1377_v48, %v1338_v59  ;;  %1717 = vperm.xlu0 %2589, %v3797_v53   ;;  %v1342_v25 = vpop.permute.xlu0 %1341  ;;  %v1349_v41 = vperm.slane %v3326_v15, 4  ;;  %v701_v48 = vperm.slane %v3411_v0, 1  ;;  %v4962_v4 = vld [vmem:[#allocation115_spill] sm:$0xff] }
 0x20d   :  { %v1410_v46 = vmul.f32 %v1378_v61, %v1342_v25  ;;  %v903_v35 = vperm.slane %v3352_v7, 2  ;;  %v1156_v16 = vmul.f32 %v1124_v17, %v4960_v49  ;;  %v762_v20 = vadd.f32 %v730_v33, %v3696_v5  ;;  %v3826_v5 = vld [vmem:[%s4655_s1 + $0xf8] sm:$0xff] }
 0x20e   :  { %v3804_v32 = vadd.f32 %v1399_v23, %v1207_v52  ;;  %v3806_v55 = vadd.f32 %v1409_v27, %v1217_v26  ;;  %v1157_v61 = vmul.f32 %v1125_v50, %v4961_v8  ;;  %v1178_v57 = vmul.f32 %v1146_v34, %v4962_v4  ;;  %v4963_v23 = vld [vmem:[#allocation117_spill] sm:$0xff]  ;;  %4964 = vst [vmem:[#allocation39_spill] sm:$0xff] %v3826_v5  ;;  %v4970_v4 = vld [vmem:[#allocation51_spill] sm:$0xff] }
 0x20f   :  { %v3811_v59 = vadd.f32 %v1410_v46, %v1218_v28  ;;  %v1370_v25 = vperm.slane %v3559_v30, 4  ;;  %v964_v52 = vadd.f32 %v932_v31, %v3634_v58  ;;  %v965_v26 = vadd.f32 %v933_v47, %v3713_v21  ;;  %v4966_v21 = vld [vmem:[#allocation22_spill] sm:$0xff]  ;;  %v4968_v34 = vld [vmem:[#allocation49_spill] sm:$0xff] }
 0x210   :  { %v1380_v27 = vmul.f32 %v1348_v56, %v4963_v23  ;;  %v1572_v1 = vperm.slane %v3313_v54, 5  ;;  %v986_v12 = vadd.f32 %v954_v13, %v762_v20  ;;  %v925_v17 = vperm.slane %v3411_v0, 2  ;;  %v3839_v13 = vld [vmem:[%s4655_s1] sm:$0xff] }
 0x211   :  { %v1381_v28 = vmul.f32 %v1349_v41, %v3424_v51  ;;  %v4965_v33 = vmov 6   ;;  %v1573_v58 = vperm.slane %v3326_v15, 5  ;;  %v4967_v31 = vperm.slane %v3352_v7, 1  ;;  %4969 = vst [vmem:[#allocation47_spill] sm:$0xff] %v3839_v13 }
 0x212   :  { %1569 = vperm.xlu1 %2587, %v3826_v5   ;;  %2588 = vset.pattern.permute.xlu2 %v4965_v33  ;;  %v733_v47 = vmul.f32 %v701_v48, %v4968_v34  ;;  %v1188_v56 = vadd.f32 %v1156_v16, %v964_v52  ;;  %v1127_v51 = vperm.slane %v3352_v7, 3  ;;  %v1189_v41 = vadd.f32 %v1157_v61, %v965_v26  ;;  %v3846_v48 = vld [vmem:[%s4655_s1 + $0x78] sm:$0xff]  ;;  %v4971_v61 = vld [vmem:[#allocation78_spill] sm:$0xff]  ;;  %v4972_v5 = vld [vmem:[#allocation80_spill] sm:$0xff] }
 0x213   :  { %v711_v50 = vmul.f32 %v4967_v31, %v4966_v21  ;;  %v1310_v46 = vpop.permute.xlu1 %1309  ;;  %1669 = vperm.xlu2 %2588, %v3839_v13   ;;  %v1210_v49 = vadd.f32 %v1178_v57, %v986_v12  ;;  %v1149_v20 = vperm.slane %v3411_v0, 3  ;;  %v935_v52 = vmul.f32 %v903_v35, %v4970_v4 }
 0x214   :  { %v1402_v8 = vmul.f32 %v1370_v25, %v1310_v46  ;;  %1729 = vperm.xlu0 %2589, %v3846_v48   ;;  %v1446_v16 = vpop.permute.xlu2 %1445  ;;  %v1412_v23 = vadd.f32 %v1380_v27, %v1188_v56  ;;  %v1351_v21 = vperm.slane %v3352_v7, 4  ;;  %v957_v57 = vmul.f32 %v925_v17, %v4971_v61  ;;  %v4974_v27 = vld [vmem:[#allocation121_spill] sm:$0xff] }
 0x215   :  { %v1604_v31 = vmul.f32 %v1572_v1, %v1446_v16  ;;  %v1450_v34 = vpop.permute.xlu0 %1449  ;;  %v1413_v26 = vadd.f32 %v1381_v28, %v1189_v41  ;;  %v743_v46 = vadd.f32 %v711_v50, %v3528_v37  ;;  %v704_v13 = vperm.slane %v3525_v9, 1  ;;  %v4976_v50 = vld [vmem:[#allocation25_spill] sm:$0xff]  ;;  %v4979_v16 = vld [vmem:[#allocation23_spill] sm:$0xff] }
 0x216   :  { %v3852_v12 = vadd.f32 %v1402_v8, %v1210_v49  ;;  %v1605_v25 = vmul.f32 %v1573_v58, %v1450_v34  ;;  %v1159_v54 = vmul.f32 %v1127_v51, %v4972_v5  ;;  %v765_v35 = vadd.f32 %v733_v47, %v3656_v36  ;;  %v4975_v58 = vld [vmem:[#allocation122_spill] sm:$0xff]  ;;  %v4978_v47 = vld [vmem:[#allocation119_spill] sm:$0xff]  ;;  %v3881_v34 = vld [vmem:[%s4655_s1 + $0x10] sm:$0xff] }
 0x217   :  { %v3857_v30 = vadd.f32 %v1604_v31, %v1412_v23  ;;  %v1181_v56 = vmul.f32 %v1149_v20, %v4974_v27  ;;  %v1373_v17 = vperm.slane %v3411_v0, 4  ;;  %v967_v28 = vadd.f32 %v935_v52, %v743_v46  ;;  %4981 = vst [vmem:[#allocation11_spill] sm:$0xff] %v3881_v34  ;;  %v3897_v27 = vld [vmem:[%s4655_s1 + $0x90] sm:$0xff] }
 0x218   :  { %v3861_v1 = vadd.f32 %v1605_v25, %v1413_v26  ;;  %v905_v41 = vperm.slane %v4884_v60, 2  ;;  %v1383_v49 = vmul.f32 %v1351_v21, %v4975_v58  ;;  %v1575_v37 = vperm.slane %v3352_v7, 5  ;;  %v4985_v58 = vld [vmem:[#allocation54_spill] sm:$0xff] }
 0x219   :  { %4973 = vst [vmem:[#allocation20_spill] sm:$0xff] %v3857_v30  ;;  %v4977_v5 = vperm.slane %v4884_v60, 1  ;;  %v989_v8 = vadd.f32 %v957_v57, %v765_v35  ;;  %v928_v36 = vperm.slane %v3525_v9, 2  ;;  %v1578_v20 = vperm.slane %v4978_v47, 5  ;;  %v3890_v57 = vpop.f32.mrf.mxu3  ;;  %v4987_v7 = vld [vmem:[#allocation82_spill] sm:$0xff] }
 0x21a   :  { %2590 = vset.pattern.permute.xlu1 %v4965_v33  ;;  %v4980_v4 = vperm.slane %v3525_v9, 0  ;;  %v466_v23 = vperm.slane %v3448_v10, 0  ;;  %v1191_v21 = vadd.f32 %v1159_v54, %v967_v28  ;;  %v1129_v31 = vperm.slane %v4884_v60, 3  ;;  %v3887_v33 = vld [vmem:[%s4655_s1 + $0x18] sm:$0xff]  ;;  %4983 = vst [vmem:[#allocation21_spill] sm:$0xff] %v3890_v57  ;;  %v4984_v54 = vld [vmem:[#allocation52_spill] sm:$0xff] }
 0x21b   :  { %v713_v51 = vmul.f32 %v4977_v5, %v4976_v50  ;;  %1677 = vperm.xlu1 %2590, %v3881_v34   ;;  %v1322_v61 = vpop.permute.xlu1 %1321  ;;  %4982 = vst [vmem:[#allocation67_spill] sm:$0xff] %v3887_v33  ;;  %1681 = vperm.xlu2 %2588, %v3887_v33   ;;  %v736_v26 = vmul.f32 %v704_v13, %v4984_v54  ;;  %v1152_v46 = vperm.slane %v3525_v9, 3  ;;  %v483_v54 = vperm.slane %v3890_v57, 0 }
 0x21c   :  { %v512_v52 = vmul.f32 %v4980_v4, %v4979_v16  ;;  %v1213_v25 = vadd.f32 %v1181_v56, %v989_v8  ;;  %v1405_v35 = vmul.f32 %v1373_v17, %v1322_v61  ;;  %1741 = vperm.xlu0 %2589, %v3897_v27   ;;  %v1458_v28 = vpop.permute.xlu2 %1457  ;;  %v937_v50 = vmul.f32 %v905_v41, %v4985_v58  ;;  %v4986_v56 = vld [vmem:[#allocation81_spill] sm:$0xff]  ;;  %v4993_v58 = vld [vmem:[#allocation7_spill] sm:$0xff] }
 0x21d   :  { %v1415_v5 = vadd.f32 %v1383_v49, %v1191_v21  ;;  %v1353_v16 = vperm.slane %v4884_v60, 4  ;;  %v1607_v4 = vmul.f32 %v1575_v37, %v1458_v28  ;;  %v1470_v33 = vpop.permute.xlu0 %1469  ;;  %v745_v13 = vadd.f32 %v713_v51, %v3583_v3  ;;  %v4988_v49 = vld [vmem:[#allocation124_spill] sm:$0xff] }
 0x21e   :  { %v960_v8 = vmul.f32 %v928_v36, %v4986_v56  ;;  %v3904_v17 = vadd.f32 %v1405_v35, %v1213_v25  ;;  %v1610_v61 = vmul.f32 %v1578_v20, %v1470_v33  ;;  %v707_v34 = vperm.slane %v3890_v57, 1  ;;  %v4989_v20 = vld [vmem:[#allocation125_spill] sm:$0xff]  ;;  %v4990_v35 = vld [vmem:[#allocation28_spill] sm:$0xff]  ;;  %v3938_v56 = vld [vmem:[%s4655_s1 + $0x28] sm:$0xff] }
 0x21f   :  { %v1161_v0 = vmul.f32 %v1129_v31, %v4987_v7  ;;  %v3909_v30 = vadd.f32 %v1607_v4, %v1415_v5  ;;  %v768_v41 = vadd.f32 %v736_v26, %v512_v52  ;;  %v1184_v21 = vmul.f32 %v1152_v46, %v4988_v49  ;;  %4995 = vst [vmem:[#allocation100_spill] sm:$0xff] %v3938_v56 }
 0x220   :  { %v3913_v37 = vadd.f32 %v1610_v61, %v3452_v62  ;;  %v1376_v3 = vperm.slane %v3525_v9, 4  ;;  %v969_v51 = vadd.f32 %v937_v50, %v745_v13  ;;  %v908_v36 = vperm.slane %v3328_v40, 2  ;;  %v4992_v62 = vld [vmem:[#allocation26_spill] sm:$0xff] }
 0x221   :  { %v1385_v33 = vmul.f32 %v1353_v16, %v4989_v20  ;;  %v1577_v25 = vperm.slane %v4884_v60, 5  ;;  %v4991_v7 = vperm.slane %v3328_v40, 1  ;;  %v992_v28 = vadd.f32 %v960_v8, %v768_v41  ;;  %v3932_v16 = vld [vmem:[%s4655_s1 + $0x20] sm:$0xff]  ;;  %v3946_v41 = vld [vmem:[%s4655_s1 + $0xa8] sm:$0xff] }
 0x222   :  { %v931_v52 = vperm.slane %v3890_v57, 2  ;;  %v1581_v26 = vperm.slane %v3350_v63, 5  ;;  %v515_v46 = vmul.f32 %v483_v54, %v4992_v62  ;;  %v3926_v5 = vmul.f32 %v466_v23, %v4993_v58  ;;  %4994 = vst [vmem:[#allocation74_spill] sm:$0xff] %v3932_v16  ;;  %v4996_v23 = vld [vmem:[#allocation55_spill] sm:$0xff] }
 0x223   :  { %v716_v31 = vmul.f32 %v4991_v7, %v4990_v35  ;;  %v1193_v50 = vadd.f32 %v1161_v0, %v969_v51  ;;  %v1132_v4 = vperm.slane %v3328_v40, 3  ;;  %1685 = vperm.xlu1 %2590, %v3932_v16   ;;  %v1334_v13 = vpop.permute.xlu1 %1333  ;;  %1689 = vperm.xlu2 %2588, %v3938_v56   ;;  %v739_v8 = vmul.f32 %v707_v34, %v4996_v23  ;;  %v4998_v51 = vld [vmem:[#allocation56_spill] sm:$0xff] }
 0x224   :  { %v1216_v0 = vadd.f32 %v1184_v21, %v992_v28  ;;  %v1155_v61 = vperm.slane %v3890_v57, 3  ;;  %v1408_v54 = vmul.f32 %v1376_v3, %v1334_v13  ;;  %4997 = vst [vmem:[#allocation106_spill] sm:$0xff] %v3946_v41  ;;  %1753 = vperm.xlu0 %2589, %v3946_v41   ;;  %v1466_v49 = vpop.permute.xlu2 %1465  ;;  %v940_v20 = vmul.f32 %v908_v36, %v4998_v51  ;;  %v4999_v21 = vld [vmem:[#allocation84_spill] sm:$0xff]  ;;  %v5001_v41 = vld [vmem:[#allocation85_spill] sm:$0xff] }
 0x225   :  { %v1417_v35 = vadd.f32 %v1385_v33, %v1193_v50  ;;  %v1356_v7 = vperm.slane %v3328_v40, 4  ;;  %v1609_v62 = vmul.f32 %v1577_v25, %v1466_v49  ;;  %v1482_v58 = vpop.permute.xlu0 %1481  ;;  %v748_v34 = vadd.f32 %v716_v31, %v3493_v29 }
 0x226   :  { %v963_v28 = vmul.f32 %v931_v52, %v4999_v21  ;;  %v3953_v3 = vadd.f32 %v1408_v54, %v1216_v0  ;;  %v1613_v13 = vmul.f32 %v1581_v26, %v1482_v58  ;;  %v902_v23 = vperm.slane %v3339_v22, 2  ;;  %v5003_v0 = vld [vmem:[#allocation29_spill] sm:$0xff]  ;;  %v5010_v58 = vld [vmem:[#allocation59_spill] sm:$0xff] }
 0x227   :  { %v911_v56 = vperm.slane %v3378_v11, 2  ;;  %v1164_v16 = vmul.f32 %v1132_v4, %v5001_v41  ;;  %v3958_v60 = vadd.f32 %v1609_v62, %v1417_v35  ;;  %v771_v36 = vadd.f32 %v739_v8, %v515_v46  ;;  %v5005_v41 = vld [vmem:[#allocation30_spill] sm:$0xff] }
 0x228   :  { %5000 = vst [vmem:[#allocation31_spill] sm:$0xff] %v3953_v3  ;;  %v1187_v33 = vmul.f32 %v1155_v61, %v3460_v18  ;;  %v3962_v25 = vadd.f32 %v1613_v13, %v3477_v2  ;;  %v1379_v29 = vperm.slane %v3890_v57, 4  ;;  %v680_v31 = vperm.slane %v3376_v44, 1  ;;  %v3995_v13 = vld [vmem:[%s4655_s1 + $0xc0] sm:$0xff] }
 0x229   :  { %5002 = vst [vmem:[#allocation24_spill] sm:$0xff] %v3958_v60  ;;  %v972_v52 = vadd.f32 %v940_v20, %v748_v34  ;;  %v1388_v26 = vmul.f32 %v1356_v7, %v3466_v39  ;;  %v1580_v50 = vperm.slane %v3328_v40, 5  ;;  %v5004_v4 = vperm.slane %v3339_v22, 1  ;;  %v3981_v20 = vld [vmem:[%s4655_s1 + $0x38] sm:$0xff]  ;;  %v3987_v7 = vld [vmem:[%s4655_s1 + $0x40] sm:$0xff] }
 0x22a   :  { %v5006_v46 = vperm.slane %v3378_v11, 1  ;;  %v995_v8 = vadd.f32 %v963_v28, %v771_v36  ;;  %v1584_v2 = vperm.slane %v3396_v38, 5  ;;  %v690_v61 = vperm.slane %v3448_v10, 1  ;;  %5007 = vst [vmem:[#allocation17_spill] sm:$0xff] %v3981_v20 }
 0x22b   :  { %v710_v54 = vmul.f32 %v5004_v4, %v5003_v0  ;;  %v1196_v49 = vadd.f32 %v1164_v16, %v972_v52  ;;  %v1126_v51 = vperm.slane %v3339_v22, 3  ;;  %v1135_v39 = vperm.slane %v3378_v11, 3  ;;  %1697 = vperm.xlu1 %2590, %v3981_v20   ;;  %v1346_v35 = vpop.permute.xlu1 %1345  ;;  %5008 = vst [vmem:[#allocation41_spill] sm:$0xff] %v3987_v7  ;;  %1701 = vperm.xlu2 %2588, %v3987_v7   ;;  %v5009_v16 = vld [vmem:[#allocation58_spill] sm:$0xff] }
 0x22c   :  { %v719_v18 = vmul.f32 %v5006_v46, %v5005_v41  ;;  %v934_v62 = vmul.f32 %v902_v23, %v5009_v16  ;;  %v943_v34 = vmul.f32 %v911_v56, %v5010_v58  ;;  %v1219_v21 = vadd.f32 %v1187_v33, %v995_v8  ;;  %1765 = vperm.xlu0 %2589, %v3995_v13   ;;  %v1478_v36 = vpop.permute.xlu2 %1477  ;;  %v5011_v23 = vld [vmem:[#allocation134_spill] sm:$0xff]  ;;  %v5012_v56 = vld [vmem:[#allocation136_spill] sm:$0xff] }
 0x22d   :  { %v1411_v28 = vmul.f32 %v1379_v29, %v1346_v35  ;;  %v1420_v52 = vadd.f32 %v1388_v26, %v1196_v49  ;;  %v1350_v0 = vperm.slane %v3339_v22, 4  ;;  %v1359_v4 = vperm.slane %v3378_v11, 4  ;;  %v1494_v46 = vpop.permute.xlu0 %1493  ;;  %v4004_v35 = vpop.f32.mrf.mxu0  ;;  %v5015_v7 = vld [vmem:[#allocation86_spill] sm:$0xff]  ;;  %v5016_v26 = vld [vmem:[#allocation87_spill] sm:$0xff] }
 0x22e   :  { %v1612_v41 = vmul.f32 %v1580_v50, %v1478_v36  ;;  %v742_v16 = vadd.f32 %v710_v54, %v5011_v23  ;;  %v751_v33 = vadd.f32 %v719_v18, %v5012_v56  ;;  %v1616_v8 = vmul.f32 %v1584_v2, %v1494_v46  ;;  %5014 = vst [vmem:[#allocation27_spill] sm:$0xff] %v4004_v35  ;;  %v5018_v54 = vld [vmem:[#allocation135_spill] sm:$0xff]  ;;  %v5020_v18 = vld [vmem:[#allocation132_spill] sm:$0xff]  ;;  %v5021_v2 = vld [vmem:[#allocation133_spill] sm:$0xff] }
 0x22f   :  { %v4002_v29 = vadd.f32 %v1411_v28, %v1219_v21  ;;  %v904_v58 = vperm.slane %v3376_v44, 2  ;;  %v1158_v20 = vmul.f32 %v1126_v51, %v5015_v7  ;;  %v1167_v49 = vmul.f32 %v1135_v39, %v5016_v26  ;;  %v5022_v51 = vld [vmem:[#allocation32_spill] sm:$0xff]  ;;  %v5023_v39 = vld [vmem:[#allocation33_spill] sm:$0xff] }
 0x230   :  { %v4009_v40 = vadd.f32 %v1612_v41, %v1420_v52  ;;  %v966_v57 = vadd.f32 %v934_v62, %v742_v16  ;;  %v975_v50 = vadd.f32 %v943_v34, %v751_v33  ;;  %v914_v36 = vperm.slane %v3448_v10, 2  ;;  %v5024_v34 = vld [vmem:[#allocation130_spill] sm:$0xff] }
 0x231   :  { %5013 = vst [vmem:[#allocation50_spill] sm:$0xff] %v4002_v29  ;;  %v4013_v23 = vadd.f32 %v1616_v8, %v5018_v54  ;;  %v1382_v21 = vmul.f32 %v1350_v0, %v5020_v18  ;;  %v1391_v28 = vmul.f32 %v1359_v4, %v5021_v2  ;;  %v1574_v46 = vperm.slane %v3339_v22, 5  ;;  %v4028_v4 = vld [vmem:[%s4655_s1 + $0x50] sm:$0xff]  ;;  %v4044_v54 = vld [vmem:[%s4655_s1 + $0xd8] sm:$0xff] }
 0x232   :  { %5017 = vst [vmem:[#allocation70_spill] sm:$0xff] %v4009_v40  ;;  %v1583_v56 = vperm.slane %v3378_v11, 5  ;;  %v712_v7 = vmul.f32 %v680_v31, %v5022_v51  ;;  %v722_v52 = vmul.f32 %v690_v61, %v5023_v39  ;;  %v459_v62 = vperm.slane %v4004_v35, 0  ;;  %v4034_v31 = vld [vmem:[%s4655_s1 + $0x58] sm:$0xff] }
 0x233   :  { %5019 = vst [vmem:[#allocation76_spill] sm:$0xff] %v4013_v23  ;;  %v1587_v41 = vperm.slane %v5024_v34, 5  ;;  %v1190_v16 = vadd.f32 %v1158_v20, %v966_v57  ;;  %v1199_v33 = vadd.f32 %v1167_v49, %v975_v50  ;;  %v1128_v8 = vperm.slane %v3376_v44, 3  ;;  %1709 = vperm.xlu1 %2590, %v4028_v4   ;;  %1713 = vperm.xlu2 %2588, %v4034_v31   ;;  %v5027_v57 = vld [vmem:[#allocation60_spill] sm:$0xff]  ;;  %v5028_v20 = vld [vmem:[#allocation61_spill] sm:$0xff]  ;;  %v5031_v34 = vld [vmem:[#allocation90_spill] sm:$0xff] }
 0x234   :  { %v1138_v0 = vperm.slane %v3448_v10, 3  ;;  %5025 = vst [vmem:[#allocation105_spill] sm:$0xff] %v4028_v4  ;;  %v936_v61 = vmul.f32 %v904_v58, %v5027_v57  ;;  %v946_v26 = vmul.f32 %v914_v36, %v5028_v20  ;;  %v1352_v49 = vperm.slane %v3376_v44, 4  ;;  %1777 = vperm.xlu0 %2589, %v4044_v54   ;;  %v1454_v18 = vpop.permute.xlu1 %1453  ;;  %v1490_v2 = vpop.permute.xlu2 %1489  ;;  %v5029_v57 = vld [vmem:[#allocation137_spill] sm:$0xff] }
 0x235   :  { %5026 = vst [vmem:[#allocation112_spill] sm:$0xff] %v4034_v31  ;;  %v1362_v50 = vperm.slane %v3448_v10, 4  ;;  %v1414_v51 = vadd.f32 %v1382_v21, %v1190_v16  ;;  %v1423_v39 = vadd.f32 %v1391_v28, %v1199_v33  ;;  %v1606_v31 = vmul.f32 %v1574_v46, %v1454_v18  ;;  %v1506_v58 = vpop.permute.xlu0 %1505  ;;  %v5030_v40 = vld [vmem:[#allocation89_spill] sm:$0xff] }
 0x236   :  { %v1615_v4 = vmul.f32 %v1583_v56, %v1490_v2  ;;  %v744_v36 = vadd.f32 %v712_v7, %v5029_v57  ;;  %v754_v20 = vadd.f32 %v722_v52, %v3926_v5  ;;  %v683_v11 = vperm.slane %v4004_v35, 1  ;;  %v5032_v56 = vld [vmem:[#allocation16_spill] sm:$0xff]  ;;  %v5034_v52 = vld [vmem:[#allocation138_spill] sm:$0xff] }
 0x237   :  { %v1619_v22 = vmul.f32 %v1587_v41, %v1506_v58  ;;  %v1160_v29 = vmul.f32 %v1128_v8, %v5030_v40  ;;  %v1170_v23 = vmul.f32 %v1138_v0, %v5031_v34  ;;  %v4052_v60 = vadd.f32 %v1606_v31, %v1414_v51  ;;  %v5033_v7 = vld [vmem:[#allocation4_spill] sm:$0xff]  ;;  %v5035_v34 = vld [vmem:[#allocation34_spill] sm:$0xff] }
 0x238   :  { %v4054_v3 = vadd.f32 %v1615_v4, %v1423_v39  ;;  %v968_v21 = vadd.f32 %v936_v61, %v744_v36  ;;  %v978_v28 = vadd.f32 %v946_v26, %v754_v20  ;;  %v907_v46 = vperm.slane %v4004_v35, 2  ;;  %v5036_v0 = vld [vmem:[#allocation118_spill] sm:$0xff]  ;;  %v4085_v2 = vld [vmem:[%s4655_s1 + $0xf0] sm:$0xff] }
 0x239   :  { %v4058_v16 = vadd.f32 %v1619_v22, %v5032_v56  ;;  %v1384_v5 = vmul.f32 %v1352_v49, %v5033_v7  ;;  %v1394_v33 = vmul.f32 %v1362_v50, %v5034_v52  ;;  %v1576_v41 = vperm.slane %v3376_v44, 5  ;;  %v4070_v22 = vld [vmem:[%s4655_s1 + $0x68] sm:$0xff]  ;;  %v4076_v49 = vld [vmem:[%s4655_s1 + $0x70] sm:$0xff]  ;;  %5040 = vst [vmem:[#allocation44_spill] sm:$0xff] %v4085_v2  ;;  %v5041_v56 = vld [vmem:[#allocation102_spill] sm:$0xff] }
 0x23a   :  { %v1586_v40 = vperm.slane %v3448_v10, 5  ;;  %v715_v8 = vmul.f32 %v683_v11, %v5035_v34  ;;  %v1590_v4 = vperm.slane %v5036_v0, 5  ;;  %v1192_v31 = vadd.f32 %v1160_v29, %v968_v21  ;;  %5037 = vst [vmem:[#allocation43_spill] sm:$0xff] %v4076_v49  ;;  %v5038_v11 = vld [vmem:[#allocation8_spill] sm:$0xff]  ;;  %v5039_v29 = vld [vmem:[#allocation62_spill] sm:$0xff] }
 0x23b   :  { %v1202_v61 = vadd.f32 %v1170_v23, %v978_v28  ;;  %v1131_v26 = vperm.slane %v4004_v35, 3  ;;  %1721 = vperm.xlu1 %2590, %v4070_v22   ;;  %1725 = vperm.xlu2 %2588, %v4076_v49   ;;  %v491_v50 = vmul.f32 %v459_v62, %v5038_v11  ;;  %v939_v23 = vmul.f32 %v907_v46, %v5039_v29  ;;  %v5042_v7 = vld [vmem:[#allocation92_spill] sm:$0xff] }
 0x23c   :  { %v1355_v18 = vperm.slane %v4004_v35, 4  ;;  %1789 = vperm.xlu0 %2589, %v4085_v2   ;;  %v1462_v51 = vpop.permute.xlu1 %1461  ;;  %v1502_v39 = vpop.permute.xlu2 %1501  ;;  %v1416_v58 = vadd.f32 %v1384_v5, %v1192_v31  ;;  %v686_v46 = vperm.slane %v5041_v56, 1  ;;  %v462_v29 = vperm.slane %v5041_v56, 0  ;;  %v5045_v5 = vld [vmem:[#allocation9_spill] sm:$0xff] }
 0x23d   :  { %v1426_v57 = vadd.f32 %v1394_v33, %v1202_v61  ;;  %v1608_v36 = vmul.f32 %v1576_v41, %v1462_v51  ;;  %v1618_v20 = vmul.f32 %v1586_v40, %v1502_v39  ;;  %v1518_v21 = vpop.permute.xlu0 %1517  ;;  %v747_v28 = vadd.f32 %v715_v8, %v491_v50  ;;  %v5046_v41 = vld [vmem:[#allocation35_spill] sm:$0xff]  ;;  %v5049_v50 = vld [vmem:[#allocation36_spill] sm:$0xff] }
 0x23e   :  { %v1622_v62 = vmul.f32 %v1590_v4, %v1518_v21  ;;  %v1163_v52 = vmul.f32 %v1131_v26, %v5042_v7  ;;  %v910_v49 = vperm.slane %v5041_v56, 2  ;;  %v1387_v40 = vmul.f32 %v1355_v18, %v5046_v41  ;;  %v5047_v4 = vld [vmem:[#allocation109_spill] sm:$0xff]  ;;  %v5048_v61 = vld [vmem:[#allocation131_spill] sm:$0xff]  ;;  %v5054_v41 = vld [vmem:[#allocation6_spill] sm:$0xff] }
 0x23f   :  { %v4090_v34 = vadd.f32 %v1608_v36, %v1416_v58  ;;  %v4092_v11 = vadd.f32 %v1618_v20, %v1426_v57  ;;  %v971_v2 = vadd.f32 %v939_v23, %v747_v28  ;;  %v1579_v8 = vperm.slane %v4004_v35, 5  ;;  %v4108_v23 = vld [vmem:[%s4655_s1 + $0x80] sm:$0xff]  ;;  %v4114_v18 = vld [vmem:[%s4655_s1 + $0x88] sm:$0xff]  ;;  %v5053_v20 = vld [vmem:[#allocation64_spill] sm:$0xff] }
 0x240   :  { %v4097_v33 = vadd.f32 %v1622_v62, %v5045_v5  ;;  %v1589_v31 = vperm.slane %v5047_v4, 5  ;;  %v1593_v26 = vperm.slane %v5048_v61, 5  ;;  %v718_v51 = vmul.f32 %v686_v46, %v5049_v50  ;;  %5050 = vst [vmem:[#allocation73_spill] sm:$0xff] %v4108_v23  ;;  %v5052_v57 = vld [vmem:[#allocation10_spill] sm:$0xff] }
 0x241   :  { %5043 = vst [vmem:[#allocation53_spill] sm:$0xff] %v4090_v34  ;;  %v1195_v39 = vadd.f32 %v1163_v52, %v971_v2  ;;  %v1134_v58 = vperm.slane %v5041_v56, 3  ;;  %v494_v36 = vmul.f32 %v462_v29, %v5052_v57  ;;  %v942_v2 = vmul.f32 %v910_v49, %v5053_v20  ;;  %v5056_v29 = vld [vmem:[#allocation95_spill] sm:$0xff] }
 0x242   :  { %5044 = vst [vmem:[#allocation72_spill] sm:$0xff] %v4092_v11  ;;  %v4733_v21 = vmov 7   ;;  %v1358_v7 = vperm.slane %v5041_v56, 4  ;;  %v5058_v20 = vld [vmem:[#allocation63_spill] sm:$0xff] }
 0x243   :  { %1733 = vperm.xlu1 %2590, %v4108_v23   ;;  %5051 = vst [vmem:[#allocation79_spill] sm:$0xff] %v4114_v18  ;;  %1737 = vperm.xlu2 %2588, %v4114_v18   ;;  %v1419_v46 = vadd.f32 %v1387_v40, %v1195_v39  ;;  %v5055_v23 = vld [vmem:[#allocation123_spill] sm:$0xff]  ;;  %v750_v35 = vadd.f32 %v718_v51, %v494_v36  ;;  %v5063_v51 = vld [vmem:[#allocation128_spill] sm:$0xff] }
 0x244   :  { %2592 = vset.pattern.permute.xlu0 %v4733_v21  ;;  %v1474_v28 = vpop.permute.xlu1 %1473  ;;  %v1514_v62 = vpop.permute.xlu2 %1513  ;;  %v689_v4 = vperm.slane %v5055_v23, 1  ;;  %v1166_v57 = vmul.f32 %v1134_v58, %v5056_v29  ;;  %v465_v40 = vperm.slane %v5055_v23, 0  ;;  %v913_v39 = vperm.slane %v5055_v23, 2  ;;  %v5064_v58 = vld [vmem:[#allocation114_spill] sm:$0xff]  ;;  %v5072_v11 = vld [vmem:[#allocation99_spill] sm:$0xff] }
 0x245   :  { %v1611_v52 = vmul.f32 %v1579_v8, %v1474_v28  ;;  %v1621_v5 = vmul.f32 %v1589_v31, %v1514_v62  ;;  %1897 = vperm.xlu0 %2592, %v5054_v41   ;;  %v1530_v50 = vpop.permute.xlu0 %1529  ;;  %v5060_v8 = vld [vmem:[#allocation2_spill] sm:$0xff]  ;;  %v974_v28 = vadd.f32 %v942_v2, %v750_v35  ;;  %v5062_v62 = vld [vmem:[#allocation97_spill] sm:$0xff]  ;;  %v1592_v36 = vperm.slane %v5063_v51, 5 }
 0x246   :  { %v1625_v18 = vmul.f32 %v1593_v26, %v1530_v50  ;;  %v1390_v41 = vmul.f32 %v1358_v7, %v5062_v62  ;;  %v1582_v26 = vperm.slane %v5041_v56, 5  ;;  %v1137_v29 = vperm.slane %v5055_v23, 3  ;;  %v5069_v35 = vld [vmem:[#allocation66_spill] sm:$0xff] }
 0x247   :  { %v4124_v49 = vadd.f32 %v1611_v52, %v1419_v46  ;;  %v4127_v21 = vadd.f32 %v1621_v5, %v5058_v20  ;;  %v1596_v46 = vperm.slane %v5064_v58, 5  ;;  %v5065_v52 = vld [vmem:[#allocation38_spill] sm:$0xff]  ;;  %v1198_v5 = vadd.f32 %v1166_v57, %v974_v28  ;;  %v5066_v20 = vld [vmem:[#allocation68_spill] sm:$0xff]  ;;  %v5071_v57 = vld [vmem:[#allocation103_spill] sm:$0xff] }
 0x248   :  { %v4132_v31 = vadd.f32 %v1625_v18, %v5060_v8  ;;  %v721_v50 = vmul.f32 %v689_v4, %v5065_v52  ;;  %v5068_v18 = vld [vmem:[#allocation12_spill] sm:$0xff]  ;;  %v945_v2 = vmul.f32 %v913_v39, %v5069_v35  ;;  %v1361_v51 = vperm.slane %v5055_v23, 4 }
 0x249   :  { %5057 = vst [vmem:[#allocation110_spill] sm:$0xff] %v4124_v49  ;;  %v497_v8 = vmul.f32 %v465_v40, %v5068_v18  ;;  %v1422_v56 = vadd.f32 %v1390_v41, %v1198_v5  ;;  %v692_v28 = vperm.slane %v5071_v57, 1  ;;  %v5074_v40 = vld [vmem:[#allocation3_spill] sm:$0xff]  ;;  %v468_v41 = vperm.slane %v5071_v57, 0  ;;  %v5077_v18 = vld [vmem:[#allocation45_spill] sm:$0xff] }
 0x24a   :  { %5059 = vst [vmem:[#allocation111_spill] sm:$0xff] %v4127_v21  ;;  %v5067_v21 = vld [vmem:[#allocation93_spill] sm:$0xff]  ;;  %v916_v5 = vperm.slane %v5071_v57, 2  ;;  %v1393_v35 = vmul.f32 %v1361_v51, %v5077_v18 }
 0x24b   :  { %5061 = vst [vmem:[#allocation46_spill] sm:$0xff] %v4132_v31  ;;  %1745 = vperm.xlu1 %2590, %v5066_v20   ;;  %1749 = vperm.xlu2 %2588, %v5067_v21   ;;  %v5070_v31 = vld [vmem:[#allocation19_spill] sm:$0xff]  ;;  %v753_v20 = vadd.f32 %v721_v50, %v497_v8  ;;  %v1169_v21 = vmul.f32 %v1137_v29, %v5072_v11  ;;  %v5078_v50 = vld [vmem:[#allocation42_spill] sm:$0xff]  ;;  %v5079_v11 = vld [vmem:[#allocation129_spill] sm:$0xff] }
 0x24c   :  { %v1486_v7 = vpop.permute.xlu1 %1485  ;;  %v1526_v62 = vpop.permute.xlu2 %1525  ;;  %v1595_v8 = vperm.slane %v5078_v50, 5  ;;  %v1364_v50 = vperm.slane %v5071_v57, 4 }
 0x24d   :  { %v1614_v49 = vmul.f32 %v1582_v26, %v1486_v7  ;;  %v1624_v58 = vmul.f32 %v1592_v36, %v1526_v62  ;;  %1917 = vperm.xlu0 %2592, %v5070_v31   ;;  %v1542_v4 = vpop.permute.xlu0 %1541  ;;  %v5076_v26 = vld [vmem:[#allocation18_spill] sm:$0xff]  ;;  %v977_v31 = vadd.f32 %v945_v2, %v753_v20  ;;  %v1140_v7 = vperm.slane %v5071_v57, 3  ;;  %v5081_v62 = vld [vmem:[#allocation5_spill] sm:$0xff] }
 0x24e   :  { %v1628_v52 = vmul.f32 %v1596_v46, %v1542_v4  ;;  %v1585_v46 = vperm.slane %v5055_v23, 5  ;;  %v5082_v4 = vld [vmem:[#allocation37_spill] sm:$0xff] }
 0x24f   :  { %v4148_v34 = vadd.f32 %v1614_v49, %v1422_v56  ;;  %v4151_v39 = vadd.f32 %v1624_v58, %v5074_v40  ;;  %v1599_v56 = vperm.slane %v5079_v11, 5  ;;  %v5080_v49 = vld [vmem:[#allocation40_spill] sm:$0xff]  ;;  %v1201_v58 = vadd.f32 %v1169_v21, %v977_v31  ;;  %v5084_v2 = vld [vmem:[#allocation69_spill] sm:$0xff] }
 0x250   :  { %v4156_v36 = vadd.f32 %v1628_v52, %v5076_v26  ;;  %v724_v29 = vmul.f32 %v692_v28, %v5080_v49  ;;  %v5083_v52 = vld [vmem:[#allocation13_spill] sm:$0xff]  ;;  %v948_v20 = vmul.f32 %v916_v5, %v5084_v2  ;;  %v5086_v49 = vld [vmem:[#allocation104_spill] sm:$0xff] }
 0x251   :  { %5073 = vst [vmem:[#allocation116_spill] sm:$0xff] %v4148_v34  ;;  %v500_v40 = vmul.f32 %v468_v41, %v5083_v52  ;;  %v1425_v18 = vadd.f32 %v1393_v35, %v1201_v58  ;;  %v5085_v34 = vld [vmem:[#allocation14_spill] sm:$0xff]  ;;  %v5088_v58 = vld [vmem:[#allocation101_spill] sm:$0xff] }
 0x252   :  { %5075 = vst [vmem:[#allocation48_spill] sm:$0xff] %v4151_v39  ;;  %v1396_v52 = vmul.f32 %v1364_v50, %v5088_v58 }
 0x253   :  { %1757 = vperm.xlu1 %2590, %v5081_v62   ;;  %1761 = vperm.xlu2 %2588, %v5082_v4   ;;  %v756_v31 = vadd.f32 %v724_v29, %v500_v40  ;;  %v1172_v62 = vmul.f32 %v1140_v7, %v5086_v49  ;;  %v5087_v4 = vld [vmem:[#allocation65_spill] sm:$0xff]  ;;  %v5090_v40 = vld [vmem:[#allocation71_spill] sm:$0xff] }
 0x254   :  { %v1498_v51 = vpop.permute.xlu1 %1497  ;;  %v1538_v26 = vpop.permute.xlu2 %1537 }
 0x255   :  { %v1617_v23 = vmul.f32 %v1585_v46, %v1498_v51  ;;  %v1627_v39 = vmul.f32 %v1595_v8, %v1538_v26  ;;  %1929 = vperm.xlu0 %2592, %v5085_v34   ;;  %v1554_v28 = vpop.permute.xlu0 %1553  ;;  %v980_v35 = vadd.f32 %v948_v20, %v756_v31  ;;  %v1588_v46 = vperm.slane %v5071_v57, 5  ;;  %v5089_v8 = vld [vmem:[#allocation126_spill] sm:$0xff] }
 0x256   :  { %v1631_v21 = vmul.f32 %v1599_v56, %v1554_v28  ;;  %v1598_v34 = vperm.slane %v5089_v8, 5  ;;  %v1602_v56 = vperm.slane %v3672_v14, 5  ;;  %v1601_v31 = vperm.slane %v3580_v24, 5 }
 0x257   :  { %v4171_v11 = vadd.f32 %v1617_v23, %v1425_v18  ;;  %v4174_v41 = vadd.f32 %v1627_v39, %v5087_v4  ;;  %v1204_v29 = vadd.f32 %v1172_v62, %v980_v35  ;;  %v5091_v23 = vld [vmem:[#allocation96_spill] sm:$0xff] }
 0x258   :  { %v4177_v5 = vadd.f32 %v1631_v21, %v3768_v42  ;;  %v1591_v21 = vperm.slane %v3428_v45, 5 }
 0x259   :  { %v1428_v2 = vadd.f32 %v1396_v52, %v1204_v29 }
 0x25b   :  { %1769 = vperm.xlu1 %2590, %v5090_v40   ;;  %1773 = vperm.xlu2 %2588, %v5091_v23   ;;  %v5094_v40 = vld [vmem:[#allocation39_spill] sm:$0xff]  ;;  %v5095_v23 = vmov 7  }
 0x25c   :  { %v1510_v7 = vpop.permute.xlu1 %1509  ;;  %v1550_v39 = vpop.permute.xlu2 %1549 }
 0x25d   :  { %v1620_v51 = vmul.f32 %v1588_v46, %v1510_v7  ;;  %v1630_v42 = vmul.f32 %v1598_v34, %v1550_v39  ;;  %1941 = vperm.xlu0 %2592, %v3797_v53   ;;  %v1566_v20 = vpop.permute.xlu0 %1565  ;;  %v1797_v53 = vperm.slane %v3326_v15, 6  ;;  %v5092_v46 = vld [vmem:[#allocation15_spill] sm:$0xff] }
 0x25e   :  { %v1634_v50 = vmul.f32 %v1602_v56, %v1566_v20  ;;  %v1594_v34 = vperm.slane %v5092_v46, 5  ;;  %v5093_v56 = vld [vmem:[#allocation88_spill] sm:$0xff] }
 0x25f   :  { %v4186_v26 = vadd.f32 %v1620_v51, %v1428_v2  ;;  %v4189_v18 = vadd.f32 %v1630_v42, %v3763_v19  ;;  %v1796_v29 = vperm.slane %v5093_v56, 6  ;;  %v5097_v20 = vld [vmem:[#allocation20_spill] sm:$0xff] }
 0x260   :  { %v4192_v28 = vadd.f32 %v1634_v50, %v3811_v59 }
 0x263   :  { %1781 = vperm.xlu1 %2590, %v3782_v43   ;;  %1785 = vperm.xlu2 %2588, %v3788_v6  }
 0x264   :  { %v1522_v49 = vpop.permute.xlu1 %1521  ;;  %v1562_v62 = vpop.permute.xlu2 %1561 }
 0x265   :  { %v1623_v4 = vmul.f32 %v1591_v21, %v1522_v49  ;;  %v1633_v35 = vmul.f32 %v1601_v31, %v1562_v62  ;;  %1953 = vperm.xlu0 %2592, %v3846_v48   ;;  %v1802_v48 = vperm.slane %v4978_v47, 6  ;;  %v5098_v31 = vld [vmem:[#allocation120_spill] sm:$0xff]  ;;  %v5099_v49 = vld [vmem:[#allocation98_spill] sm:$0xff] }
 0x266   :  { %v1674_v19 = vpop.permute.xlu0 %1673  ;;  %v1799_v62 = vperm.slane %v5099_v49, 6 }
 0x267   :  { %v4201_v59 = vadd.f32 %v1623_v4, %v3804_v32  ;;  %v4204_v58 = vadd.f32 %v1633_v35, %v3806_v55  ;;  %v1829_v52 = vmul.f32 %v1797_v53, %v1674_v19  ;;  %v5096_v32 = vld [vmem:[#allocation47_spill] sm:$0xff]  ;;  %v1597_v53 = vperm.slane %v5098_v31, 5 }
 0x268   :  { %v5100_v4 = vld [vmem:[#allocation11_spill] sm:$0xff] }
 0x269   :  { %v4207_v43 = vadd.f32 %v1829_v52, %v3861_v1 }
 0x26b   :  { %1793 = vperm.xlu1 %2590, %v5094_v40   ;;  %2591 = vset.pattern.permute.xlu2 %v5095_v23 }
 0x26c   :  { %v1534_v7 = vpop.permute.xlu1 %1533  ;;  %1893 = vperm.xlu2 %2591, %v5096_v32   ;;  %v1600_v32 = vperm.slane %v3525_v9, 5 }
 0x26d   :  { %v1626_v39 = vmul.f32 %v1594_v34, %v1534_v7  ;;  %1965 = vperm.xlu0 %2592, %v3897_v27   ;;  %v1670_v55 = vpop.permute.xlu2 %1669  ;;  %v1805_v27 = vperm.slane %v3350_v63, 6 }
 0x26e   :  { %v1828_v2 = vmul.f32 %v1796_v29, %v1670_v55  ;;  %v1694_v1 = vpop.permute.xlu0 %1693 }
 0x26f   :  { %v4217_v51 = vadd.f32 %v1626_v39, %v3852_v12  ;;  %v1834_v42 = vmul.f32 %v1802_v48, %v1694_v1  ;;  %v5101_v12 = vld [vmem:[#allocation67_spill] sm:$0xff]  ;;  %v5102_v39 = vld [vmem:[#allocation113_spill] sm:$0xff] }
 0x270   :  { %v4220_v50 = vadd.f32 %v1828_v2, %v5097_v20  ;;  %v1801_v55 = vperm.slane %v5102_v39, 6  ;;  %v1808_v2 = vperm.slane %v3396_v38, 6 }
 0x271   :  { %v4223_v21 = vadd.f32 %v1834_v42, %v3913_v37  ;;  %v5104_v42 = vld [vmem:[#allocation100_spill] sm:$0xff] }
 0x273   :  { %2593 = vset.pattern.permute.xlu1 %v5095_v23 }
 0x274   :  { %1901 = vperm.xlu1 %2593, %v5100_v4   ;;  %v1546_v35 = vpop.permute.xlu1 %1545  ;;  %1905 = vperm.xlu2 %2591, %v5101_v12   ;;  %v5106_v4 = vld [vmem:[#allocation24_spill] sm:$0xff] }
 0x275   :  { %v1629_v19 = vmul.f32 %v1597_v53, %v1546_v35  ;;  %1989 = vperm.xlu0 %2592, %v3995_v13   ;;  %v1682_v52 = vpop.permute.xlu2 %1681  ;;  %v5103_v13 = vld [vmem:[#allocation74_spill] sm:$0xff]  ;;  %v5107_v12 = vld [vmem:[#allocation76_spill] sm:$0xff] }
 0x276   :  { %v1831_v34 = vmul.f32 %v1799_v62, %v1682_v52  ;;  %v1706_v37 = vpop.permute.xlu0 %1705  ;;  %v5105_v62 = vld [vmem:[#allocation31_spill] sm:$0xff]  ;;  %v5108_v52 = vld [vmem:[#allocation21_spill] sm:$0xff] }
 0x277   :  { %v4233_v29 = vadd.f32 %v1629_v19, %v3904_v17  ;;  %v1837_v48 = vmul.f32 %v1805_v27, %v1706_v37  ;;  %v5109_v37 = vld [vmem:[#allocation91_spill] sm:$0xff] }
 0x278   :  { %v4236_v7 = vadd.f32 %v1831_v34, %v3909_v30  ;;  %v1603_v34 = vperm.slane %v5108_v52, 5  ;;  %v5116_v52 = vld [vmem:[#allocation108_spill] sm:$0xff] }
 0x279   :  { %v4239_v23 = vadd.f32 %v1837_v48, %v3962_v25  ;;  %v1804_v48 = vperm.slane %v5109_v37, 6 }
 0x27c   :  { %1909 = vperm.xlu1 %2593, %v5103_v13   ;;  %v1558_v1 = vpop.permute.xlu1 %1557  ;;  %1913 = vperm.xlu2 %2591, %v5104_v42  }
 0x27d   :  { %v1632_v17 = vmul.f32 %v1600_v32, %v1558_v1  ;;  %2001 = vperm.xlu0 %2592, %v4044_v54   ;;  %v1690_v20 = vpop.permute.xlu2 %1689  ;;  %v5110_v32 = vld [vmem:[#allocation130_spill] sm:$0xff]  ;;  %v5111_v54 = vld [vmem:[#allocation17_spill] sm:$0xff] }
 0x27e   :  { %v1833_v30 = vmul.f32 %v1801_v55, %v1690_v20  ;;  %v1718_v53 = vpop.permute.xlu0 %1717  ;;  %v1811_v13 = vperm.slane %v5110_v32, 6  ;;  %v5112_v1 = vld [vmem:[#allocation41_spill] sm:$0xff] }
 0x27f   :  { %v4248_v25 = vadd.f32 %v1632_v17, %v5105_v62  ;;  %v1840_v27 = vmul.f32 %v1808_v2, %v1718_v53 }
 0x280   :  { %v4251_v35 = vadd.f32 %v1833_v30, %v5106_v4  ;;  %v5113_v30 = vld [vmem:[#allocation50_spill] sm:$0xff] }
 0x281   :  { %v4254_v19 = vadd.f32 %v1840_v27, %v5107_v12  ;;  %v5114_v27 = vld [vmem:[#allocation70_spill] sm:$0xff] }
 0x284   :  { %1921 = vperm.xlu1 %2593, %v5111_v54   ;;  %v1570_v55 = vpop.permute.xlu1 %1569  ;;  %1925 = vperm.xlu2 %2591, %v5112_v1   ;;  %v5115_v54 = vld [vmem:[#allocation94_spill] sm:$0xff]  ;;  %v1807_v1 = vperm.slane %v5116_v52, 6 }
 0x285   :  { %v1635_v42 = vmul.f32 %v1603_v34, %v1570_v55  ;;  %2009 = vperm.xlu0 %2592, %v3788_v6   ;;  %v1702_v2 = vpop.permute.xlu2 %1701  ;;  %v1798_v37 = vperm.slane %v5115_v54, 6  ;;  %v1814_v34 = vperm.slane %v5036_v0, 6  ;;  %v5117_v6 = vld [vmem:[#allocation105_spill] sm:$0xff] }
 0x286   :  { %v1836_v17 = vmul.f32 %v1804_v48, %v1702_v2  ;;  %v1730_v20 = vpop.permute.xlu0 %1729  ;;  %v5118_v48 = vld [vmem:[#allocation112_spill] sm:$0xff] }
 0x287   :  { %v4263_v53 = vadd.f32 %v1635_v42, %v5113_v30  ;;  %v1843_v62 = vmul.f32 %v1811_v13, %v1730_v20  ;;  %v2629_v13 = vld [vmem:[%s4655_s1 + $0xb8] sm:$0xff] }
 0x288   :  { %v4266_v4 = vadd.f32 %v1836_v17, %v5114_v27 }
 0x289   :  { %v4269_v12 = vadd.f32 %v1843_v62, %v4058_v16 }
 0x28c   :  { %1933 = vperm.xlu1 %2593, %v5117_v6   ;;  %1937 = vperm.xlu2 %2591, %v5118_v48   ;;  %v1800_v6 = vperm.slane %v3376_v44, 6  ;;  %v1810_v48 = vperm.slane %v3448_v10, 6 }
 0x28d   :  { %1985 = vperm.xlu0 %2592, %v2629_v13   ;;  %v1678_v55 = vpop.permute.xlu1 %1677  ;;  %v1714_v42 = vpop.permute.xlu2 %1713  ;;  %v1817_v13 = vperm.slane %v5048_v61, 6  ;;  %v5129_v61 = vld [vmem:[#allocation27_spill] sm:$0xff] }
 0x28e   :  { %v1830_v2 = vmul.f32 %v1798_v37, %v1678_v55  ;;  %v1839_v16 = vmul.f32 %v1807_v1, %v1714_v42  ;;  %v1742_v17 = vpop.permute.xlu0 %1741  ;;  %v5122_v37 = vld [vmem:[#allocation43_spill] sm:$0xff]  ;;  %v1803_v10 = vperm.slane %v5129_v61, 6 }
 0x28f   :  { %v1846_v20 = vmul.f32 %v1814_v34, %v1742_v17 }
 0x290   :  { %v4280_v30 = vadd.f32 %v1830_v2, %v4052_v60  ;;  %v4283_v62 = vadd.f32 %v1839_v16, %v4054_v3  ;;  %v5123_v2 = vld [vmem:[#allocation53_spill] sm:$0xff] }
 0x291   :  { %v4286_v27 = vadd.f32 %v1846_v20, %v4097_v33  ;;  %v5125_v33 = vld [vmem:[#allocation72_spill] sm:$0xff]  ;;  %v5127_v20 = vld [vmem:[#allocation46_spill] sm:$0xff] }
 0x292   :  { %5119 = vst [vmem:[#allocation57_spill] sm:$0xff] %v4280_v30 }
 0x293   :  { %5120 = vst [vmem:[#allocation75_spill] sm:$0xff] %v4283_v62 }
 0x294   :  { %5121 = vst [vmem:[#allocation77_spill] sm:$0xff] %v4286_v27  ;;  %1945 = vperm.xlu1 %2593, %v4070_v22   ;;  %1949 = vperm.xlu2 %2591, %v5122_v37   ;;  %v5130_v22 = vld [vmem:[#allocation109_spill] sm:$0xff]  ;;  %v5131_v37 = vld [vmem:[#allocation114_spill] sm:$0xff] }
 0x295   :  { %v1686_v1 = vpop.permute.xlu1 %1685  ;;  %v1726_v34 = vpop.permute.xlu2 %1725  ;;  %v1813_v44 = vperm.slane %v5130_v22, 6  ;;  %v1820_v30 = vperm.slane %v5131_v37, 6  ;;  %v5132_v27 = vld [vmem:[#allocation73_spill] sm:$0xff] }
 0x296   :  { %v1832_v60 = vmul.f32 %v1800_v6, %v1686_v1  ;;  %v1842_v55 = vmul.f32 %v1810_v48, %v1726_v34  ;;  %v1754_v42 = vpop.permute.xlu0 %1753  ;;  %v5133_v6 = vld [vmem:[#allocation79_spill] sm:$0xff] }
 0x297   :  { %v1849_v3 = vmul.f32 %v1817_v13, %v1754_v42  ;;  %v5134_v42 = vld [vmem:[#allocation110_spill] sm:$0xff] }
 0x298   :  { %v4294_v16 = vadd.f32 %v1832_v60, %v5123_v2  ;;  %v4297_v17 = vadd.f32 %v1842_v55, %v5125_v33 }
 0x299   :  { %v4300_v62 = vadd.f32 %v1849_v3, %v5127_v20  ;;  %v5136_v3 = vld [vmem:[#allocation111_spill] sm:$0xff] }
 0x29a   :  { %5124 = vst [vmem:[#allocation83_spill] sm:$0xff] %v4294_v16 }
 0x29b   :  { %5126 = vst [vmem:[#allocation115_spill] sm:$0xff] %v4297_v17 }
 0x29c   :  { %5128 = vst [vmem:[#allocation117_spill] sm:$0xff] %v4300_v62  ;;  %1957 = vperm.xlu1 %2593, %v5132_v27   ;;  %1961 = vperm.xlu2 %2591, %v5133_v6   ;;  %v5139_v62 = vld [vmem:[#allocation102_spill] sm:$0xff]  ;;  %v5140_v27 = vld [vmem:[#allocation128_spill] sm:$0xff]  ;;  %v5141_v6 = vld [vmem:[#allocation129_spill] sm:$0xff] }
 0x29d   :  { %v1698_v48 = vpop.permute.xlu1 %1697  ;;  %v1738_v13 = vpop.permute.xlu2 %1737  ;;  %v1806_v17 = vperm.slane %v5139_v62, 6  ;;  %v1816_v16 = vperm.slane %v5140_v27, 6  ;;  %v1823_v22 = vperm.slane %v5141_v6, 6  ;;  %v5145_v27 = vld [vmem:[#allocation42_spill] sm:$0xff] }
 0x29e   :  { %v1835_v1 = vmul.f32 %v1803_v10, %v1698_v48  ;;  %v1845_v34 = vmul.f32 %v1813_v44, %v1738_v13  ;;  %v1766_v60 = vpop.permute.xlu0 %1765  ;;  %v2630_v44 = vld [vmem:[%s4655_s1 + $0x98] sm:$0xff]  ;;  %v2631_v10 = vld [vmem:[%s4655_s1 + $0xa0] sm:$0xff] }
 0x29f   :  { %v1852_v55 = vmul.f32 %v1820_v30, %v1766_v60  ;;  %v5142_v60 = vld [vmem:[#allocation116_spill] sm:$0xff] }
 0x2a0   :  { %v4308_v2 = vadd.f32 %v1835_v1, %v5134_v42  ;;  %v4311_v33 = vadd.f32 %v1845_v34, %v5136_v3  ;;  %v5143_v42 = vld [vmem:[#allocation48_spill] sm:$0xff] }
 0x2a1   :  { %v4314_v20 = vadd.f32 %v1852_v55, %v4156_v36 }
 0x2a2   :  { %5135 = vst [vmem:[#allocation22_spill] sm:$0xff] %v4308_v2 }
 0x2a3   :  { %5137 = vst [vmem:[#allocation49_spill] sm:$0xff] %v4311_v33 }
 0x2a4   :  { %5138 = vst [vmem:[#allocation51_spill] sm:$0xff] %v4314_v20  ;;  %1969 = vperm.xlu1 %2593, %v2630_v44   ;;  %1973 = vperm.xlu2 %2591, %v2631_v10   ;;  %v5144_v44 = vld [vmem:[#allocation123_spill] sm:$0xff]  ;;  %v1819_v20 = vperm.slane %v5145_v27, 6  ;;  %v1826_v10 = vperm.slane %v3672_v14, 6 }
 0x2a5   :  { %v1710_v30 = vpop.permute.xlu1 %1709  ;;  %v1750_v48 = vpop.permute.xlu2 %1749  ;;  %v1809_v2 = vperm.slane %v5144_v44, 6 }
 0x2a6   :  { %v1838_v36 = vmul.f32 %v1806_v17, %v1710_v30  ;;  %v1848_v13 = vmul.f32 %v1816_v16, %v1750_v48  ;;  %v1778_v1 = vpop.permute.xlu0 %1777  ;;  %v2632_v16 = vld [vmem:[%s4655_s1 + $0xc8] sm:$0xff]  ;;  %v2633_v17 = vld [vmem:[%s4655_s1 + $0xd0] sm:$0xff] }
 0x2a7   :  { %v1855_v34 = vmul.f32 %v1823_v22, %v1778_v1 }
 0x2a8   :  { %v4326_v55 = vadd.f32 %v1838_v36, %v5142_v60  ;;  %v4329_v3 = vadd.f32 %v1848_v13, %v5143_v42  ;;  %v1812_v42 = vperm.slane %v5071_v57, 6 }
 0x2a9   :  { %v4332_v33 = vadd.f32 %v1855_v34, %v4177_v5 }
 0x2ac   :  { %1993 = vperm.xlu1 %2593, %v2632_v16   ;;  %1997 = vperm.xlu2 %2591, %v2633_v17   ;;  %v1822_v16 = vperm.slane %v5089_v8, 6 }
 0x2ad   :  { %v1722_v22 = vpop.permute.xlu1 %1721  ;;  %v1762_v30 = vpop.permute.xlu2 %1761 }
 0x2ae   :  { %v1841_v5 = vmul.f32 %v1809_v2, %v1722_v22  ;;  %v1851_v48 = vmul.f32 %v1819_v20, %v1762_v30  ;;  %v1790_v36 = vpop.permute.xlu0 %1789  ;;  %v2634_v2 = vld [vmem:[%s4655_s1 + $0xe0] sm:$0xff] }
 0x2af   :  { %v1858_v13 = vmul.f32 %v1826_v10, %v1790_v36  ;;  %v5147_v20 = vld [vmem:[#allocation106_spill] sm:$0xff] }
 0x2b0   :  { %v4344_v1 = vadd.f32 %v1841_v5, %v4171_v11  ;;  %v4347_v34 = vadd.f32 %v1851_v48, %v4174_v41  ;;  %v2021_v11 = vperm.slane %v3326_v15, 7  ;;  %v4368_v48 = vld [vmem:[%s4657_s3] ss:$0 sm:$0xff]  ;;  %v1815_v15 = vperm.slane %v3428_v45, 6 }
 0x2b1   :  { %v4350_v60 = vadd.f32 %v1858_v13, %v4192_v28 }
 0x2b3   :  { %5146 = vst [vmem:[#allocation78_spill] sm:$0xff] %v4350_v60 }
 0x2b4   :  { %2005 = vperm.xlu1 %2593, %v2634_v2   ;;  %1977 = vperm.xlu2 %2591, %v5147_v20  }
 0x2b5   :  { %v1734_v10 = vpop.permute.xlu1 %1733  ;;  %v1774_v17 = vpop.permute.xlu2 %1773 }
 0x2b6   :  { %v1844_v41 = vmul.f32 %v1812_v42, %v1734_v10  ;;  %v1854_v22 = vmul.f32 %v1822_v16, %v1774_v17  ;;  %v1825_v42 = vperm.slane %v3580_v24, 6  ;;  %v2026_v10 = vperm.slane %v4978_v47, 7 }
 0x2b7   :  { %v1898_v30 = vpop.permute.xlu0 %1897  ;;  %v2020_v47 = vperm.slane %v5093_v56, 7 }
 0x2b8   :  { %v4360_v28 = vadd.f32 %v1844_v41, %v4186_v26  ;;  %v4363_v5 = vadd.f32 %v1854_v22, %v4189_v18  ;;  %v2053_v36 = vmul.f32 %v2021_v11, %v1898_v30  ;;  %v2635_v26 = vld [vmem:[%s4655_s1 + $0xb0] sm:$0xff]  ;;  %v2644_v22 = vmov 8.0  }
 0x2b9   :  { %v5148_v18 = vld [vmem:[#allocation44_spill] sm:$0xff]  ;;  %2595 = vrcp.f32 %v2644_v22 }
 0x2ba   :  { %v2085_v13 = vadd.f32 %v2053_v36, %v4207_v43 }
 0x2bc   :  { %v2121_v16 = vadd.f32 %v4368_v48, %v2085_v13  ;;  %1981 = vperm.xlu1 %2593, %v2635_v26   ;;  %2013 = vperm.xlu2 %2591, %v5148_v18   ;;  %v1818_v18 = vperm.slane %v5092_v46, 6 }
 0x2bd   :  { %v1746_v2 = vpop.permute.xlu1 %1745  ;;  %v1786_v20 = vpop.permute.xlu2 %1785 }
 0x2be   :  { %v2153_v11 = vmax.f32 %v2121_v16, 0.0  ;;  %v1847_v17 = vmul.f32 %v1815_v15, %v1746_v2  ;;  %v1857_v43 = vmul.f32 %v1825_v42, %v1786_v20  ;;  %v2029_v15 = vperm.slane %v3350_v63, 7 }
 0x2bf   :  { %v1918_v41 = vpop.permute.xlu0 %1917  ;;  %v4391_v2 = vpop.eup %2595 }
 0x2c0   :  { %v2191_v30 = vsel %vm50_vm0, %v2153_v11, 0.0  ;;  %v4381_v36 = vadd.f32 %v1847_v17, %v4201_v59  ;;  %v4384_v13 = vadd.f32 %v1857_v43, %v4204_v58  ;;  %v2058_v26 = vmul.f32 %v2026_v10, %v1918_v41 }
 0x2c1   :  { %v2192_v60 = vrot.slane %v2191_v30, 4  ;;  %v2409_v56 = vmul.f32 8.0, %v4391_v2  ;;  %v1821_v41 = vperm.slane %v5098_v31, 6  ;;  %vm2413_vm1 = vweird.f32 %v4391_v2 }
 0x2c2   :  { %v2090_v42 = vadd.f32 %v2058_v26, %v4223_v21 }
 0x2c3   :  { %v2193_v11 = vadd.f32 %v2192_v60, %v2191_v30  ;;  %v2023_v60 = vperm.slane %v5099_v49, 7 }
 0x2c4   :  { %2017 = vperm.xlu1 %2593, %v5094_v40   ;;  %v2126_v40 = vadd.f32 %v4368_v48, %v2090_v42 }
 0x2c5   :  { %v1758_v16 = vpop.permute.xlu1 %1757  ;;  %v2194_v22 = vrot.slane %v2193_v11, 2 }
 0x2c6   :  { %v1850_v59 = vmul.f32 %v1818_v18, %v1758_v16  ;;  %v1894_v20 = vpop.permute.xlu2 %1893  ;;  %v2410_v18 = vsub.f32 1.0, %v2409_v56 }
 0x2c7   :  { %v2052_v58 = vmul.f32 %v2020_v47, %v1894_v20  ;;  %v1930_v17 = vpop.permute.xlu0 %1929  ;;  %v2158_v47 = vmax.f32 %v2126_v40, 0.0 }
 0x2c8   :  { %v4394_v10 = vadd.f32 %v1850_v59, %v4217_v51  ;;  %v2061_v43 = vmul.f32 %v2029_v15, %v1930_v17  ;;  %v2032_v51 = vperm.slane %v3396_v38, 7 }
 0x2c9   :  { %v2084_v63 = vadd.f32 %v2052_v58, %v4220_v50  ;;  %v2195_v50 = vadd.f32 %v2194_v22, %v2193_v11  ;;  %v2226_v38 = vsel %vm50_vm0, %v2158_v47, 0.0  ;;  %v1824_v11 = vperm.slane %v3525_v9, 6 }
 0x2ca   :  { %v2093_v21 = vadd.f32 %v2061_v43, %v4239_v23 }
 0x2cb   :  { %v2120_v26 = vadd.f32 %v4368_v48, %v2084_v63  ;;  %v2196_v22 = vrot.slane %v2195_v50, 1 }
 0x2cc   :  { %v2129_v30 = vadd.f32 %v4368_v48, %v2093_v21  ;;  %v2411_v21 = vmul.f32 %v4391_v2, %v2410_v18 }
 0x2cd   :  { %v2152_v15 = vmax.f32 %v2120_v26, 0.0  ;;  %v1770_v16 = vpop.permute.xlu1 %1769 }
 0x2ce   :  { %v1853_v42 = vmul.f32 %v1821_v41, %v1770_v16  ;;  %v1906_v59 = vpop.permute.xlu2 %1905  ;;  %v2161_v43 = vmax.f32 %v2129_v30, 0.0  ;;  %v2227_v30 = vrot.slane %v2226_v38, 4  ;;  %v2412_v47 = vadd.f32 %v4391_v2, %v2411_v21 }
 0x2cf   :  { %v2184_v23 = vsel %vm50_vm0, %v2152_v15, 0.0  ;;  %v2055_v20 = vmul.f32 %v2023_v60, %v1906_v59  ;;  %v1942_v58 = vpop.permute.xlu0 %1941  ;;  %v2025_v60 = vperm.slane %v5102_v39, 7 }
 0x2d0   :  { %v2185_v17 = vrot.slane %v2184_v23, 4  ;;  %v4407_v63 = vadd.f32 %v1853_v42, %v4233_v29  ;;  %v2064_v49 = vmul.f32 %v2032_v51, %v1942_v58  ;;  %v2247_v51 = vsel %vm50_vm0, %v2161_v43, 0.0 }
 0x2d1   :  { %v2087_v56 = vadd.f32 %v2055_v20, %v4236_v7  ;;  %v2197_v20 = vadd.f32 %v2196_v22, %v2195_v50  ;;  %v2248_v39 = vrot.slane %v2247_v51, 4 }
 0x2d2   :  { %v2186_v40 = vadd.f32 %v2185_v17, %v2184_v23  ;;  %v2096_v41 = vadd.f32 %v2064_v49, %v4254_v19  ;;  %v2035_v23 = vperm.slane %v5110_v32, 7  ;;  %v2228_v49 = vadd.f32 %v2227_v30, %v2226_v38  ;;  %v5150_v30 = vld [vmem:[#allocation91_spill] sm:$0xff] }
 0x2d3   :  { %v2123_v26 = vadd.f32 %v4368_v48, %v2087_v56  ;;  %v2249_v38 = vadd.f32 %v2248_v39, %v2247_v51 }
 0x2d4   :  { %v2187_v29 = vrot.slane %v2186_v40, 2  ;;  %v2132_v18 = vadd.f32 %v4368_v48, %v2096_v41 }
 0x2d5   :  { %v2155_v7 = vmax.f32 %v2123_v26, 0.0  ;;  %v1782_v15 = vpop.permute.xlu1 %1781  ;;  %v2250_v39 = vrot.slane %v2249_v38, 2 }
 0x2d6   :  { %v2188_v19 = vadd.f32 %v2187_v29, %v2186_v40  ;;  %v2164_v16 = vmax.f32 %v2132_v18, 0.0  ;;  %v1856_v42 = vmul.f32 %v1824_v11, %v1782_v15  ;;  %v1914_v59 = vpop.permute.xlu2 %1913  ;;  %v4429_v40 = vsel %vm2413_vm1, %v4391_v2, %v2412_v47 }
 0x2d7   :  { %v2205_v58 = vsel %vm50_vm0, %v2155_v7, 0.0  ;;  %v2057_v17 = vmul.f32 %v2025_v60, %v1914_v59  ;;  %v1954_v43 = vpop.permute.xlu0 %1953  ;;  %v5149_v60 = vld [vmem:[#allocation21_spill] sm:$0xff]  ;;  %v2028_v18 = vperm.slane %v5150_v30, 7  ;;  %v2229_v7 = vrot.slane %v2228_v49, 2 }
 0x2d8   :  { %v2189_v56 = vrot.slane %v2188_v19, 1  ;;  %v2268_v21 = vsel %vm50_vm0, %v2164_v16, 0.0  ;;  %v4424_v41 = vadd.f32 %v1856_v42, %v4248_v25  ;;  %v2206_v11 = vrot.slane %v2205_v58, 4 }
 0x2d9   :  { %v2089_v32 = vadd.f32 %v2057_v17, %v4251_v35  ;;  %v2269_v22 = vrot.slane %v2268_v21, 4  ;;  %v2067_v26 = vmul.f32 %v2035_v23, %v1954_v43  ;;  %v1827_v29 = vperm.slane %v5149_v60, 6 }
 0x2da   :  { %v2190_v50 = vadd.f32 %v2189_v56, %v2188_v19  ;;  %v2416_v25 = vmul.f32 %v4429_v40, %v2197_v20  ;;  %v2207_v16 = vadd.f32 %v2206_v11, %v2205_v58  ;;  %v2038_v35 = vperm.slane %v5036_v0, 7 }
 0x2db   :  { %v2125_v2 = vadd.f32 %v4368_v48, %v2089_v32  ;;  %v2270_v42 = vadd.f32 %v2269_v22, %v2268_v21  ;;  %v2099_v59 = vadd.f32 %v2067_v26, %v4269_v12  ;;  %v2230_v43 = vadd.f32 %v2229_v7, %v2228_v49 }
 0x2dc   :  { %v2415_v15 = vmul.f32 %v4429_v40, %v2190_v50  ;;  %v2208_v58 = vrot.slane %v2207_v16, 2  ;;  %v2251_v21 = vadd.f32 %v2250_v39, %v2249_v38  ;;  %v2022_v22 = vperm.slane %v5115_v54, 7 }
 0x2dd   :  { %v1794_v47 = vpop.permute.xlu1 %1793  ;;  %v2157_v11 = vmax.f32 %v2125_v2, 0.0  ;;  %v2271_v0 = vrot.slane %v2270_v42, 2  ;;  %v2135_v50 = vadd.f32 %v4368_v48, %v2099_v59  ;;  %v2031_v26 = vperm.slane %v5116_v52, 7 }
 0x2de   :  { %v4439_v19 = vsel %vm2479_vm2, %v2416_v25, %v2415_v15  ;;  %v1859_v51 = vmul.f32 %v1827_v29, %v1794_v47  ;;  %v1926_v23 = vpop.permute.xlu2 %1925  ;;  %v2231_v29 = vrot.slane %v2230_v43, 1  ;;  %v2209_v49 = vadd.f32 %v2208_v58, %v2207_v16  ;;  %v5152_v15 = vld [vmem:[#allocation77_spill] sm:$0xff] }
 0x2df   :  { %v2060_v17 = vmul.f32 %v2028_v18, %v1926_v23  ;;  %v1966_v20 = vpop.permute.xlu0 %1965  ;;  %v2272_v25 = vadd.f32 %v2271_v0, %v2270_v42  ;;  %v2167_v7 = vmax.f32 %v2135_v50, 0.0  ;;  %v2252_v59 = vrot.slane %v2251_v21, 1  ;;  %v5154_v42 = vld [vmem:[#allocation107_spill] sm:$0xff] }
 0x2e0   :  { %v4443_v56 = vadd.f32 %v1859_v51, %v4263_v53  ;;  %v2070_v30 = vmul.f32 %v2038_v35, %v1966_v20  ;;  %v2219_v53 = vsel %vm50_vm0, %v2157_v11, 0.0  ;;  %v2232_v54 = vadd.f32 %v2231_v29, %v2230_v43  ;;  %v5153_v20 = vld [vmem:[#allocation57_spill] sm:$0xff]  ;;  %v5156_v29 = vld [vmem:[#allocation75_spill] sm:$0xff] }
 0x2e1   :  { %v2092_v32 = vadd.f32 %v2060_v17, %v4266_v4  ;;  %v2220_v39 = vrot.slane %v2219_v53, 4  ;;  %v2044_v16 = vperm.slane %v5131_v37, 7  ;;  %v2210_v17 = vrot.slane %v2209_v49, 1 }
 0x2e2   :  { %5151 = vst [vmem:[#allocation80_spill] sm:$0xff] %v4443_v56  ;;  %v2102_v4 = vadd.f32 %v2070_v30, %v5152_v15  ;;  %v2024_v11 = vperm.slane %v5154_v42, 7  ;;  %v2273_v50 = vrot.slane %v2272_v25, 1  ;;  %v2289_v30 = vsel %vm50_vm0, %v2167_v7, 0.0  ;;  %v5159_v56 = vld [vmem:[#allocation115_spill] sm:$0xff] }
 0x2e3   :  { %v2128_v12 = vadd.f32 %v4368_v48, %v2092_v32  ;;  %v5155_v32 = vld [vmem:[#allocation127_spill] sm:$0xff]  ;;  %v2047_v37 = vperm.slane %v5141_v6, 7  ;;  %v4463_v15 = vmul.f32 %v4429_v40, %v2232_v54  ;;  %v2290_v42 = vrot.slane %v2289_v30, 4 }
 0x2e4   :  { %v2034_v0 = vperm.slane %v5155_v32, 7 }
 0x2e5   :  { %v2160_v18 = vmax.f32 %v2128_v12, 0.0 }
 0x2e6   :  { %v1902_v2 = vpop.permute.xlu1 %1901  ;;  %v1938_v47 = vpop.permute.xlu2 %1937 }
 0x2e7   :  { %v2240_v38 = vsel %vm50_vm0, %v2160_v18, 0.0  ;;  %v2054_v35 = vmul.f32 %v2022_v22, %v1902_v2  ;;  %v2063_v51 = vmul.f32 %v2031_v26, %v1938_v47  ;;  %v1990_v23 = vpop.permute.xlu0 %1989  ;;  %v2138_v22 = vadd.f32 %v4368_v48, %v2102_v4 }
 0x2e8   :  { %v2241_v52 = vrot.slane %v2240_v38, 4  ;;  %v2253_v26 = vadd.f32 %v2252_v59, %v2251_v21  ;;  %v2221_v2 = vadd.f32 %v2220_v39, %v2219_v53  ;;  %v2274_v4 = vadd.f32 %v2273_v50, %v2272_v25 }
 0x2e9   :  { %v2086_v58 = vadd.f32 %v2054_v35, %v5153_v20  ;;  %v2095_v18 = vadd.f32 %v2063_v51, %v5156_v29  ;;  %v2027_v35 = vperm.slane %v5129_v61, 7  ;;  %v2211_v20 = vadd.f32 %v2210_v17, %v2209_v49  ;;  %v5158_v61 = vld [vmem:[#allocation83_spill] sm:$0xff] }
 0x2ea   :  { %v2242_v12 = vadd.f32 %v2241_v52, %v2240_v38  ;;  %v5157_v38 = vld [vmem:[#allocation109_spill] sm:$0xff]  ;;  %v2170_v59 = vmax.f32 %v2138_v22, 0.0  ;;  %v2424_v6 = vmul.f32 %v4429_v40, %v2253_v26  ;;  %v2222_v49 = vrot.slane %v2221_v2, 2 }
 0x2eb   :  { %v2122_v43 = vadd.f32 %v4368_v48, %v2086_v58  ;;  %v2037_v52 = vperm.slane %v5157_v38, 7  ;;  %v2131_v53 = vadd.f32 %v4368_v48, %v2095_v18  ;;  %v4473_v25 = vmul.f32 %v4429_v40, %v2211_v20 }
 0x2ec   :  { %v2243_v47 = vrot.slane %v2242_v12, 2  ;;  %v2291_v50 = vadd.f32 %v2290_v42, %v2289_v30  ;;  %v2223_v60 = vadd.f32 %v2222_v49, %v2221_v2 }
 0x2ed   :  { %v2154_v7 = vmax.f32 %v2122_v43, 0.0  ;;  %v2163_v38 = vmax.f32 %v2131_v53, 0.0 }
 0x2ee   :  { %v2244_v21 = vadd.f32 %v2243_v47, %v2242_v12  ;;  %v1910_v58 = vpop.permute.xlu1 %1909  ;;  %v1950_v32 = vpop.permute.xlu2 %1949  ;;  %v2076_v12 = vmul.f32 %v2044_v16, %v1990_v23  ;;  %v4476_v47 = vmul.f32 %v4429_v40, %v2274_v4  ;;  %v2030_v23 = vperm.slane %v5139_v62, 7 }
 0x2ef   :  { %v2198_v54 = vsel %vm50_vm0, %v2154_v7, 0.0  ;;  %v2056_v43 = vmul.f32 %v2024_v11, %v1910_v58  ;;  %v2002_v29 = vpop.permute.xlu0 %2001  ;;  %v2066_v22 = vmul.f32 %v2034_v0, %v1950_v32  ;;  %v2310_v7 = vsel %vm50_vm0, %v2170_v59, 0.0  ;;  %v5160_v0 = vld [vmem:[#allocation51_spill] sm:$0xff] }
 0x2f0   :  { %v2245_v39 = vrot.slane %v2244_v21, 1  ;;  %v2199_v17 = vrot.slane %v2198_v54, 4  ;;  %v2079_v58 = vmul.f32 %v2047_v37, %v2002_v29  ;;  %v2311_v16 = vrot.slane %v2310_v7, 4 }
 0x2f1   :  { %v2088_v51 = vadd.f32 %v2056_v43, %v5158_v61  ;;  %v2098_v11 = vadd.f32 %v2066_v22, %v5159_v56  ;;  %v2108_v42 = vadd.f32 %v2076_v12, %v5160_v0  ;;  %v2292_v32 = vrot.slane %v2291_v50, 2 }
 0x2f2   :  { %v2246_v26 = vadd.f32 %v2245_v39, %v2244_v21  ;;  %v2200_v18 = vadd.f32 %v2199_v17, %v2198_v54  ;;  %v5161_v21 = vld [vmem:[#allocation128_spill] sm:$0xff]  ;;  %v2261_v61 = vsel %vm50_vm0, %v2163_v38, 0.0  ;;  %v2111_v62 = vadd.f32 %v2079_v58, %v4332_v33  ;;  %v5163_v58 = vld [vmem:[#allocation49_spill] sm:$0xff] }
 0x2f3   :  { %v2124_v4 = vadd.f32 %v4368_v48, %v2088_v51  ;;  %v2040_v59 = vperm.slane %v5161_v21, 7  ;;  %v2134_v37 = vadd.f32 %v4368_v48, %v2098_v11  ;;  %v2224_v17 = vrot.slane %v2223_v60, 1 }
 0x2f4   :  { %v2423_v20 = vmul.f32 %v4429_v40, %v2246_v26  ;;  %v2201_v30 = vrot.slane %v2200_v18, 2  ;;  %v2043_v29 = vperm.slane %v5145_v27, 7  ;;  %v2312_v12 = vadd.f32 %v2311_v16, %v2310_v7  ;;  %v5162_v26 = vld [vmem:[#allocation22_spill] sm:$0xff] }
 0x2f5   :  { %v2156_v49 = vmax.f32 %v2124_v4, 0.0  ;;  %v2166_v38 = vmax.f32 %v2134_v37, 0.0  ;;  %v2293_v0 = vadd.f32 %v2292_v32, %v2291_v50  ;;  %v2147_v33 = vadd.f32 %v4368_v48, %v2111_v62 }
 0x2f6   :  { %v4487_v54 = vsel %vm2479_vm2, %v2424_v6, %v2423_v20  ;;  %v2202_v56 = vadd.f32 %v2201_v30, %v2200_v18  ;;  %v1922_v2 = vpop.permute.xlu1 %1921  ;;  %v1962_v53 = vpop.permute.xlu2 %1961  ;;  %v2144_v6 = vadd.f32 %v4368_v48, %v2108_v42  ;;  %v2262_v20 = vrot.slane %v2261_v61, 4 }
 0x2f7   :  { %v2059_v39 = vmul.f32 %v2027_v35, %v1922_v2  ;;  %v2069_v51 = vmul.f32 %v2037_v52, %v1962_v53  ;;  %v2212_v22 = vsel %vm50_vm0, %v2156_v49, 0.0  ;;  %v2225_v4 = vadd.f32 %v2224_v17, %v2223_v60 }
 0x2f8   :  { %v2203_v43 = vrot.slane %v2202_v56, 1  ;;  %v2213_v30 = vrot.slane %v2212_v22, 4  ;;  %v2045_v42 = vperm.slane %v5098_v31, 7  ;;  %v2313_v21 = vrot.slane %v2312_v12, 2 }
 0x2f9   :  { %v2091_v18 = vadd.f32 %v2059_v39, %v5162_v26  ;;  %v2101_v52 = vadd.f32 %v2069_v51, %v5163_v58  ;;  %v2176_v2 = vmax.f32 %v2144_v6, 0.0  ;;  %v2263_v32 = vadd.f32 %v2262_v20, %v2261_v61 }
 0x2fa   :  { %v2204_v11 = vadd.f32 %v2203_v43, %v2202_v56  ;;  %v2214_v16 = vadd.f32 %v2213_v30, %v2212_v22  ;;  %v2282_v49 = vsel %vm50_vm0, %v2166_v38, 0.0  ;;  %v2294_v39 = vrot.slane %v2293_v0, 1 }
 0x2fb   :  { %v2127_v35 = vadd.f32 %v4368_v48, %v2091_v18  ;;  %v2137_v53 = vadd.f32 %v4368_v48, %v2101_v52  ;;  %v2179_v43 = vmax.f32 %v2147_v33, 0.0  ;;  %v2314_v18 = vadd.f32 %v2313_v21, %v2312_v12  ;;  %v2010_v12 = vpop.permute.xlu0 %2009 }
 0x2fc   :  { %v2417_v7 = vmul.f32 %v4429_v40, %v2204_v11  ;;  %v2215_v37 = vrot.slane %v2214_v16, 2  ;;  %v2264_v20 = vrot.slane %v2263_v32, 2  ;;  %v2352_v30 = vsel %vm50_vm0, %v2176_v2, 0.0 }
 0x2fd   :  { %v2159_v56 = vmax.f32 %v2127_v35, 0.0  ;;  %v2169_v26 = vmax.f32 %v2137_v53, 0.0  ;;  %v2420_v58 = vmul.f32 %v4429_v40, %v2225_v4  ;;  %v2295_v52 = vadd.f32 %v2294_v39, %v2293_v0 }
 0x2fe   :  { %v2482_v50 = vsel %vm2481_vm3, %v2417_v7, %v4439_v19  ;;  %v1934_v60 = vpop.permute.xlu1 %1933  ;;  %v1974_v62 = vpop.permute.xlu2 %1973  ;;  %v2216_v6 = vadd.f32 %v2215_v37, %v2214_v16  ;;  %v2283_v19 = vrot.slane %v2282_v49, 4  ;;  %v2353_v21 = vrot.slane %v2352_v30, 4 }
 0x2ff   :  { %v2484_v17 = vsel %vm2483_vm4, %v4473_v25, %v2482_v50  ;;  %v2233_v51 = vsel %vm50_vm0, %v2159_v56, 0.0  ;;  %v2062_v61 = vmul.f32 %v2030_v23, %v1934_v60  ;;  %v2072_v11 = vmul.f32 %v2040_v59, %v1974_v62 }
 0x300   :  { %v2234_v22 = vrot.slane %v2233_v51, 4  ;;  %v2217_v38 = vrot.slane %v2216_v6, 1  ;;  %v2373_v25 = vsel %vm50_vm0, %v2179_v43, 0.0  ;;  %v2303_v56 = vsel %vm50_vm0, %v2169_v26, 0.0 }
 0x301   :  { %v2094_v33 = vadd.f32 %v2062_v61, %v4326_v55  ;;  %v2104_v23 = vadd.f32 %v2072_v11, %v4329_v3  ;;  %v2315_v59 = vrot.slane %v2314_v18, 1  ;;  %v2284_v53 = vadd.f32 %v2283_v19, %v2282_v49 }
 0x302   :  { %v2235_v35 = vadd.f32 %v2234_v22, %v2233_v51  ;;  %v2218_v7 = vadd.f32 %v2217_v38, %v2216_v6  ;;  %v2265_v50 = vadd.f32 %v2264_v20, %v2263_v32  ;;  %v2374_v60 = vrot.slane %v2373_v25, 4 }
 0x303   :  { %v2130_v2 = vadd.f32 %v4368_v48, %v2094_v33  ;;  %v2304_v55 = vrot.slane %v2303_v56, 4  ;;  %v5164_v62 = vperm.slane %v3580_v24, 7  ;;  %v2046_v51 = vperm.slane %v5089_v8, 7 }
 0x304   :  { %v2236_v16 = vrot.slane %v2235_v35, 2  ;;  %v2419_v4 = vmul.f32 %v4429_v40, %v2218_v7  ;;  %v2140_v22 = vadd.f32 %v4368_v48, %v2104_v23  ;;  %v2316_v32 = vadd.f32 %v2315_v59, %v2314_v18 }
 0x305   :  { %v2081_v39 = vmul.f32 %v5164_v62, %v2010_v12  ;;  %v2162_v49 = vmax.f32 %v2130_v2, 0.0  ;;  %v2354_v26 = vadd.f32 %v2353_v21, %v2352_v30  ;;  %v2285_v61 = vrot.slane %v2284_v53, 2 }
 0x306   :  { %v2237_v0 = vadd.f32 %v2236_v16, %v2235_v35  ;;  %v1946_v37 = vpop.permute.xlu1 %1945  ;;  %v1998_v43 = vpop.permute.xlu2 %1997  ;;  %v2486_v3 = vsel %vm2485_vm5, %v2419_v4, %v2484_v17  ;;  %v2266_v11 = vrot.slane %v2265_v50, 1  ;;  %v2375_v35 = vadd.f32 %v2374_v60, %v2373_v25 }
 0x307   :  { %v2488_v19 = vsel %vm2487_vm6, %v2420_v58, %v2486_v3  ;;  %v2254_v38 = vsel %vm50_vm0, %v2162_v49, 0.0  ;;  %v2305_v8 = vadd.f32 %v2304_v55, %v2303_v56  ;;  %v2113_v17 = vadd.f32 %v2081_v39, %v4384_v13  ;;  %v1986_v49 = vpop.permute.xlu0 %1985 }
 0x308   :  { %v2238_v6 = vrot.slane %v2237_v0, 1  ;;  %v2490_v24 = vsel %vm2489_vm7, %v4463_v15, %v2488_v19  ;;  %v2255_v33 = vrot.slane %v2254_v38, 4  ;;  %v2172_v16 = vmax.f32 %v2140_v22, 0.0 }
 0x309   :  { %v2033_v18 = vperm.slane %v5144_v44, 7  ;;  %v2078_v30 = vmul.f32 %v2046_v51, %v1998_v43  ;;  %v4529_v58 = vmul.f32 %v4429_v40, %v2295_v52  ;;  %v2355_v12 = vrot.slane %v2354_v26, 2  ;;  %v5166_v43 = vld [vmem:[#allocation131_spill] sm:$0xff] }
 0x30a   :  { %v2239_v20 = vadd.f32 %v2238_v6, %v2237_v0  ;;  %v2286_v23 = vadd.f32 %v2285_v61, %v2284_v53  ;;  %v2256_v59 = vadd.f32 %v2255_v33, %v2254_v38  ;;  %v2267_v15 = vadd.f32 %v2266_v11, %v2265_v50 }
 0x30b   :  { %v2065_v25 = vmul.f32 %v2033_v18, %v1946_v37  ;;  %v2110_v56 = vadd.f32 %v2078_v30, %v4363_v5  ;;  %v4534_v2 = vmul.f32 %v4429_v40, %v2316_v32  ;;  %v2376_v4 = vrot.slane %v2375_v35, 2 }
 0x30c   :  { %v2422_v7 = vmul.f32 %v4429_v40, %v2239_v20  ;;  %v2149_v44 = vadd.f32 %v4368_v48, %v2113_v17  ;;  %v2257_v52 = vrot.slane %v2256_v59, 2  ;;  %v2306_v53 = vrot.slane %v2305_v8, 2 }
 0x30d   :  { %v2324_v50 = vsel %vm50_vm0, %v2172_v16, 0.0  ;;  %v2097_v0 = vadd.f32 %v2065_v25, %v4344_v1  ;;  %v5165_v5 = vperm.slane %v5071_v57, 7  ;;  %v2287_v60 = vrot.slane %v2286_v23, 1 }
 0x30e   :  { %v2492_v21 = vsel %vm2491_vm8, %v2422_v7, %v2490_v24  ;;  %v1958_v13 = vpop.permute.xlu1 %1957  ;;  %v2258_v55 = vadd.f32 %v2257_v52, %v2256_v59  ;;  %v2146_v62 = vadd.f32 %v4368_v48, %v2110_v56  ;;  %v1978_v39 = vpop.permute.xlu2 %1977  ;;  %v2041_v51 = vperm.slane %v5166_v43, 7 }
 0x30f   :  { %2518 = vst.msk [vmem:[%s4658_s4] sm:$0xff] %vm50_vm0, %v2492_v21  ;;  %v2068_v37 = vmul.f32 %v5165_v5, %v1958_v13  ;;  %v2426_v3 = vmul.f32 %v4429_v40, %v2267_v15  ;;  %v4548_v6 = vadd.f32 %v2355_v12, %v2354_v26  ;;  %v2133_v22 = vadd.f32 %v4368_v48, %v2097_v0 }
 0x310   :  { %v4552_v1 = vadd.f32 %v2376_v4, %v2375_v35  ;;  %v2181_v57 = vmax.f32 %v2149_v44, 0.0  ;;  %v2259_v19 = vrot.slane %v2258_v55, 1  ;;  %v2325_v61 = vrot.slane %v2324_v50, 4 }
 0x311   :  { %v2100_v32 = vadd.f32 %v2068_v37, %v4360_v28  ;;  %v2307_v11 = vadd.f32 %v2306_v53, %v2305_v8  ;;  %v2165_v20 = vmax.f32 %v2133_v22, 0.0  ;;  %v2073_v38 = vmul.f32 %v2041_v51, %v1978_v39  ;;  %v5167_v28 = vld [vmem:[#allocation117_spill] sm:$0xff] }
 0x312   :  { %v2288_v17 = vadd.f32 %v2287_v60, %v2286_v23  ;;  %v2260_v33 = vadd.f32 %v2259_v19, %v2258_v55  ;;  %v2075_v26 = vmul.f32 %v2043_v29, %v1986_v49  ;;  %v2178_v7 = vmax.f32 %v2146_v62, 0.0 }
 0x313   :  { %v2136_v24 = vadd.f32 %v4368_v48, %v2100_v32  ;;  %v2275_v16 = vsel %vm50_vm0, %v2165_v20, 0.0  ;;  %v2105_v35 = vadd.f32 %v2073_v38, %v5167_v28  ;;  %v2039_v12 = vperm.slane %v3428_v45, 7 }
 0x314   :  { %v4561_v8 = vsel %vm50_vm0, %v2181_v57, 0.0  ;;  %v2425_v59 = vmul.f32 %v4429_v40, %v2260_v33  ;;  %v2326_v15 = vadd.f32 %v2325_v61, %v2324_v50  ;;  %v2276_v23 = vrot.slane %v2275_v16, 4 }
 0x315   :  { %v2168_v18 = vmax.f32 %v2136_v24, 0.0  ;;  %v2308_v21 = vrot.slane %v2307_v11, 1  ;;  %v2141_v29 = vadd.f32 %v4368_v48, %v2105_v35  ;;  %v2366_v4 = vsel %vm50_vm0, %v2178_v7, 0.0 }
 0x316   :  { %v1970_v30 = vpop.permute.xlu1 %1969  ;;  %v2494_v56 = vsel %vm2481_vm3, %v2425_v59, %v4487_v54  ;;  %v2277_v13 = vadd.f32 %v2276_v23, %v2275_v16  ;;  %v2107_v52 = vadd.f32 %v2075_v26, %v4347_v34  ;;  %v2327_v0 = vrot.slane %v2326_v15, 2  ;;  %v2014_v55 = vpop.permute.xlu2 %2013  ;;  %v5168_v26 = vld [vmem:[#allocation78_spill] sm:$0xff] }
 0x317   :  { %v2296_v27 = vsel %vm50_vm0, %v2168_v18, 0.0  ;;  %v2071_v25 = vmul.f32 %v2039_v12, %v1970_v30  ;;  %v2495_v44 = vsel %vm2483_vm4, %v2426_v3, %v2494_v56  ;;  %v2173_v53 = vmax.f32 %v2141_v29, 0.0 }
 0x318   :  { %v2297_v45 = vrot.slane %v2296_v27, 4  ;;  %v2278_v5 = vrot.slane %v2277_v13, 2  ;;  %v2496_v37 = vsel %vm2485_vm5, %v4476_v47, %v2495_v44  ;;  %v2367_v62 = vrot.slane %v2366_v4, 4 }
 0x319   :  { %v2103_v50 = vadd.f32 %v2071_v25, %v4381_v36  ;;  %v2331_v54 = vsel %vm50_vm0, %v2173_v53, 0.0  ;;  %v2050_v43 = vperm.slane %v3672_v14, 7  ;;  %v2429_v51 = vmul.f32 %v4429_v40, %v2288_v17 }
 0x31a   :  { %v2298_v60 = vadd.f32 %v2297_v45, %v2296_v27  ;;  %v2279_v34 = vadd.f32 %v2278_v5, %v2277_v13  ;;  %v2332_v49 = vrot.slane %v2331_v54, 4  ;;  %v2309_v36 = vadd.f32 %v2308_v21, %v2307_v11 }
 0x31b   :  { %v2139_v39 = vadd.f32 %v4368_v48, %v2103_v50  ;;  %v2143_v22 = vadd.f32 %v4368_v48, %v2107_v52  ;;  %v2082_v57 = vmul.f32 %v2050_v43, %v2014_v55  ;;  %v2328_v19 = vadd.f32 %v2327_v0, %v2326_v15 }
 0x31c   :  { %v2299_v3 = vrot.slane %v2298_v60, 2  ;;  %v2280_v61 = vrot.slane %v2279_v34, 1  ;;  %v2333_v24 = vadd.f32 %v2332_v49, %v2331_v54  ;;  %v2368_v38 = vadd.f32 %v2367_v62, %v2366_v4 }
 0x31d   :  { %v2171_v32 = vmax.f32 %v2139_v39, 0.0  ;;  %v2114_v14 = vadd.f32 %v2082_v57, %v5168_v26  ;;  %v2432_v28 = vmul.f32 %v4429_v40, %v2309_v36  ;;  %v2388_v35 = vrot.slane %v4561_v8, 4 }
 0x31e   :  { %v1994_v47 = vpop.permute.xlu1 %1993  ;;  %v2300_v20 = vadd.f32 %v2299_v3, %v2298_v60  ;;  %v2281_v7 = vadd.f32 %v2280_v61, %v2279_v34  ;;  %v2334_v11 = vrot.slane %v2333_v24, 2  ;;  %v2329_v27 = vrot.slane %v2328_v19, 1 }
 0x31f   :  { %v2317_v33 = vsel %vm50_vm0, %v2171_v32, 0.0  ;;  %v2077_v17 = vmul.f32 %v2045_v42, %v1994_v47  ;;  %v2150_v30 = vadd.f32 %v4368_v48, %v2114_v14  ;;  %v2175_v31 = vmax.f32 %v2143_v22, 0.0 }
 0x320   :  { %v2301_v16 = vrot.slane %v2300_v20, 1  ;;  %v2318_v18 = vrot.slane %v2317_v33, 4  ;;  %v2428_v59 = vmul.f32 %v4429_v40, %v2281_v7  ;;  %v2335_v23 = vadd.f32 %v2334_v11, %v2333_v24 }
 0x321   :  { %v2109_v12 = vadd.f32 %v2077_v17, %v4407_v63  ;;  %v2182_v42 = vmax.f32 %v2150_v30, 0.0  ;;  %v2369_v56 = vrot.slane %v2368_v38, 2  ;;  %v2048_v53 = vperm.slane %v3525_v9, 7 }
 0x322   :  { %v2302_v15 = vadd.f32 %v2301_v16, %v2300_v20  ;;  %v2319_v21 = vadd.f32 %v2318_v18, %v2317_v33  ;;  %v2497_v25 = vsel %vm2487_vm6, %v2428_v59, %v2496_v37  ;;  %v2336_v5 = vrot.slane %v2335_v23, 1 }
 0x323   :  { %v2145_v29 = vadd.f32 %v4368_v48, %v2109_v12  ;;  %v2498_v45 = vsel %vm2489_vm7, %v2429_v51, %v2497_v25  ;;  %v2394_v63 = vsel %vm50_vm0, %v2182_v42, 0.0  ;;  %v2389_v9 = vadd.f32 %v2388_v35, %v4561_v8 }
 0x324   :  { %v2431_v13 = vmul.f32 %v4429_v40, %v2302_v15  ;;  %v2320_v4 = vrot.slane %v2319_v21, 2  ;;  %v2499_v50 = vsel %vm2491_vm8, %v4529_v58, %v2498_v45  ;;  %v2395_v55 = vrot.slane %v2394_v63, 4 }
 0x325   :  { %v2177_v44 = vmax.f32 %v2145_v29, 0.0  ;;  %2519 = vst.msk [vmem:[%s4658_s4 + $0x8] sm:$0xff] %vm50_vm0, %v2499_v50  ;;  %v2345_v58 = vsel %vm50_vm0, %v2175_v31, 0.0  ;;  %v2330_v51 = vadd.f32 %v2329_v27, %v2328_v19  ;;  %v2370_v34 = vadd.f32 %v2369_v56, %v2368_v38 }
 0x326   :  { %v2006_v52 = vpop.permute.xlu1 %2005  ;;  %v2500_v0 = vsel %vm2479_vm2, %v2432_v28, %v2431_v13  ;;  %v2321_v60 = vadd.f32 %v2320_v4, %v2319_v21  ;;  %v2396_v3 = vadd.f32 %v2395_v55, %v2394_v63  ;;  %v2337_v36 = vadd.f32 %v2336_v5, %v2335_v23  ;;  %v5169_v63 = vld [vmem:[#allocation21_spill] sm:$0xff] }
 0x327   :  { %v2501_v37 = vsel %vm2481_vm3, %v4534_v2, %v2500_v0  ;;  %v2359_v62 = vsel %vm50_vm0, %v2177_v44, 0.0  ;;  %v2080_v54 = vmul.f32 %v2048_v53, %v2006_v52  ;;  %v2357_v2 = vrot.slane %v4548_v6, 1 }
 0x328   :  { %v2322_v39 = vrot.slane %v2321_v60, 1  ;;  %v2360_v43 = vrot.slane %v2359_v62, 4  ;;  %v2378_v57 = vrot.slane %v4552_v1, 1  ;;  %v2346_v47 = vrot.slane %v2345_v58, 4 }
 0x329   :  { %v2112_v49 = vadd.f32 %v2080_v54, %v4424_v41  ;;  %v2390_v8 = vrot.slane %v2389_v9, 2  ;;  %v2042_v19 = vperm.slane %v5092_v46, 7  ;;  %v2435_v38 = vmul.f32 %v4429_v40, %v2330_v51 }
 0x32a   :  { %v2323_v22 = vadd.f32 %v2322_v39, %v2321_v60  ;;  %v2361_v32 = vadd.f32 %v2360_v43, %v2359_v62  ;;  %v2371_v33 = vrot.slane %v2370_v34, 1  ;;  %v2397_v41 = vrot.slane %v2396_v3, 2  ;;  %v5170_v39 = vld [vmem:[#allocation80_spill] sm:$0xff] }
 0x32b   :  { %v2148_v61 = vadd.f32 %v4368_v48, %v2112_v49  ;;  %v2436_v17 = vmul.f32 %v4429_v40, %v2337_v36  ;;  %v2358_v18 = vadd.f32 %v2357_v2, %v4548_v6  ;;  %v2347_v28 = vadd.f32 %v2346_v47, %v2345_v58 }
 0x32c   :  { %v2434_v20 = vmul.f32 %v4429_v40, %v2323_v22  ;;  %v2362_v24 = vrot.slane %v2361_v32, 2  ;;  %v2379_v23 = vadd.f32 %v2378_v57, %v4552_v1  ;;  %v2391_v21 = vadd.f32 %v2390_v8, %v2389_v9 }
 0x32d   :  { %v2180_v26 = vmax.f32 %v2148_v61, 0.0  ;;  %v2372_v27 = vadd.f32 %v2371_v33, %v2370_v34  ;;  %v2398_v31 = vadd.f32 %v2397_v41, %v2396_v3  ;;  %v2439_v25 = vmul.f32 %v4429_v40, %v2358_v18 }
 0x32e   :  { %v1982_v14 = vpop.permute.xlu1 %1981  ;;  %v2502_v7 = vsel %vm2483_vm4, %v2434_v20, %v2501_v37  ;;  %v2363_v16 = vadd.f32 %v2362_v24, %v2361_v32  ;;  %v2348_v56 = vrot.slane %v2347_v28, 2  ;;  %v2442_v44 = vmul.f32 %v4429_v40, %v2379_v23 }
 0x32f   :  { %v2074_v11 = vmul.f32 %v2042_v19, %v1982_v14  ;;  %v2503_v35 = vsel %vm2485_vm5, %v2435_v38, %v2502_v7  ;;  %v2380_v30 = vsel %vm50_vm0, %v2180_v26, 0.0  ;;  %v2392_v52 = vrot.slane %v2391_v21, 1 }
 0x330   :  { %v2364_v46 = vrot.slane %v2363_v16, 1  ;;  %v2381_v12 = vrot.slane %v2380_v30, 4  ;;  %v2504_v15 = vsel %vm2487_vm6, %v2436_v17, %v2503_v35  ;;  %v2441_v1 = vmul.f32 %v4429_v40, %v2372_v27 }
 0x331   :  { %v2106_v59 = vadd.f32 %v2074_v11, %v4394_v10  ;;  %v2051_v10 = vperm.slane %v5169_v63, 7  ;;  %v2399_v53 = vrot.slane %v2398_v31, 1  ;;  %v2349_v54 = vadd.f32 %v2348_v56, %v2347_v28 }
 0x332   :  { %v2365_v42 = vadd.f32 %v2364_v46, %v2363_v16  ;;  %v2382_v29 = vadd.f32 %v2381_v12, %v2380_v30  ;;  %v2393_v51 = vadd.f32 %v2392_v52, %v2391_v21 }
 0x333   :  { %v2142_v6 = vadd.f32 %v4368_v48, %v2106_v59  ;;  %v2400_v3 = vadd.f32 %v2399_v53, %v2398_v31  ;;  %v2350_v32 = vrot.slane %v2349_v54, 1 }
 0x334   :  { %v2440_v13 = vmul.f32 %v4429_v40, %v2365_v42  ;;  %v2383_v4 = vrot.slane %v2382_v29, 2  ;;  %v2444_v47 = vmul.f32 %v4429_v40, %v2393_v51 }
 0x335   :  { %v2174_v45 = vmax.f32 %v2142_v6, 0.0  ;;  %v2445_v8 = vmul.f32 %v4429_v40, %v2400_v3  ;;  %v2351_v41 = vadd.f32 %v2350_v32, %v2349_v54 }
 0x336   :  { %v2018_v50 = vpop.permute.xlu1 %2017  ;;  %v2507_v0 = vsel %vm2479_vm2, %v2440_v13, %v2439_v25  ;;  %v2384_v5 = vadd.f32 %v2383_v4, %v2382_v29 }
 0x337   :  { %v2338_v60 = vsel %vm50_vm0, %v2174_v45, 0.0  ;;  %v2083_v37 = vmul.f32 %v2051_v10, %v2018_v50  ;;  %v2508_v55 = vsel %vm2481_vm3, %v2441_v1, %v2507_v0  ;;  %v2438_v16 = vmul.f32 %v4429_v40, %v2351_v41 }
 0x338   :  { %v2339_v62 = vrot.slane %v2338_v60, 4  ;;  %v2385_v9 = vrot.slane %v2384_v5, 1  ;;  %v2509_v58 = vsel %vm2483_vm4, %v2442_v44, %v2508_v55 }
 0x339   :  { %v2115_v43 = vadd.f32 %v2083_v37, %v5170_v39 }
 0x33a   :  { %v2340_v34 = vadd.f32 %v2339_v62, %v2338_v60  ;;  %v2386_v49 = vadd.f32 %v2385_v9, %v2384_v5 }
 0x33b   :  { %v2151_v36 = vadd.f32 %v4368_v48, %v2115_v43 }
 0x33c   :  { %v2341_v22 = vrot.slane %v2340_v34, 2  ;;  %v2443_v2 = vmul.f32 %v4429_v40, %v2386_v49 }
 0x33d   :  { %v2183_v57 = vmax.f32 %v2151_v36, 0.0 }
 0x33e   :  { %v2342_v61 = vadd.f32 %v2341_v22, %v2340_v34  ;;  %v2510_v20 = vsel %vm2485_vm5, %v2443_v2, %v2509_v58 }
 0x33f   :  { %v2401_v24 = vsel %vm50_vm0, %v2183_v57, 0.0  ;;  %v2511_v19 = vsel %vm2487_vm6, %v2444_v47, %v2510_v20 }
 0x340   :  { %v2343_v38 = vrot.slane %v2342_v61, 1  ;;  %v2402_v33 = vrot.slane %v2401_v24, 4  ;;  %v2512_v48 = vsel %vm2489_vm7, %v2445_v8, %v2511_v19 }
 0x342   :  { %v2344_v26 = vadd.f32 %v2343_v38, %v2342_v61  ;;  %v2403_v14 = vadd.f32 %v2402_v33, %v2401_v24 }
 0x344   :  { %v2437_v17 = vmul.f32 %v4429_v40, %v2344_v26  ;;  %v2404_v7 = vrot.slane %v2403_v14, 2 }
 0x346   :  { %v2505_v11 = vsel %vm2489_vm7, %v2437_v17, %v2504_v15  ;;  %v2405_v18 = vadd.f32 %v2404_v7, %v2403_v14 }
 0x347   :  { %v2506_v28 = vsel %vm2491_vm8, %v2438_v16, %v2505_v11 }
 0x348   :  { %2520 = vst.msk [vmem:[%s4658_s4 + $0x10] sm:$0xff] %vm50_vm0, %v2506_v28  ;;  %v2406_v35 = vrot.slane %v2405_v18, 1 }
 0x34a   :  { %v2407_v30 = vadd.f32 %v2406_v35, %v2405_v18 }
 0x34c   :  { %v2446_v46 = vmul.f32 %v4429_v40, %v2407_v30 }
 0x34e   :  { %v2513_v12 = vsel %vm2491_vm8, %v2446_v46, %v2512_v48 }
 0x34f   :  { %2521 = vst.msk [vmem:[%s4658_s4 + $0x18] sm:$0xff] %vm50_vm0, %v2513_v12 }

</bundles_post_ra>
